<compile_context>
chip_gen: v6e
topology: v6e:2x2x1
jax: 0.10.0
libtpu: 0.0.40
codegen_flags: <defaults>
</compile_context>

<pallas_src>
import functools

import jax
import jax.numpy as jnp
from jax import lax
from jax.experimental import pallas as pl
from jax.experimental.pallas import tpu as pltpu


# ------------------------------ helpers --------------------------------------


def _round_up(x: int, m: int) -> int:
    return (x + m - 1) // m * m


def _pick_time_block(T: int, cap: int = 32) -> int:
    """Time steps per grid iteration.

    Prefer the largest divisor of T that is <= cap (no padded steps); if T is
    awkward (prime/odd) fall back to `cap` and mask the padded steps in-kernel.
    """
    best = 1
    for tt in range(1, min(T, cap) + 1):
        if T % tt == 0:
            best = tt
    if best == T or best >= max(1, cap // 2):
        return best
    return min(T, cap)


# ----------------------------- Pallas kernel ---------------------------------


def _lstm_kernel(
    pre_ref,        # (TT, BB, 4Hp) bf16  streamed x@Wih0^T + b0 pre-activations
    hin_ref,        # (2, BB, Hp)   f32   initial h (both layers)
    cin_ref,        # (2, BB, Hp)   f32   initial c (both layers)
    whh0_hbm,       # (Hp, 4Hp) bf16 HBM  layer-0 Whh^T (gate-blocked)
    wih1_hbm,       # (Hp, 4Hp) bf16 HBM  layer-1 Wih^T
    whh1_hbm,       # (Hp, 4Hp) bf16 HBM  layer-1 Whh^T
    b1_hbm,         # (1, 4Hp)  f32  HBM  layer-1 combined bias
    hout_ref,       # (2, BB, Hp)   f32   resident state / final h
    cout_ref,       # (2, BB, Hp)   f32   resident state / final c
    whh0_s, wih1_s, whh1_s, b1_s,   # single-buffered VMEM weight copies
    sems,                           # DMA semaphores (4,)
    *, T, TT, Hp, unroll, masked,
):
    t_blk = pl.program_id(1)
    BB = pre_ref.shape[1]

    @pl.when(t_blk == 0)
    def _init():
        # One-shot, single-buffered weight fetch + state init from h0/c0.
        cps = [
            pltpu.make_async_copy(whh0_hbm, whh0_s, sems.at[0]),
            pltpu.make_async_copy(wih1_hbm, wih1_s, sems.at[1]),
            pltpu.make_async_copy(whh1_hbm, whh1_s, sems.at[2]),
            pltpu.make_async_copy(b1_hbm, b1_s, sems.at[3]),
        ]
        for cp in cps:
            cp.start()
        for cp in cps:
            cp.wait()
        hout_ref[...] = hin_ref[...]
        cout_ref[...] = cin_ref[...]

    # Loop-invariant operands: loaded once per grid step, hoisted out of the
    # time loop (incl. the bias broadcast — JAX does not CSE broadcast_in_dim).
    whh0 = whh0_s[...]
    wih1 = wih1_s[...]
    whh1 = whh1_s[...]
    b1b = jnp.broadcast_to(b1_s[...], (BB, 4 * Hp))

    def gate_math(gates, c_prev):
        # torch gate order (i, f, g, o); Hp multiple of 128 -> lane-aligned slices.
        i = jax.nn.sigmoid(gates[:, 0 * Hp:1 * Hp])
        f = jax.nn.sigmoid(gates[:, 1 * Hp:2 * Hp])
        g = jnp.tanh(gates[:, 2 * Hp:3 * Hp])
        o = jax.nn.sigmoid(gates[:, 3 * Hp:4 * Hp])
        c_new = f * c_prev + i * g          # f32 elementwise state math
        h_new = o * jnp.tanh(c_new)
        return h_new, c_new

    def step(k, carry):
        h0, c0, h1, c1 = carry
        # Layer 0: input projection precomputed & streamed; only the recurrent dot.
        g0 = jnp.dot(h0.astype(jnp.bfloat16), whh0,
                     preferred_element_type=jnp.float32) + pre_ref[k]
        h0n, c0n = gate_math(g0, c0)
        # Layer 1: two accumulating dots (no concat slab).
        g1 = (jnp.dot(h0n.astype(jnp.bfloat16), wih1,
                      preferred_element_type=jnp.float32)
              + jnp.dot(h1.astype(jnp.bfloat16), whh1,
                        preferred_element_type=jnp.float32)
              + b1b)
        h1n, c1n = gate_math(g1, c1)
        if masked:  # only traced when T was padded up; padded steps freeze state
            valid = (t_blk * TT + k) < T
            h0n = jnp.where(valid, h0n, h0)
            c0n = jnp.where(valid, c0n, c0)
            h1n = jnp.where(valid, h1n, h1)
            c1n = jnp.where(valid, c1n, c1)
        return h0n, c0n, h1n, c1n

    h0, c0, h1, c1 = lax.fori_loop(
        0, TT, step,
        (hout_ref[0], cout_ref[0], hout_ref[1], cout_ref[1]),
        unroll=unroll)

    # Unconditional, lane-dense writeback: output blocks stay resident in VMEM
    # across the (arbitrary) time axis; HBM writeback happens once at the end.
    hout_ref[0] = h0
    hout_ref[1] = h1
    cout_ref[0] = c0
    cout_ref[1] = c1


# ------------------------------ wrapper ---------------------------------------


@jax.jit
def stacked_lstm_forward(tokens, hidden, params):
    """tokens: (B, T) int32; hidden: (h, c) each (2, B, H) f32.

    Returns (logits (B, C), (h_n (2, B, H), c_n (2, B, H))) matching the
    PyTorch module's forward (batch_first LSTM, FC on the last time step).
    """
    h_in, c_in = hidden
    B, T = tokens.shape
    H = params["whh0"].shape[1]

    # Hardware-friendly padded sizes: sublanes multiple of 8, lanes multiple of 128.
    Bp = _round_up(max(B, 8), 8)
    Hp = _round_up(H, 128)
    TT = _pick_time_block(T)
    Tp = _round_up(T, TT)
    masked = Tp != T
    NB = 2 if Bp >= 16 else 1          # batch blocks: feeds both v7x TensorCores
    BB = Bp // NB

    # ---- XLA-side glue -------------------------------------------------------
    # Embedding gather + whole-sequence layer-0 input projection (one big,
    # MXU-friendly matmul), gate-block padded and streamed in bf16.
    x_emb = params["embedding"][tokens].astype(jnp.float32)            # (B, T, E)
    b0 = params["bih0"] + params["bhh0"]                                # (4H,)
    pre = jnp.einsum("bte,ge->btg", x_emb, params["wih0"]) + b0         # (B, T, 4H)
    pre = pre.reshape(B, T, 4, H)
    pre = jnp.pad(pre, ((0, 0), (0, 0), (0, 0), (0, Hp - H)))
    pre = pre.reshape(B, T, 4 * Hp).transpose(1, 0, 2)                  # (T, B, 4Hp)
    pre = jnp.pad(pre, ((0, Tp - T), (0, Bp - B), (0, 0)))
    pre = pre.astype(jnp.bfloat16)                                      # (Tp, Bp, 4Hp)

    def pack_rec_w(w):
        # torch (4H, H) gate order (i,f,g,o) -> gate-block-padded (Hp, 4Hp) bf16.
        w4 = w.reshape(4, H, H)
        w4 = jnp.pad(w4, ((0, 0), (0, Hp - H), (0, Hp - H)))
        return w4.reshape(4 * Hp, Hp).T.astype(jnp.bfloat16)

    def pack_bias(b):
        b4 = jnp.pad(b.reshape(4, H), ((0, 0), (0, Hp - H)))
        return b4.reshape(1, 4 * Hp).astype(jnp.float32)

    whh0 = pack_rec_w(params["whh0"])
    wih1 = pack_rec_w(params["wih1"])
    whh1 = pack_rec_w(params["whh1"])
    b1 = pack_bias(params["bih1"] + params["bhh1"])

    h_in_p = jnp.pad(h_in.astype(jnp.float32), ((0, 0), (0, Bp - B), (0, Hp - H)))
    c_in_p = jnp.pad(c_in.astype(jnp.float32), ((0, 0), (0, Bp - B), (0, Hp - H)))

    kernel = functools.partial(_lstm_kernel, T=T, TT=TT, Hp=Hp,
                               unroll=min(TT, 8), masked=masked)

    def state_spec():
        return pl.BlockSpec((2, BB, Hp), lambda b, t: (0, b, 0))

    grid_spec = pltpu.PrefetchScalarGridSpec(
        num_scalar_prefetch=0,
        grid=(NB, Tp // TT),
        in_specs=[
            pl.BlockSpec((TT, BB, 4 * Hp), lambda b, t: (t, b, 0)),   # streamed pre-acts
            state_spec(),                                             # h_in
            state_spec(),                                             # c_in
            pl.BlockSpec(memory_space=pl.ANY),                        # whh0 (HBM)
            pl.BlockSpec(memory_space=pl.ANY),                        # wih1 (HBM)
            pl.BlockSpec(memory_space=pl.ANY),                        # whh1 (HBM)
            pl.BlockSpec(memory_space=pl.ANY),                        # b1   (HBM)
        ],
        out_specs=[state_spec(), state_spec()],
        scratch_shapes=[
            pltpu.VMEM((Hp, 4 * Hp), jnp.bfloat16),   # whh0 (single-buffered)
            pltpu.VMEM((Hp, 4 * Hp), jnp.bfloat16),   # wih1
            pltpu.VMEM((Hp, 4 * Hp), jnp.bfloat16),   # whh1
            pltpu.VMEM((1, 4 * Hp), jnp.float32),     # b1
            pltpu.SemaphoreType.DMA((4,)),
        ],
    )

    # Explicit VMEM budget (v7x only has 64 MiB physical): streamed block is
    # double-buffered, recurrent weights are single-buffered scratch.
    est = (2 * TT * BB * 4 * Hp * 2            # pre stream, bf16, x2 buffers
           + 4 * 2 * 2 * BB * Hp * 4           # h_in/c_in/h_out/c_out blocks
           + 3 * Hp * 4 * Hp * 2               # recurrent weights, bf16, x1
           + 4 * Hp * 4)                       # bias
    vmem_limit = int(min(112 << 20, max(32 << 20, 2 * est + (8 << 20))))

    h_n_p, c_n_p = pl.pallas_call(
        kernel,
        out_shape=(
            jax.ShapeDtypeStruct((2, Bp, Hp), jnp.float32),
            jax.ShapeDtypeStruct((2, Bp, Hp), jnp.float32),
        ),
        grid_spec=grid_spec,
        compiler_params=pltpu.CompilerParams(
            dimension_semantics=("parallel", "arbitrary"),  # batch || , time serial
            vmem_limit_bytes=vmem_limit,
        ),
    )(pre, h_in_p, c_in_p, whh0, wih1, whh1, b1)

    h_n = h_n_p[:, :B, :H]
    c_n = c_n_p[:, :B, :H]

    # Final FC on the last-step hidden state: plain XLA, keeps the vocab-sized
    # weight out of the recurrent kernel's VMEM budget.
    logits = h_n[1] @ params["wfc"].T + params["bfc"]
    return logits, (h_n, c_n)


# -------------------------- pure-JAX reference --------------------------------


def stacked_lstm_reference(tokens, hidden, params):
    h_in, c_in = hidden
    H = params["whh0"].shape[1]
    x_emb = params["embedding"][tokens]  # (B, T, E)
    B, T, _ = x_emb.shape

    def cell(x_t, h_prev, c_prev, wih, whh, bih, bhh):
        gates = x_t @ wih.T + bih + h_prev @ whh.T + bhh
        i = jax.nn.sigmoid(gates[:, 0 * H:1 * H])
        f = jax.nn.sigmoid(gates[:, 1 * H:2 * H])
        g = jnp.tanh(gates[:, 2 * H:3 * H])
        o = jax.nn.sigmoid(gates[:, 3 * H:4 * H])
        c_new = f * c_prev + i * g
        h_new = o * jnp.tanh(c_new)
        return h_new, c_new

    h0, c0 = h_in[0], c_in[0]
    h1, c1 = h_in[1], c_in[1]
    for t in range(T):
        x_t = x_emb[:, t, :]
        h0, c0 = cell(x_t, h0, c0, params["wih0"], params["whh0"],
                      params["bih0"], params["bhh0"])
        h1, c1 = cell(h0, h1, c1, params["wih1"], params["whh1"],
                      params["bih1"], params["bhh1"])
    logits = h1 @ params["wfc"].T + params["bfc"]
    h_n = jnp.stack([h0, h1])
    c_n = jnp.stack([c0, c1])
    return logits, (h_n, c_n)


# --------------------------------- main ---------------------------------------


if __name__ == "__main__":
    # Small shapes consistent with the module (seq_len, num_classes, n_hidden,
    # emb_dim, n_layers=2), scaled down.
    B = 4            # batch
    T = 8            # seq_len
    C = 16           # num_classes
    E = 8            # emb_dim
    H = 32           # n_hidden

    key = jax.random.PRNGKey(0)
    keys = jax.random.split(key, 12)

    def init(k, shape, scale=0.1):
        return (scale * jax.random.normal(k, shape)).astype(jnp.float32)

    params = {
        "embedding": init(keys[0], (C, E), 1.0),
        # layer 0
        "wih0": init(keys[1], (4 * H, E)),
        "whh0": init(keys[2], (4 * H, H)),
        "bih0": init(keys[3], (4 * H,)),
        "bhh0": init(keys[4], (4 * H,)),
        # layer 1
        "wih1": init(keys[5], (4 * H, H)),
        "whh1": init(keys[6], (4 * H, H)),
        "bih1": init(keys[7], (4 * H,)),
        "bhh1": init(keys[8], (4 * H,)),
        # fc
        "wfc": init(keys[9], (C, H)),
        "bfc": init(keys[10], (C,)),
    }

    tokens = jax.random.randint(keys[11], (B, T), 0, C, dtype=jnp.int32)
    # zero_state(batch_size)
    hidden0 = (jnp.zeros((2, B, H), jnp.float32), jnp.zeros((2, B, H), jnp.float32))

    logits, (h_n, c_n) = stacked_lstm_forward(tokens, hidden0, params)
    jax.block_until_ready((logits, h_n, c_n))

    ref_logits, (ref_h, ref_c) = stacked_lstm_reference(tokens, hidden0, params)

    assert logits.shape == (B, C)
    assert h_n.shape == (2, B, H) and c_n.shape == (2, B, H)
    # bf16 MXU operands / bf16-streamed pre-activations (f32 accumulation)
    # -> slightly looser tolerance than pure f32.
    assert jnp.allclose(logits, ref_logits, atol=5e-2, rtol=5e-2)
    assert jnp.allclose(h_n, ref_h, atol=5e-2, rtol=5e-2)
    assert jnp.allclose(c_n, ref_c, atol=5e-2, rtol=5e-2)

    print("KERNEL_OK")
</pallas_src>

<mosaic_0001>
module attributes {stable_mosaic.version = 11 : i64} {
  func.func @_lstm_kernel(%arg0: i32, %arg1: i32, %arg2: memref<8x8x512xbf16, #tpu.memory_space<vmem>>, %arg3: memref<2x8x128xf32, #tpu.memory_space<vmem>>, %arg4: memref<2x8x128xf32, #tpu.memory_space<vmem>>, %arg5: memref<128x512xbf16, #tpu.memory_space<any>>, %arg6: memref<128x512xbf16, #tpu.memory_space<any>>, %arg7: memref<128x512xbf16, #tpu.memory_space<any>>, %arg8: memref<1x512xf32, #tpu.memory_space<any>>, %arg9: memref<2x8x128xf32, #tpu.memory_space<vmem>>, %arg10: memref<2x8x128xf32, #tpu.memory_space<vmem>>, %arg11: memref<128x512xbf16, #tpu.memory_space<vmem>>, %arg12: memref<128x512xbf16, #tpu.memory_space<vmem>>, %arg13: memref<128x512xbf16, #tpu.memory_space<vmem>>, %arg14: memref<1x512xf32, #tpu.memory_space<vmem>>, %arg15: memref<4x!tpu.dma_semaphore, #tpu.memory_space<semaphore_mem>>) attributes {dimension_semantics = [#tpu.dimension_semantics<parallel>, #tpu.dimension_semantics<arbitrary>], iteration_bounds = array<i64: 1, 1>, scalar_prefetch = 0 : i64, scratch_operands = 5 : i64, tpu.core_type = #tpu.core_type<tc>, window_params = [{transform_indices = @transform_0, window_bounds = array<i64: 8, 8, 512>}, {transform_indices = @transform_1, window_bounds = array<i64: 2, 8, 128>}, {transform_indices = @transform_2, window_bounds = array<i64: 2, 8, 128>}, {}, {}, {}, {}, {transform_indices = @transform_7, window_bounds = array<i64: 2, 8, 128>}, {transform_indices = @transform_8, window_bounds = array<i64: 2, 8, 128>}]} {
    %c0_i32 = arith.constant 0 : i32
    %0 = arith.cmpi eq, %arg1, %c0_i32 : i32
    %1 = arith.extui %0 : i1 to i32
    %c0_i32_0 = arith.constant 0 : i32
    %2 = arith.cmpi ne, %1, %c0_i32_0 : i32
    scf.if %2 {
      %c0_i32_119 = arith.constant 0 : i32
      %533 = tpu.memref_slice %arg15[%c0_i32_119] : memref<4x!tpu.dma_semaphore, #tpu.memory_space<semaphore_mem>> -> memref<1x!tpu.dma_semaphore, #tpu.memory_space<semaphore_mem>>
      %534 = tpu.memref_squeeze %533 : memref<1x!tpu.dma_semaphore, #tpu.memory_space<semaphore_mem>> -> memref<!tpu.dma_semaphore, #tpu.memory_space<semaphore_mem>>
      tpu.enqueue_dma source(%arg5 : memref<128x512xbf16, #tpu.memory_space<any>>) target(%arg11 : memref<128x512xbf16, #tpu.memory_space<vmem>>) target_semaphore(%534 : memref<!tpu.dma_semaphore, #tpu.memory_space<semaphore_mem>>)
      %c1_i32_120 = arith.constant 1 : i32
      %535 = tpu.memref_slice %arg15[%c1_i32_120] : memref<4x!tpu.dma_semaphore, #tpu.memory_space<semaphore_mem>> -> memref<1x!tpu.dma_semaphore, #tpu.memory_space<semaphore_mem>>
      %536 = tpu.memref_squeeze %535 : memref<1x!tpu.dma_semaphore, #tpu.memory_space<semaphore_mem>> -> memref<!tpu.dma_semaphore, #tpu.memory_space<semaphore_mem>>
      tpu.enqueue_dma source(%arg6 : memref<128x512xbf16, #tpu.memory_space<any>>) target(%arg12 : memref<128x512xbf16, #tpu.memory_space<vmem>>) target_semaphore(%536 : memref<!tpu.dma_semaphore, #tpu.memory_space<semaphore_mem>>)
      %c2_i32_121 = arith.constant 2 : i32
      %537 = tpu.memref_slice %arg15[%c2_i32_121] : memref<4x!tpu.dma_semaphore, #tpu.memory_space<semaphore_mem>> -> memref<1x!tpu.dma_semaphore, #tpu.memory_space<semaphore_mem>>
      %538 = tpu.memref_squeeze %537 : memref<1x!tpu.dma_semaphore, #tpu.memory_space<semaphore_mem>> -> memref<!tpu.dma_semaphore, #tpu.memory_space<semaphore_mem>>
      tpu.enqueue_dma source(%arg7 : memref<128x512xbf16, #tpu.memory_space<any>>) target(%arg13 : memref<128x512xbf16, #tpu.memory_space<vmem>>) target_semaphore(%538 : memref<!tpu.dma_semaphore, #tpu.memory_space<semaphore_mem>>)
      %c3_i32_122 = arith.constant 3 : i32
      %539 = tpu.memref_slice %arg15[%c3_i32_122] : memref<4x!tpu.dma_semaphore, #tpu.memory_space<semaphore_mem>> -> memref<1x!tpu.dma_semaphore, #tpu.memory_space<semaphore_mem>>
      %540 = tpu.memref_squeeze %539 : memref<1x!tpu.dma_semaphore, #tpu.memory_space<semaphore_mem>> -> memref<!tpu.dma_semaphore, #tpu.memory_space<semaphore_mem>>
      tpu.enqueue_dma source(%arg8 : memref<1x512xf32, #tpu.memory_space<any>>) target(%arg14 : memref<1x512xf32, #tpu.memory_space<vmem>>) target_semaphore(%540 : memref<!tpu.dma_semaphore, #tpu.memory_space<semaphore_mem>>)
      %c0_i32_123 = arith.constant 0 : i32
      %541 = tpu.memref_slice %arg15[%c0_i32_123] : memref<4x!tpu.dma_semaphore, #tpu.memory_space<semaphore_mem>> -> memref<1x!tpu.dma_semaphore, #tpu.memory_space<semaphore_mem>>
      %542 = tpu.memref_squeeze %541 : memref<1x!tpu.dma_semaphore, #tpu.memory_space<semaphore_mem>> -> memref<!tpu.dma_semaphore, #tpu.memory_space<semaphore_mem>>
      tpu.wait_dma2 semaphore(%542 : memref<!tpu.dma_semaphore, #tpu.memory_space<semaphore_mem>>) src(%arg5 : memref<128x512xbf16, #tpu.memory_space<any>>) dst(%arg11 : memref<128x512xbf16, #tpu.memory_space<vmem>>)
      %c1_i32_124 = arith.constant 1 : i32
      %543 = tpu.memref_slice %arg15[%c1_i32_124] : memref<4x!tpu.dma_semaphore, #tpu.memory_space<semaphore_mem>> -> memref<1x!tpu.dma_semaphore, #tpu.memory_space<semaphore_mem>>
      %544 = tpu.memref_squeeze %543 : memref<1x!tpu.dma_semaphore, #tpu.memory_space<semaphore_mem>> -> memref<!tpu.dma_semaphore, #tpu.memory_space<semaphore_mem>>
      tpu.wait_dma2 semaphore(%544 : memref<!tpu.dma_semaphore, #tpu.memory_space<semaphore_mem>>) src(%arg6 : memref<128x512xbf16, #tpu.memory_space<any>>) dst(%arg12 : memref<128x512xbf16, #tpu.memory_space<vmem>>)
      %c2_i32_125 = arith.constant 2 : i32
      %545 = tpu.memref_slice %arg15[%c2_i32_125] : memref<4x!tpu.dma_semaphore, #tpu.memory_space<semaphore_mem>> -> memref<1x!tpu.dma_semaphore, #tpu.memory_space<semaphore_mem>>
      %546 = tpu.memref_squeeze %545 : memref<1x!tpu.dma_semaphore, #tpu.memory_space<semaphore_mem>> -> memref<!tpu.dma_semaphore, #tpu.memory_space<semaphore_mem>>
      tpu.wait_dma2 semaphore(%546 : memref<!tpu.dma_semaphore, #tpu.memory_space<semaphore_mem>>) src(%arg7 : memref<128x512xbf16, #tpu.memory_space<any>>) dst(%arg13 : memref<128x512xbf16, #tpu.memory_space<vmem>>)
      %c3_i32_126 = arith.constant 3 : i32
      %547 = tpu.memref_slice %arg15[%c3_i32_126] : memref<4x!tpu.dma_semaphore, #tpu.memory_space<semaphore_mem>> -> memref<1x!tpu.dma_semaphore, #tpu.memory_space<semaphore_mem>>
      %548 = tpu.memref_squeeze %547 : memref<1x!tpu.dma_semaphore, #tpu.memory_space<semaphore_mem>> -> memref<!tpu.dma_semaphore, #tpu.memory_space<semaphore_mem>>
      tpu.wait_dma2 semaphore(%548 : memref<!tpu.dma_semaphore, #tpu.memory_space<semaphore_mem>>) src(%arg8 : memref<1x512xf32, #tpu.memory_space<any>>) dst(%arg14 : memref<1x512xf32, #tpu.memory_space<vmem>>)
      %c0_127 = arith.constant 0 : index
      %c0_128 = arith.constant 0 : index
      %c0_129 = arith.constant 0 : index
      %549 = vector.load %arg3[%c0_127, %c0_128, %c0_129] : memref<2x8x128xf32, #tpu.memory_space<vmem>>, vector<2x8x128xf32>
      %c0_130 = arith.constant 0 : index
      %c0_131 = arith.constant 0 : index
      %c0_132 = arith.constant 0 : index
      %550 = vector.load %arg9[%c0_130, %c0_131, %c0_132] : memref<2x8x128xf32, #tpu.memory_space<vmem>>, vector<2x8x128xf32>
      tpu.vector_store %arg9[%c0_130, %c0_131, %c0_132], %549 {strides = array<i32>} : memref<2x8x128xf32, #tpu.memory_space<vmem>>, vector<2x8x128xf32>,
      %c0_133 = arith.constant 0 : index
      %c0_134 = arith.constant 0 : index
      %c0_135 = arith.constant 0 : index
      %551 = vector.load %arg4[%c0_133, %c0_134, %c0_135] : memref<2x8x128xf32, #tpu.memory_space<vmem>>, vector<2x8x128xf32>
      %c0_136 = arith.constant 0 : index
      %c0_137 = arith.constant 0 : index
      %c0_138 = arith.constant 0 : index
      %552 = vector.load %arg10[%c0_136, %c0_137, %c0_138] : memref<2x8x128xf32, #tpu.memory_space<vmem>>, vector<2x8x128xf32>
      tpu.vector_store %arg10[%c0_136, %c0_137, %c0_138], %551 {strides = array<i32>} : memref<2x8x128xf32, #tpu.memory_space<vmem>>, vector<2x8x128xf32>,
    } else {
    }
    %c0 = arith.constant 0 : index
    %c0_1 = arith.constant 0 : index
    %3 = vector.load %arg11[%c0, %c0_1] : memref<128x512xbf16, #tpu.memory_space<vmem>>, vector<128x512xbf16>
    %c0_2 = arith.constant 0 : index
    %c0_3 = arith.constant 0 : index
    %4 = vector.load %arg12[%c0_2, %c0_3] : memref<128x512xbf16, #tpu.memory_space<vmem>>, vector<128x512xbf16>
    %c0_4 = arith.constant 0 : index
    %c0_5 = arith.constant 0 : index
    %5 = vector.load %arg13[%c0_4, %c0_5] : memref<128x512xbf16, #tpu.memory_space<vmem>>, vector<128x512xbf16>
    %c0_6 = arith.constant 0 : index
    %c0_7 = arith.constant 0 : index
    %6 = vector.load %arg14[%c0_6, %c0_7] : memref<1x512xf32, #tpu.memory_space<vmem>>, vector<1x512xf32>
    %7 = vector.shape_cast %6 : vector<1x512xf32> to vector<1x512xf32>
    %8 = vector.broadcast %7 : vector<1x512xf32> to vector<8x512xf32>
    %c0_8 = arith.constant 0 : index
    %c0_9 = arith.constant 0 : index
    %c0_10 = arith.constant 0 : index
    %9 = vector.load %arg9[%c0_8, %c0_9, %c0_10] : memref<2x8x128xf32, #tpu.memory_space<vmem>>, vector<1x8x128xf32>
    %10 = vector.shape_cast %9 : vector<1x8x128xf32> to vector<8x128xf32>
    %c0_11 = arith.constant 0 : index
    %c0_12 = arith.constant 0 : index
    %c0_13 = arith.constant 0 : index
    %11 = vector.load %arg10[%c0_11, %c0_12, %c0_13] : memref<2x8x128xf32, #tpu.memory_space<vmem>>, vector<1x8x128xf32>
    %12 = vector.shape_cast %11 : vector<1x8x128xf32> to vector<8x128xf32>
    %c1 = arith.constant 1 : index
    %c0_14 = arith.constant 0 : index
    %c0_15 = arith.constant 0 : index
    %13 = vector.load %arg9[%c1, %c0_14, %c0_15] : memref<2x8x128xf32, #tpu.memory_space<vmem>>, vector<1x8x128xf32>
    %14 = vector.shape_cast %13 : vector<1x8x128xf32> to vector<8x128xf32>
    %c1_16 = arith.constant 1 : index
    %c0_17 = arith.constant 0 : index
    %c0_18 = arith.constant 0 : index
    %15 = vector.load %arg10[%c1_16, %c0_17, %c0_18] : memref<2x8x128xf32, #tpu.memory_space<vmem>>, vector<1x8x128xf32>
    %16 = vector.shape_cast %15 : vector<1x8x128xf32> to vector<8x128xf32>
    %c0_i32_19 = arith.constant 0 : i32
    %17 = arith.truncf %10 : vector<8x128xf32> to vector<8x128xbf16>
    %cst = arith.constant dense<0.000000e+00> : vector<8x512xf32>
    %18 = tpu.matmul %17, %3, %cst {dimension_numbers = #tpu.dot_dimension_numbers<[1], [0], [0], [1], [0, 0, 1, 1], [], []>} : vector<8x128xbf16>, vector<128x512xbf16>, vector<8x512xf32> -> vector<8x512xf32>
    %19 = arith.index_cast %c0_i32_19 : i32 to index
    %c0_20 = arith.constant 0 : index
    %c0_21 = arith.constant 0 : index
    %20 = vector.load %arg2[%19, %c0_20, %c0_21] : memref<8x8x512xbf16, #tpu.memory_space<vmem>>, vector<1x8x512xbf16>
    %21 = vector.shape_cast %20 : vector<1x8x512xbf16> to vector<8x512xbf16>
    %22 = arith.extf %21 : vector<8x512xbf16> to vector<8x512xf32>
    %23 = arith.addf %18, %22 : vector<8x512xf32>
    %24 = vector.extract_strided_slice %23 {offsets = [0, 0], sizes = [8, 128], strides = [1, 1]} : vector<8x512xf32> to vector<8x128xf32>
    %25 = arith.negf %24 : vector<8x128xf32>
    %26 = math.exp %25 : vector<8x128xf32>
    %cst_22 = arith.constant 1.000000e+00 : f32
    %27 = vector.broadcast %cst_22 : f32 to vector<8x128xf32>
    %28 = arith.addf %27, %26 : vector<8x128xf32>
    %29 = arith.divf %27, %28 : vector<8x128xf32>
    %30 = vector.extract_strided_slice %23 {offsets = [0, 128], sizes = [8, 128], strides = [1, 1]} : vector<8x512xf32> to vector<8x128xf32>
    %31 = arith.negf %30 : vector<8x128xf32>
    %32 = math.exp %31 : vector<8x128xf32>
    %cst_23 = arith.constant 1.000000e+00 : f32
    %33 = vector.broadcast %cst_23 : f32 to vector<8x128xf32>
    %34 = arith.addf %33, %32 : vector<8x128xf32>
    %35 = arith.divf %33, %34 : vector<8x128xf32>
    %36 = vector.extract_strided_slice %23 {offsets = [0, 256], sizes = [8, 128], strides = [1, 1]} : vector<8x512xf32> to vector<8x128xf32>
    %37 = math.tanh %36 : vector<8x128xf32>
    %38 = vector.extract_strided_slice %23 {offsets = [0, 384], sizes = [8, 128], strides = [1, 1]} : vector<8x512xf32> to vector<8x128xf32>
    %39 = arith.negf %38 : vector<8x128xf32>
    %40 = math.exp %39 : vector<8x128xf32>
    %cst_24 = arith.constant 1.000000e+00 : f32
    %41 = vector.broadcast %cst_24 : f32 to vector<8x128xf32>
    %42 = arith.addf %41, %40 : vector<8x128xf32>
    %43 = arith.divf %41, %42 : vector<8x128xf32>
    %44 = arith.mulf %35, %12 : vector<8x128xf32>
    %45 = arith.mulf %29, %37 : vector<8x128xf32>
    %46 = arith.addf %44, %45 : vector<8x128xf32>
    %47 = math.tanh %46 : vector<8x128xf32>
    %48 = arith.mulf %43, %47 : vector<8x128xf32>
    %49 = arith.truncf %48 : vector<8x128xf32> to vector<8x128xbf16>
    %cst_25 = arith.constant dense<0.000000e+00> : vector<8x512xf32>
    %50 = tpu.matmul %49, %4, %cst_25 {dimension_numbers = #tpu.dot_dimension_numbers<[1], [0], [0], [1], [0, 0, 1, 1], [], []>} : vector<8x128xbf16>, vector<128x512xbf16>, vector<8x512xf32> -> vector<8x512xf32>
    %51 = arith.truncf %14 : vector<8x128xf32> to vector<8x128xbf16>
    %cst_26 = arith.constant dense<0.000000e+00> : vector<8x512xf32>
    %52 = tpu.matmul %51, %5, %cst_26 {dimension_numbers = #tpu.dot_dimension_numbers<[1], [0], [0], [1], [0, 0, 1, 1], [], []>} : vector<8x128xbf16>, vector<128x512xbf16>, vector<8x512xf32> -> vector<8x512xf32>
    %53 = arith.addf %50, %52 : vector<8x512xf32>
    %54 = arith.addf %53, %8 : vector<8x512xf32>
    %55 = vector.extract_strided_slice %54 {offsets = [0, 0], sizes = [8, 128], strides = [1, 1]} : vector<8x512xf32> to vector<8x128xf32>
    %56 = arith.negf %55 : vector<8x128xf32>
    %57 = math.exp %56 : vector<8x128xf32>
    %cst_27 = arith.constant 1.000000e+00 : f32
    %58 = vector.broadcast %cst_27 : f32 to vector<8x128xf32>
    %59 = arith.addf %58, %57 : vector<8x128xf32>
    %60 = arith.divf %58, %59 : vector<8x128xf32>
    %61 = vector.extract_strided_slice %54 {offsets = [0, 128], sizes = [8, 128], strides = [1, 1]} : vector<8x512xf32> to vector<8x128xf32>
    %62 = arith.negf %61 : vector<8x128xf32>
    %63 = math.exp %62 : vector<8x128xf32>
    %cst_28 = arith.constant 1.000000e+00 : f32
    %64 = vector.broadcast %cst_28 : f32 to vector<8x128xf32>
    %65 = arith.addf %64, %63 : vector<8x128xf32>
    %66 = arith.divf %64, %65 : vector<8x128xf32>
    %67 = vector.extract_strided_slice %54 {offsets = [0, 256], sizes = [8, 128], strides = [1, 1]} : vector<8x512xf32> to vector<8x128xf32>
    %68 = math.tanh %67 : vector<8x128xf32>
    %69 = vector.extract_strided_slice %54 {offsets = [0, 384], sizes = [8, 128], strides = [1, 1]} : vector<8x512xf32> to vector<8x128xf32>
    %70 = arith.negf %69 : vector<8x128xf32>
    %71 = math.exp %70 : vector<8x128xf32>
    %cst_29 = arith.constant 1.000000e+00 : f32
    %72 = vector.broadcast %cst_29 : f32 to vector<8x128xf32>
    %73 = arith.addf %72, %71 : vector<8x128xf32>
    %74 = arith.divf %72, %73 : vector<8x128xf32>
    %75 = arith.mulf %66, %16 : vector<8x128xf32>
    %76 = arith.mulf %60, %68 : vector<8x128xf32>
    %77 = arith.addf %75, %76 : vector<8x128xf32>
    %78 = math.tanh %77 : vector<8x128xf32>
    %79 = arith.mulf %74, %78 : vector<8x128xf32>
    %c1_i32 = arith.constant 1 : i32
    %80 = arith.truncf %48 : vector<8x128xf32> to vector<8x128xbf16>
    %cst_30 = arith.constant dense<0.000000e+00> : vector<8x512xf32>
    %81 = tpu.matmul %80, %3, %cst_30 {dimension_numbers = #tpu.dot_dimension_numbers<[1], [0], [0], [1], [0, 0, 1, 1], [], []>} : vector<8x128xbf16>, vector<128x512xbf16>, vector<8x512xf32> -> vector<8x512xf32>
    %82 = arith.index_cast %c1_i32 : i32 to index
    %c0_31 = arith.constant 0 : index
    %c0_32 = arith.constant 0 : index
    %83 = vector.load %arg2[%82, %c0_31, %c0_32] : memref<8x8x512xbf16, #tpu.memory_space<vmem>>, vector<1x8x512xbf16>
    %84 = vector.shape_cast %83 : vector<1x8x512xbf16> to vector<8x512xbf16>
    %85 = arith.extf %84 : vector<8x512xbf16> to vector<8x512xf32>
    %86 = arith.addf %81, %85 : vector<8x512xf32>
    %87 = vector.extract_strided_slice %86 {offsets = [0, 0], sizes = [8, 128], strides = [1, 1]} : vector<8x512xf32> to vector<8x128xf32>
    %88 = arith.negf %87 : vector<8x128xf32>
    %89 = math.exp %88 : vector<8x128xf32>
    %cst_33 = arith.constant 1.000000e+00 : f32
    %90 = vector.broadcast %cst_33 : f32 to vector<8x128xf32>
    %91 = arith.addf %90, %89 : vector<8x128xf32>
    %92 = arith.divf %90, %91 : vector<8x128xf32>
    %93 = vector.extract_strided_slice %86 {offsets = [0, 128], sizes = [8, 128], strides = [1, 1]} : vector<8x512xf32> to vector<8x128xf32>
    %94 = arith.negf %93 : vector<8x128xf32>
    %95 = math.exp %94 : vector<8x128xf32>
    %cst_34 = arith.constant 1.000000e+00 : f32
    %96 = vector.broadcast %cst_34 : f32 to vector<8x128xf32>
    %97 = arith.addf %96, %95 : vector<8x128xf32>
    %98 = arith.divf %96, %97 : vector<8x128xf32>
    %99 = vector.extract_strided_slice %86 {offsets = [0, 256], sizes = [8, 128], strides = [1, 1]} : vector<8x512xf32> to vector<8x128xf32>
    %100 = math.tanh %99 : vector<8x128xf32>
    %101 = vector.extract_strided_slice %86 {offsets = [0, 384], sizes = [8, 128], strides = [1, 1]} : vector<8x512xf32> to vector<8x128xf32>
    %102 = arith.negf %101 : vector<8x128xf32>
    %103 = math.exp %102 : vector<8x128xf32>
    %cst_35 = arith.constant 1.000000e+00 : f32
    %104 = vector.broadcast %cst_35 : f32 to vector<8x128xf32>
    %105 = arith.addf %104, %103 : vector<8x128xf32>
    %106 = arith.divf %104, %105 : vector<8x128xf32>
    %107 = arith.mulf %98, %46 : vector<8x128xf32>
    %108 = arith.mulf %92, %100 : vector<8x128xf32>
    %109 = arith.addf %107, %108 : vector<8x128xf32>
    %110 = math.tanh %109 : vector<8x128xf32>
    %111 = arith.mulf %106, %110 : vector<8x128xf32>
    %112 = arith.truncf %111 : vector<8x128xf32> to vector<8x128xbf16>
    %cst_36 = arith.constant dense<0.000000e+00> : vector<8x512xf32>
    %113 = tpu.matmul %112, %4, %cst_36 {dimension_numbers = #tpu.dot_dimension_numbers<[1], [0], [0], [1], [0, 0, 1, 1], [], []>} : vector<8x128xbf16>, vector<128x512xbf16>, vector<8x512xf32> -> vector<8x512xf32>
    %114 = arith.truncf %79 : vector<8x128xf32> to vector<8x128xbf16>
    %cst_37 = arith.constant dense<0.000000e+00> : vector<8x512xf32>
    %115 = tpu.matmul %114, %5, %cst_37 {dimension_numbers = #tpu.dot_dimension_numbers<[1], [0], [0], [1], [0, 0, 1, 1], [], []>} : vector<8x128xbf16>, vector<128x512xbf16>, vector<8x512xf32> -> vector<8x512xf32>
    %116 = arith.addf %113, %115 : vector<8x512xf32>
    %117 = arith.addf %116, %8 : vector<8x512xf32>
    %118 = vector.extract_strided_slice %117 {offsets = [0, 0], sizes = [8, 128], strides = [1, 1]} : vector<8x512xf32> to vector<8x128xf32>
    %119 = arith.negf %118 : vector<8x128xf32>
    %120 = math.exp %119 : vector<8x128xf32>
    %cst_38 = arith.constant 1.000000e+00 : f32
    %121 = vector.broadcast %cst_38 : f32 to vector<8x128xf32>
    %122 = arith.addf %121, %120 : vector<8x128xf32>
    %123 = arith.divf %121, %122 : vector<8x128xf32>
    %124 = vector.extract_strided_slice %117 {offsets = [0, 128], sizes = [8, 128], strides = [1, 1]} : vector<8x512xf32> to vector<8x128xf32>
    %125 = arith.negf %124 : vector<8x128xf32>
    %126 = math.exp %125 : vector<8x128xf32>
    %cst_39 = arith.constant 1.000000e+00 : f32
    %127 = vector.broadcast %cst_39 : f32 to vector<8x128xf32>
    %128 = arith.addf %127, %126 : vector<8x128xf32>
    %129 = arith.divf %127, %128 : vector<8x128xf32>
    %130 = vector.extract_strided_slice %117 {offsets = [0, 256], sizes = [8, 128], strides = [1, 1]} : vector<8x512xf32> to vector<8x128xf32>
    %131 = math.tanh %130 : vector<8x128xf32>
    %132 = vector.extract_strided_slice %117 {offsets = [0, 384], sizes = [8, 128], strides = [1, 1]} : vector<8x512xf32> to vector<8x128xf32>
    %133 = arith.negf %132 : vector<8x128xf32>
    %134 = math.exp %133 : vector<8x128xf32>
    %cst_40 = arith.constant 1.000000e+00 : f32
    %135 = vector.broadcast %cst_40 : f32 to vector<8x128xf32>
    %136 = arith.addf %135, %134 : vector<8x128xf32>
    %137 = arith.divf %135, %136 : vector<8x128xf32>
    %138 = arith.mulf %129, %77 : vector<8x128xf32>
    %139 = arith.mulf %123, %131 : vector<8x128xf32>
    %140 = arith.addf %138, %139 : vector<8x128xf32>
    %141 = math.tanh %140 : vector<8x128xf32>
    %142 = arith.mulf %137, %141 : vector<8x128xf32>
    %c2_i32 = arith.constant 2 : i32
    %143 = arith.truncf %111 : vector<8x128xf32> to vector<8x128xbf16>
    %cst_41 = arith.constant dense<0.000000e+00> : vector<8x512xf32>
    %144 = tpu.matmul %143, %3, %cst_41 {dimension_numbers = #tpu.dot_dimension_numbers<[1], [0], [0], [1], [0, 0, 1, 1], [], []>} : vector<8x128xbf16>, vector<128x512xbf16>, vector<8x512xf32> -> vector<8x512xf32>
    %145 = arith.index_cast %c2_i32 : i32 to index
    %c0_42 = arith.constant 0 : index
    %c0_43 = arith.constant 0 : index
    %146 = vector.load %arg2[%145, %c0_42, %c0_43] : memref<8x8x512xbf16, #tpu.memory_space<vmem>>, vector<1x8x512xbf16>
    %147 = vector.shape_cast %146 : vector<1x8x512xbf16> to vector<8x512xbf16>
    %148 = arith.extf %147 : vector<8x512xbf16> to vector<8x512xf32>
    %149 = arith.addf %144, %148 : vector<8x512xf32>
    %150 = vector.extract_strided_slice %149 {offsets = [0, 0], sizes = [8, 128], strides = [1, 1]} : vector<8x512xf32> to vector<8x128xf32>
    %151 = arith.negf %150 : vector<8x128xf32>
    %152 = math.exp %151 : vector<8x128xf32>
    %cst_44 = arith.constant 1.000000e+00 : f32
    %153 = vector.broadcast %cst_44 : f32 to vector<8x128xf32>
    %154 = arith.addf %153, %152 : vector<8x128xf32>
    %155 = arith.divf %153, %154 : vector<8x128xf32>
    %156 = vector.extract_strided_slice %149 {offsets = [0, 128], sizes = [8, 128], strides = [1, 1]} : vector<8x512xf32> to vector<8x128xf32>
    %157 = arith.negf %156 : vector<8x128xf32>
    %158 = math.exp %157 : vector<8x128xf32>
    %cst_45 = arith.constant 1.000000e+00 : f32
    %159 = vector.broadcast %cst_45 : f32 to vector<8x128xf32>
    %160 = arith.addf %159, %158 : vector<8x128xf32>
    %161 = arith.divf %159, %160 : vector<8x128xf32>
    %162 = vector.extract_strided_slice %149 {offsets = [0, 256], sizes = [8, 128], strides = [1, 1]} : vector<8x512xf32> to vector<8x128xf32>
    %163 = math.tanh %162 : vector<8x128xf32>
    %164 = vector.extract_strided_slice %149 {offsets = [0, 384], sizes = [8, 128], strides = [1, 1]} : vector<8x512xf32> to vector<8x128xf32>
    %165 = arith.negf %164 : vector<8x128xf32>
    %166 = math.exp %165 : vector<8x128xf32>
    %cst_46 = arith.constant 1.000000e+00 : f32
    %167 = vector.broadcast %cst_46 : f32 to vector<8x128xf32>
    %168 = arith.addf %167, %166 : vector<8x128xf32>
    %169 = arith.divf %167, %168 : vector<8x128xf32>
    %170 = arith.mulf %161, %109 : vector<8x128xf32>
    %171 = arith.mulf %155, %163 : vector<8x128xf32>
    %172 = arith.addf %170, %171 : vector<8x128xf32>
    %173 = math.tanh %172 : vector<8x128xf32>
    %174 = arith.mulf %169, %173 : vector<8x128xf32>
    %175 = arith.truncf %174 : vector<8x128xf32> to vector<8x128xbf16>
    %cst_47 = arith.constant dense<0.000000e+00> : vector<8x512xf32>
    %176 = tpu.matmul %175, %4, %cst_47 {dimension_numbers = #tpu.dot_dimension_numbers<[1], [0], [0], [1], [0, 0, 1, 1], [], []>} : vector<8x128xbf16>, vector<128x512xbf16>, vector<8x512xf32> -> vector<8x512xf32>
    %177 = arith.truncf %142 : vector<8x128xf32> to vector<8x128xbf16>
    %cst_48 = arith.constant dense<0.000000e+00> : vector<8x512xf32>
    %178 = tpu.matmul %177, %5, %cst_48 {dimension_numbers = #tpu.dot_dimension_numbers<[1], [0], [0], [1], [0, 0, 1, 1], [], []>} : vector<8x128xbf16>, vector<128x512xbf16>, vector<8x512xf32> -> vector<8x512xf32>
    %179 = arith.addf %176, %178 : vector<8x512xf32>
    %180 = arith.addf %179, %8 : vector<8x512xf32>
    %181 = vector.extract_strided_slice %180 {offsets = [0, 0], sizes = [8, 128], strides = [1, 1]} : vector<8x512xf32> to vector<8x128xf32>
    %182 = arith.negf %181 : vector<8x128xf32>
    %183 = math.exp %182 : vector<8x128xf32>
    %cst_49 = arith.constant 1.000000e+00 : f32
    %184 = vector.broadcast %cst_49 : f32 to vector<8x128xf32>
    %185 = arith.addf %184, %183 : vector<8x128xf32>
    %186 = arith.divf %184, %185 : vector<8x128xf32>
    %187 = vector.extract_strided_slice %180 {offsets = [0, 128], sizes = [8, 128], strides = [1, 1]} : vector<8x512xf32> to vector<8x128xf32>
    %188 = arith.negf %187 : vector<8x128xf32>
    %189 = math.exp %188 : vector<8x128xf32>
    %cst_50 = arith.constant 1.000000e+00 : f32
    %190 = vector.broadcast %cst_50 : f32 to vector<8x128xf32>
    %191 = arith.addf %190, %189 : vector<8x128xf32>
    %192 = arith.divf %190, %191 : vector<8x128xf32>
    %193 = vector.extract_strided_slice %180 {offsets = [0, 256], sizes = [8, 128], strides = [1, 1]} : vector<8x512xf32> to vector<8x128xf32>
    %194 = math.tanh %193 : vector<8x128xf32>
    %195 = vector.extract_strided_slice %180 {offsets = [0, 384], sizes = [8, 128], strides = [1, 1]} : vector<8x512xf32> to vector<8x128xf32>
    %196 = arith.negf %195 : vector<8x128xf32>
    %197 = math.exp %196 : vector<8x128xf32>
    %cst_51 = arith.constant 1.000000e+00 : f32
    %198 = vector.broadcast %cst_51 : f32 to vector<8x128xf32>
    %199 = arith.addf %198, %197 : vector<8x128xf32>
    %200 = arith.divf %198, %199 : vector<8x128xf32>
    %201 = arith.mulf %192, %140 : vector<8x128xf32>
    %202 = arith.mulf %186, %194 : vector<8x128xf32>
    %203 = arith.addf %201, %202 : vector<8x128xf32>
    %204 = math.tanh %203 : vector<8x128xf32>
    %205 = arith.mulf %200, %204 : vector<8x128xf32>
    %c3_i32 = arith.constant 3 : i32
    %206 = arith.truncf %174 : vector<8x128xf32> to vector<8x128xbf16>
    %cst_52 = arith.constant dense<0.000000e+00> : vector<8x512xf32>
    %207 = tpu.matmul %206, %3, %cst_52 {dimension_numbers = #tpu.dot_dimension_numbers<[1], [0], [0], [1], [0, 0, 1, 1], [], []>} : vector<8x128xbf16>, vector<128x512xbf16>, vector<8x512xf32> -> vector<8x512xf32>
    %208 = arith.index_cast %c3_i32 : i32 to index
    %c0_53 = arith.constant 0 : index
    %c0_54 = arith.constant 0 : index
    %209 = vector.load %arg2[%208, %c0_53, %c0_54] : memref<8x8x512xbf16, #tpu.memory_space<vmem>>, vector<1x8x512xbf16>
    %210 = vector.shape_cast %209 : vector<1x8x512xbf16> to vector<8x512xbf16>
    %211 = arith.extf %210 : vector<8x512xbf16> to vector<8x512xf32>
    %212 = arith.addf %207, %211 : vector<8x512xf32>
    %213 = vector.extract_strided_slice %212 {offsets = [0, 0], sizes = [8, 128], strides = [1, 1]} : vector<8x512xf32> to vector<8x128xf32>
    %214 = arith.negf %213 : vector<8x128xf32>
    %215 = math.exp %214 : vector<8x128xf32>
    %cst_55 = arith.constant 1.000000e+00 : f32
    %216 = vector.broadcast %cst_55 : f32 to vector<8x128xf32>
    %217 = arith.addf %216, %215 : vector<8x128xf32>
    %218 = arith.divf %216, %217 : vector<8x128xf32>
    %219 = vector.extract_strided_slice %212 {offsets = [0, 128], sizes = [8, 128], strides = [1, 1]} : vector<8x512xf32> to vector<8x128xf32>
    %220 = arith.negf %219 : vector<8x128xf32>
    %221 = math.exp %220 : vector<8x128xf32>
    %cst_56 = arith.constant 1.000000e+00 : f32
    %222 = vector.broadcast %cst_56 : f32 to vector<8x128xf32>
    %223 = arith.addf %222, %221 : vector<8x128xf32>
    %224 = arith.divf %222, %223 : vector<8x128xf32>
    %225 = vector.extract_strided_slice %212 {offsets = [0, 256], sizes = [8, 128], strides = [1, 1]} : vector<8x512xf32> to vector<8x128xf32>
    %226 = math.tanh %225 : vector<8x128xf32>
    %227 = vector.extract_strided_slice %212 {offsets = [0, 384], sizes = [8, 128], strides = [1, 1]} : vector<8x512xf32> to vector<8x128xf32>
    %228 = arith.negf %227 : vector<8x128xf32>
    %229 = math.exp %228 : vector<8x128xf32>
    %cst_57 = arith.constant 1.000000e+00 : f32
    %230 = vector.broadcast %cst_57 : f32 to vector<8x128xf32>
    %231 = arith.addf %230, %229 : vector<8x128xf32>
    %232 = arith.divf %230, %231 : vector<8x128xf32>
    %233 = arith.mulf %224, %172 : vector<8x128xf32>
    %234 = arith.mulf %218, %226 : vector<8x128xf32>
    %235 = arith.addf %233, %234 : vector<8x128xf32>
    %236 = math.tanh %235 : vector<8x128xf32>
    %237 = arith.mulf %232, %236 : vector<8x128xf32>
    %238 = arith.truncf %237 : vector<8x128xf32> to vector<8x128xbf16>
    %cst_58 = arith.constant dense<0.000000e+00> : vector<8x512xf32>
    %239 = tpu.matmul %238, %4, %cst_58 {dimension_numbers = #tpu.dot_dimension_numbers<[1], [0], [0], [1], [0, 0, 1, 1], [], []>} : vector<8x128xbf16>, vector<128x512xbf16>, vector<8x512xf32> -> vector<8x512xf32>
    %240 = arith.truncf %205 : vector<8x128xf32> to vector<8x128xbf16>
    %cst_59 = arith.constant dense<0.000000e+00> : vector<8x512xf32>
    %241 = tpu.matmul %240, %5, %cst_59 {dimension_numbers = #tpu.dot_dimension_numbers<[1], [0], [0], [1], [0, 0, 1, 1], [], []>} : vector<8x128xbf16>, vector<128x512xbf16>, vector<8x512xf32> -> vector<8x512xf32>
    %242 = arith.addf %239, %241 : vector<8x512xf32>
    %243 = arith.addf %242, %8 : vector<8x512xf32>
    %244 = vector.extract_strided_slice %243 {offsets = [0, 0], sizes = [8, 128], strides = [1, 1]} : vector<8x512xf32> to vector<8x128xf32>
    %245 = arith.negf %244 : vector<8x128xf32>
    %246 = math.exp %245 : vector<8x128xf32>
    %cst_60 = arith.constant 1.000000e+00 : f32
    %247 = vector.broadcast %cst_60 : f32 to vector<8x128xf32>
    %248 = arith.addf %247, %246 : vector<8x128xf32>
    %249 = arith.divf %247, %248 : vector<8x128xf32>
    %250 = vector.extract_strided_slice %243 {offsets = [0, 128], sizes = [8, 128], strides = [1, 1]} : vector<8x512xf32> to vector<8x128xf32>
    %251 = arith.negf %250 : vector<8x128xf32>
    %252 = math.exp %251 : vector<8x128xf32>
    %cst_61 = arith.constant 1.000000e+00 : f32
    %253 = vector.broadcast %cst_61 : f32 to vector<8x128xf32>
    %254 = arith.addf %253, %252 : vector<8x128xf32>
    %255 = arith.divf %253, %254 : vector<8x128xf32>
    %256 = vector.extract_strided_slice %243 {offsets = [0, 256], sizes = [8, 128], strides = [1, 1]} : vector<8x512xf32> to vector<8x128xf32>
    %257 = math.tanh %256 : vector<8x128xf32>
    %258 = vector.extract_strided_slice %243 {offsets = [0, 384], sizes = [8, 128], strides = [1, 1]} : vector<8x512xf32> to vector<8x128xf32>
    %259 = arith.negf %258 : vector<8x128xf32>
    %260 = math.exp %259 : vector<8x128xf32>
    %cst_62 = arith.constant 1.000000e+00 : f32
    %261 = vector.broadcast %cst_62 : f32 to vector<8x128xf32>
    %262 = arith.addf %261, %260 : vector<8x128xf32>
    %263 = arith.divf %261, %262 : vector<8x128xf32>
    %264 = arith.mulf %255, %203 : vector<8x128xf32>
    %265 = arith.mulf %249, %257 : vector<8x128xf32>
    %266 = arith.addf %264, %265 : vector<8x128xf32>
    %267 = math.tanh %266 : vector<8x128xf32>
    %268 = arith.mulf %263, %267 : vector<8x128xf32>
    %c4_i32 = arith.constant 4 : i32
    %269 = arith.truncf %237 : vector<8x128xf32> to vector<8x128xbf16>
    %cst_63 = arith.constant dense<0.000000e+00> : vector<8x512xf32>
    %270 = tpu.matmul %269, %3, %cst_63 {dimension_numbers = #tpu.dot_dimension_numbers<[1], [0], [0], [1], [0, 0, 1, 1], [], []>} : vector<8x128xbf16>, vector<128x512xbf16>, vector<8x512xf32> -> vector<8x512xf32>
    %271 = arith.index_cast %c4_i32 : i32 to index
    %c0_64 = arith.constant 0 : index
    %c0_65 = arith.constant 0 : index
    %272 = vector.load %arg2[%271, %c0_64, %c0_65] : memref<8x8x512xbf16, #tpu.memory_space<vmem>>, vector<1x8x512xbf16>
    %273 = vector.shape_cast %272 : vector<1x8x512xbf16> to vector<8x512xbf16>
    %274 = arith.extf %273 : vector<8x512xbf16> to vector<8x512xf32>
    %275 = arith.addf %270, %274 : vector<8x512xf32>
    %276 = vector.extract_strided_slice %275 {offsets = [0, 0], sizes = [8, 128], strides = [1, 1]} : vector<8x512xf32> to vector<8x128xf32>
    %277 = arith.negf %276 : vector<8x128xf32>
    %278 = math.exp %277 : vector<8x128xf32>
    %cst_66 = arith.constant 1.000000e+00 : f32
    %279 = vector.broadcast %cst_66 : f32 to vector<8x128xf32>
    %280 = arith.addf %279, %278 : vector<8x128xf32>
    %281 = arith.divf %279, %280 : vector<8x128xf32>
    %282 = vector.extract_strided_slice %275 {offsets = [0, 128], sizes = [8, 128], strides = [1, 1]} : vector<8x512xf32> to vector<8x128xf32>
    %283 = arith.negf %282 : vector<8x128xf32>
    %284 = math.exp %283 : vector<8x128xf32>
    %cst_67 = arith.constant 1.000000e+00 : f32
    %285 = vector.broadcast %cst_67 : f32 to vector<8x128xf32>
    %286 = arith.addf %285, %284 : vector<8x128xf32>
    %287 = arith.divf %285, %286 : vector<8x128xf32>
    %288 = vector.extract_strided_slice %275 {offsets = [0, 256], sizes = [8, 128], strides = [1, 1]} : vector<8x512xf32> to vector<8x128xf32>
    %289 = math.tanh %288 : vector<8x128xf32>
    %290 = vector.extract_strided_slice %275 {offsets = [0, 384], sizes = [8, 128], strides = [1, 1]} : vector<8x512xf32> to vector<8x128xf32>
    %291 = arith.negf %290 : vector<8x128xf32>
    %292 = math.exp %291 : vector<8x128xf32>
    %cst_68 = arith.constant 1.000000e+00 : f32
    %293 = vector.broadcast %cst_68 : f32 to vector<8x128xf32>
    %294 = arith.addf %293, %292 : vector<8x128xf32>
    %295 = arith.divf %293, %294 : vector<8x128xf32>
    %296 = arith.mulf %287, %235 : vector<8x128xf32>
    %297 = arith.mulf %281, %289 : vector<8x128xf32>
    %298 = arith.addf %296, %297 : vector<8x128xf32>
    %299 = math.tanh %298 : vector<8x128xf32>
    %300 = arith.mulf %295, %299 : vector<8x128xf32>
    %301 = arith.truncf %300 : vector<8x128xf32> to vector<8x128xbf16>
    %cst_69 = arith.constant dense<0.000000e+00> : vector<8x512xf32>
    %302 = tpu.matmul %301, %4, %cst_69 {dimension_numbers = #tpu.dot_dimension_numbers<[1], [0], [0], [1], [0, 0, 1, 1], [], []>} : vector<8x128xbf16>, vector<128x512xbf16>, vector<8x512xf32> -> vector<8x512xf32>
    %303 = arith.truncf %268 : vector<8x128xf32> to vector<8x128xbf16>
    %cst_70 = arith.constant dense<0.000000e+00> : vector<8x512xf32>
    %304 = tpu.matmul %303, %5, %cst_70 {dimension_numbers = #tpu.dot_dimension_numbers<[1], [0], [0], [1], [0, 0, 1, 1], [], []>} : vector<8x128xbf16>, vector<128x512xbf16>, vector<8x512xf32> -> vector<8x512xf32>
    %305 = arith.addf %302, %304 : vector<8x512xf32>
    %306 = arith.addf %305, %8 : vector<8x512xf32>
    %307 = vector.extract_strided_slice %306 {offsets = [0, 0], sizes = [8, 128], strides = [1, 1]} : vector<8x512xf32> to vector<8x128xf32>
    %308 = arith.negf %307 : vector<8x128xf32>
    %309 = math.exp %308 : vector<8x128xf32>
    %cst_71 = arith.constant 1.000000e+00 : f32
    %310 = vector.broadcast %cst_71 : f32 to vector<8x128xf32>
    %311 = arith.addf %310, %309 : vector<8x128xf32>
    %312 = arith.divf %310, %311 : vector<8x128xf32>
    %313 = vector.extract_strided_slice %306 {offsets = [0, 128], sizes = [8, 128], strides = [1, 1]} : vector<8x512xf32> to vector<8x128xf32>
    %314 = arith.negf %313 : vector<8x128xf32>
    %315 = math.exp %314 : vector<8x128xf32>
    %cst_72 = arith.constant 1.000000e+00 : f32
    %316 = vector.broadcast %cst_72 : f32 to vector<8x128xf32>
    %317 = arith.addf %316, %315 : vector<8x128xf32>
    %318 = arith.divf %316, %317 : vector<8x128xf32>
    %319 = vector.extract_strided_slice %306 {offsets = [0, 256], sizes = [8, 128], strides = [1, 1]} : vector<8x512xf32> to vector<8x128xf32>
    %320 = math.tanh %319 : vector<8x128xf32>
    %321 = vector.extract_strided_slice %306 {offsets = [0, 384], sizes = [8, 128], strides = [1, 1]} : vector<8x512xf32> to vector<8x128xf32>
    %322 = arith.negf %321 : vector<8x128xf32>
    %323 = math.exp %322 : vector<8x128xf32>
    %cst_73 = arith.constant 1.000000e+00 : f32
    %324 = vector.broadcast %cst_73 : f32 to vector<8x128xf32>
    %325 = arith.addf %324, %323 : vector<8x128xf32>
    %326 = arith.divf %324, %325 : vector<8x128xf32>
    %327 = arith.mulf %318, %266 : vector<8x128xf32>
    %328 = arith.mulf %312, %320 : vector<8x128xf32>
    %329 = arith.addf %327, %328 : vector<8x128xf32>
    %330 = math.tanh %329 : vector<8x128xf32>
    %331 = arith.mulf %326, %330 : vector<8x128xf32>
    %c5_i32 = arith.constant 5 : i32
    %332 = arith.truncf %300 : vector<8x128xf32> to vector<8x128xbf16>
    %cst_74 = arith.constant dense<0.000000e+00> : vector<8x512xf32>
    %333 = tpu.matmul %332, %3, %cst_74 {dimension_numbers = #tpu.dot_dimension_numbers<[1], [0], [0], [1], [0, 0, 1, 1], [], []>} : vector<8x128xbf16>, vector<128x512xbf16>, vector<8x512xf32> -> vector<8x512xf32>
    %334 = arith.index_cast %c5_i32 : i32 to index
    %c0_75 = arith.constant 0 : index
    %c0_76 = arith.constant 0 : index
    %335 = vector.load %arg2[%334, %c0_75, %c0_76] : memref<8x8x512xbf16, #tpu.memory_space<vmem>>, vector<1x8x512xbf16>
    %336 = vector.shape_cast %335 : vector<1x8x512xbf16> to vector<8x512xbf16>
    %337 = arith.extf %336 : vector<8x512xbf16> to vector<8x512xf32>
    %338 = arith.addf %333, %337 : vector<8x512xf32>
    %339 = vector.extract_strided_slice %338 {offsets = [0, 0], sizes = [8, 128], strides = [1, 1]} : vector<8x512xf32> to vector<8x128xf32>
    %340 = arith.negf %339 : vector<8x128xf32>
    %341 = math.exp %340 : vector<8x128xf32>
    %cst_77 = arith.constant 1.000000e+00 : f32
    %342 = vector.broadcast %cst_77 : f32 to vector<8x128xf32>
    %343 = arith.addf %342, %341 : vector<8x128xf32>
    %344 = arith.divf %342, %343 : vector<8x128xf32>
    %345 = vector.extract_strided_slice %338 {offsets = [0, 128], sizes = [8, 128], strides = [1, 1]} : vector<8x512xf32> to vector<8x128xf32>
    %346 = arith.negf %345 : vector<8x128xf32>
    %347 = math.exp %346 : vector<8x128xf32>
    %cst_78 = arith.constant 1.000000e+00 : f32
    %348 = vector.broadcast %cst_78 : f32 to vector<8x128xf32>
    %349 = arith.addf %348, %347 : vector<8x128xf32>
    %350 = arith.divf %348, %349 : vector<8x128xf32>
    %351 = vector.extract_strided_slice %338 {offsets = [0, 256], sizes = [8, 128], strides = [1, 1]} : vector<8x512xf32> to vector<8x128xf32>
    %352 = math.tanh %351 : vector<8x128xf32>
    %353 = vector.extract_strided_slice %338 {offsets = [0, 384], sizes = [8, 128], strides = [1, 1]} : vector<8x512xf32> to vector<8x128xf32>
    %354 = arith.negf %353 : vector<8x128xf32>
    %355 = math.exp %354 : vector<8x128xf32>
    %cst_79 = arith.constant 1.000000e+00 : f32
    %356 = vector.broadcast %cst_79 : f32 to vector<8x128xf32>
    %357 = arith.addf %356, %355 : vector<8x128xf32>
    %358 = arith.divf %356, %357 : vector<8x128xf32>
    %359 = arith.mulf %350, %298 : vector<8x128xf32>
    %360 = arith.mulf %344, %352 : vector<8x128xf32>
    %361 = arith.addf %359, %360 : vector<8x128xf32>
    %362 = math.tanh %361 : vector<8x128xf32>
    %363 = arith.mulf %358, %362 : vector<8x128xf32>
    %364 = arith.truncf %363 : vector<8x128xf32> to vector<8x128xbf16>
    %cst_80 = arith.constant dense<0.000000e+00> : vector<8x512xf32>
    %365 = tpu.matmul %364, %4, %cst_80 {dimension_numbers = #tpu.dot_dimension_numbers<[1], [0], [0], [1], [0, 0, 1, 1], [], []>} : vector<8x128xbf16>, vector<128x512xbf16>, vector<8x512xf32> -> vector<8x512xf32>
    %366 = arith.truncf %331 : vector<8x128xf32> to vector<8x128xbf16>
    %cst_81 = arith.constant dense<0.000000e+00> : vector<8x512xf32>
    %367 = tpu.matmul %366, %5, %cst_81 {dimension_numbers = #tpu.dot_dimension_numbers<[1], [0], [0], [1], [0, 0, 1, 1], [], []>} : vector<8x128xbf16>, vector<128x512xbf16>, vector<8x512xf32> -> vector<8x512xf32>
    %368 = arith.addf %365, %367 : vector<8x512xf32>
    %369 = arith.addf %368, %8 : vector<8x512xf32>
    %370 = vector.extract_strided_slice %369 {offsets = [0, 0], sizes = [8, 128], strides = [1, 1]} : vector<8x512xf32> to vector<8x128xf32>
    %371 = arith.negf %370 : vector<8x128xf32>
    %372 = math.exp %371 : vector<8x128xf32>
    %cst_82 = arith.constant 1.000000e+00 : f32
    %373 = vector.broadcast %cst_82 : f32 to vector<8x128xf32>
    %374 = arith.addf %373, %372 : vector<8x128xf32>
    %375 = arith.divf %373, %374 : vector<8x128xf32>
    %376 = vector.extract_strided_slice %369 {offsets = [0, 128], sizes = [8, 128], strides = [1, 1]} : vector<8x512xf32> to vector<8x128xf32>
    %377 = arith.negf %376 : vector<8x128xf32>
    %378 = math.exp %377 : vector<8x128xf32>
    %cst_83 = arith.constant 1.000000e+00 : f32
    %379 = vector.broadcast %cst_83 : f32 to vector<8x128xf32>
    %380 = arith.addf %379, %378 : vector<8x128xf32>
    %381 = arith.divf %379, %380 : vector<8x128xf32>
    %382 = vector.extract_strided_slice %369 {offsets = [0, 256], sizes = [8, 128], strides = [1, 1]} : vector<8x512xf32> to vector<8x128xf32>
    %383 = math.tanh %382 : vector<8x128xf32>
    %384 = vector.extract_strided_slice %369 {offsets = [0, 384], sizes = [8, 128], strides = [1, 1]} : vector<8x512xf32> to vector<8x128xf32>
    %385 = arith.negf %384 : vector<8x128xf32>
    %386 = math.exp %385 : vector<8x128xf32>
    %cst_84 = arith.constant 1.000000e+00 : f32
    %387 = vector.broadcast %cst_84 : f32 to vector<8x128xf32>
    %388 = arith.addf %387, %386 : vector<8x128xf32>
    %389 = arith.divf %387, %388 : vector<8x128xf32>
    %390 = arith.mulf %381, %329 : vector<8x128xf32>
    %391 = arith.mulf %375, %383 : vector<8x128xf32>
    %392 = arith.addf %390, %391 : vector<8x128xf32>
    %393 = math.tanh %392 : vector<8x128xf32>
    %394 = arith.mulf %389, %393 : vector<8x128xf32>
    %c6_i32 = arith.constant 6 : i32
    %395 = arith.truncf %363 : vector<8x128xf32> to vector<8x128xbf16>
    %cst_85 = arith.constant dense<0.000000e+00> : vector<8x512xf32>
    %396 = tpu.matmul %395, %3, %cst_85 {dimension_numbers = #tpu.dot_dimension_numbers<[1], [0], [0], [1], [0, 0, 1, 1], [], []>} : vector<8x128xbf16>, vector<128x512xbf16>, vector<8x512xf32> -> vector<8x512xf32>
    %397 = arith.index_cast %c6_i32 : i32 to index
    %c0_86 = arith.constant 0 : index
    %c0_87 = arith.constant 0 : index
    %398 = vector.load %arg2[%397, %c0_86, %c0_87] : memref<8x8x512xbf16, #tpu.memory_space<vmem>>, vector<1x8x512xbf16>
    %399 = vector.shape_cast %398 : vector<1x8x512xbf16> to vector<8x512xbf16>
    %400 = arith.extf %399 : vector<8x512xbf16> to vector<8x512xf32>
    %401 = arith.addf %396, %400 : vector<8x512xf32>
    %402 = vector.extract_strided_slice %401 {offsets = [0, 0], sizes = [8, 128], strides = [1, 1]} : vector<8x512xf32> to vector<8x128xf32>
    %403 = arith.negf %402 : vector<8x128xf32>
    %404 = math.exp %403 : vector<8x128xf32>
    %cst_88 = arith.constant 1.000000e+00 : f32
    %405 = vector.broadcast %cst_88 : f32 to vector<8x128xf32>
    %406 = arith.addf %405, %404 : vector<8x128xf32>
    %407 = arith.divf %405, %406 : vector<8x128xf32>
    %408 = vector.extract_strided_slice %401 {offsets = [0, 128], sizes = [8, 128], strides = [1, 1]} : vector<8x512xf32> to vector<8x128xf32>
    %409 = arith.negf %408 : vector<8x128xf32>
    %410 = math.exp %409 : vector<8x128xf32>
    %cst_89 = arith.constant 1.000000e+00 : f32
    %411 = vector.broadcast %cst_89 : f32 to vector<8x128xf32>
    %412 = arith.addf %411, %410 : vector<8x128xf32>
    %413 = arith.divf %411, %412 : vector<8x128xf32>
    %414 = vector.extract_strided_slice %401 {offsets = [0, 256], sizes = [8, 128], strides = [1, 1]} : vector<8x512xf32> to vector<8x128xf32>
    %415 = math.tanh %414 : vector<8x128xf32>
    %416 = vector.extract_strided_slice %401 {offsets = [0, 384], sizes = [8, 128], strides = [1, 1]} : vector<8x512xf32> to vector<8x128xf32>
    %417 = arith.negf %416 : vector<8x128xf32>
    %418 = math.exp %417 : vector<8x128xf32>
    %cst_90 = arith.constant 1.000000e+00 : f32
    %419 = vector.broadcast %cst_90 : f32 to vector<8x128xf32>
    %420 = arith.addf %419, %418 : vector<8x128xf32>
    %421 = arith.divf %419, %420 : vector<8x128xf32>
    %422 = arith.mulf %413, %361 : vector<8x128xf32>
    %423 = arith.mulf %407, %415 : vector<8x128xf32>
    %424 = arith.addf %422, %423 : vector<8x128xf32>
    %425 = math.tanh %424 : vector<8x128xf32>
    %426 = arith.mulf %421, %425 : vector<8x128xf32>
    %427 = arith.truncf %426 : vector<8x128xf32> to vector<8x128xbf16>
    %cst_91 = arith.constant dense<0.000000e+00> : vector<8x512xf32>
    %428 = tpu.matmul %427, %4, %cst_91 {dimension_numbers = #tpu.dot_dimension_numbers<[1], [0], [0], [1], [0, 0, 1, 1], [], []>} : vector<8x128xbf16>, vector<128x512xbf16>, vector<8x512xf32> -> vector<8x512xf32>
    %429 = arith.truncf %394 : vector<8x128xf32> to vector<8x128xbf16>
    %cst_92 = arith.constant dense<0.000000e+00> : vector<8x512xf32>
    %430 = tpu.matmul %429, %5, %cst_92 {dimension_numbers = #tpu.dot_dimension_numbers<[1], [0], [0], [1], [0, 0, 1, 1], [], []>} : vector<8x128xbf16>, vector<128x512xbf16>, vector<8x512xf32> -> vector<8x512xf32>
    %431 = arith.addf %428, %430 : vector<8x512xf32>
    %432 = arith.addf %431, %8 : vector<8x512xf32>
    %433 = vector.extract_strided_slice %432 {offsets = [0, 0], sizes = [8, 128], strides = [1, 1]} : vector<8x512xf32> to vector<8x128xf32>
    %434 = arith.negf %433 : vector<8x128xf32>
    %435 = math.exp %434 : vector<8x128xf32>
    %cst_93 = arith.constant 1.000000e+00 : f32
    %436 = vector.broadcast %cst_93 : f32 to vector<8x128xf32>
    %437 = arith.addf %436, %435 : vector<8x128xf32>
    %438 = arith.divf %436, %437 : vector<8x128xf32>
    %439 = vector.extract_strided_slice %432 {offsets = [0, 128], sizes = [8, 128], strides = [1, 1]} : vector<8x512xf32> to vector<8x128xf32>
    %440 = arith.negf %439 : vector<8x128xf32>
    %441 = math.exp %440 : vector<8x128xf32>
    %cst_94 = arith.constant 1.000000e+00 : f32
    %442 = vector.broadcast %cst_94 : f32 to vector<8x128xf32>
    %443 = arith.addf %442, %441 : vector<8x128xf32>
    %444 = arith.divf %442, %443 : vector<8x128xf32>
    %445 = vector.extract_strided_slice %432 {offsets = [0, 256], sizes = [8, 128], strides = [1, 1]} : vector<8x512xf32> to vector<8x128xf32>
    %446 = math.tanh %445 : vector<8x128xf32>
    %447 = vector.extract_strided_slice %432 {offsets = [0, 384], sizes = [8, 128], strides = [1, 1]} : vector<8x512xf32> to vector<8x128xf32>
    %448 = arith.negf %447 : vector<8x128xf32>
    %449 = math.exp %448 : vector<8x128xf32>
    %cst_95 = arith.constant 1.000000e+00 : f32
    %450 = vector.broadcast %cst_95 : f32 to vector<8x128xf32>
    %451 = arith.addf %450, %449 : vector<8x128xf32>
    %452 = arith.divf %450, %451 : vector<8x128xf32>
    %453 = arith.mulf %444, %392 : vector<8x128xf32>
    %454 = arith.mulf %438, %446 : vector<8x128xf32>
    %455 = arith.addf %453, %454 : vector<8x128xf32>
    %456 = math.tanh %455 : vector<8x128xf32>
    %457 = arith.mulf %452, %456 : vector<8x128xf32>
    %c7_i32 = arith.constant 7 : i32
    %458 = arith.truncf %426 : vector<8x128xf32> to vector<8x128xbf16>
    %cst_96 = arith.constant dense<0.000000e+00> : vector<8x512xf32>
    %459 = tpu.matmul %458, %3, %cst_96 {dimension_numbers = #tpu.dot_dimension_numbers<[1], [0], [0], [1], [0, 0, 1, 1], [], []>} : vector<8x128xbf16>, vector<128x512xbf16>, vector<8x512xf32> -> vector<8x512xf32>
    %460 = arith.index_cast %c7_i32 : i32 to index
    %c0_97 = arith.constant 0 : index
    %c0_98 = arith.constant 0 : index
    %461 = vector.load %arg2[%460, %c0_97, %c0_98] : memref<8x8x512xbf16, #tpu.memory_space<vmem>>, vector<1x8x512xbf16>
    %462 = vector.shape_cast %461 : vector<1x8x512xbf16> to vector<8x512xbf16>
    %463 = arith.extf %462 : vector<8x512xbf16> to vector<8x512xf32>
    %464 = arith.addf %459, %463 : vector<8x512xf32>
    %465 = vector.extract_strided_slice %464 {offsets = [0, 0], sizes = [8, 128], strides = [1, 1]} : vector<8x512xf32> to vector<8x128xf32>
    %466 = arith.negf %465 : vector<8x128xf32>
    %467 = math.exp %466 : vector<8x128xf32>
    %cst_99 = arith.constant 1.000000e+00 : f32
    %468 = vector.broadcast %cst_99 : f32 to vector<8x128xf32>
    %469 = arith.addf %468, %467 : vector<8x128xf32>
    %470 = arith.divf %468, %469 : vector<8x128xf32>
    %471 = vector.extract_strided_slice %464 {offsets = [0, 128], sizes = [8, 128], strides = [1, 1]} : vector<8x512xf32> to vector<8x128xf32>
    %472 = arith.negf %471 : vector<8x128xf32>
    %473 = math.exp %472 : vector<8x128xf32>
    %cst_100 = arith.constant 1.000000e+00 : f32
    %474 = vector.broadcast %cst_100 : f32 to vector<8x128xf32>
    %475 = arith.addf %474, %473 : vector<8x128xf32>
    %476 = arith.divf %474, %475 : vector<8x128xf32>
    %477 = vector.extract_strided_slice %464 {offsets = [0, 256], sizes = [8, 128], strides = [1, 1]} : vector<8x512xf32> to vector<8x128xf32>
    %478 = math.tanh %477 : vector<8x128xf32>
    %479 = vector.extract_strided_slice %464 {offsets = [0, 384], sizes = [8, 128], strides = [1, 1]} : vector<8x512xf32> to vector<8x128xf32>
    %480 = arith.negf %479 : vector<8x128xf32>
    %481 = math.exp %480 : vector<8x128xf32>
    %cst_101 = arith.constant 1.000000e+00 : f32
    %482 = vector.broadcast %cst_101 : f32 to vector<8x128xf32>
    %483 = arith.addf %482, %481 : vector<8x128xf32>
    %484 = arith.divf %482, %483 : vector<8x128xf32>
    %485 = arith.mulf %476, %424 : vector<8x128xf32>
    %486 = arith.mulf %470, %478 : vector<8x128xf32>
    %487 = arith.addf %485, %486 : vector<8x128xf32>
    %488 = math.tanh %487 : vector<8x128xf32>
    %489 = arith.mulf %484, %488 : vector<8x128xf32>
    %490 = arith.truncf %489 : vector<8x128xf32> to vector<8x128xbf16>
    %cst_102 = arith.constant dense<0.000000e+00> : vector<8x512xf32>
    %491 = tpu.matmul %490, %4, %cst_102 {dimension_numbers = #tpu.dot_dimension_numbers<[1], [0], [0], [1], [0, 0, 1, 1], [], []>} : vector<8x128xbf16>, vector<128x512xbf16>, vector<8x512xf32> -> vector<8x512xf32>
    %492 = arith.truncf %457 : vector<8x128xf32> to vector<8x128xbf16>
    %cst_103 = arith.constant dense<0.000000e+00> : vector<8x512xf32>
    %493 = tpu.matmul %492, %5, %cst_103 {dimension_numbers = #tpu.dot_dimension_numbers<[1], [0], [0], [1], [0, 0, 1, 1], [], []>} : vector<8x128xbf16>, vector<128x512xbf16>, vector<8x512xf32> -> vector<8x512xf32>
    %494 = arith.addf %491, %493 : vector<8x512xf32>
    %495 = arith.addf %494, %8 : vector<8x512xf32>
    %496 = vector.extract_strided_slice %495 {offsets = [0, 0], sizes = [8, 128], strides = [1, 1]} : vector<8x512xf32> to vector<8x128xf32>
    %497 = arith.negf %496 : vector<8x128xf32>
    %498 = math.exp %497 : vector<8x128xf32>
    %cst_104 = arith.constant 1.000000e+00 : f32
    %499 = vector.broadcast %cst_104 : f32 to vector<8x128xf32>
    %500 = arith.addf %499, %498 : vector<8x128xf32>
    %501 = arith.divf %499, %500 : vector<8x128xf32>
    %502 = vector.extract_strided_slice %495 {offsets = [0, 128], sizes = [8, 128], strides = [1, 1]} : vector<8x512xf32> to vector<8x128xf32>
    %503 = arith.negf %502 : vector<8x128xf32>
    %504 = math.exp %503 : vector<8x128xf32>
    %cst_105 = arith.constant 1.000000e+00 : f32
    %505 = vector.broadcast %cst_105 : f32 to vector<8x128xf32>
    %506 = arith.addf %505, %504 : vector<8x128xf32>
    %507 = arith.divf %505, %506 : vector<8x128xf32>
    %508 = vector.extract_strided_slice %495 {offsets = [0, 256], sizes = [8, 128], strides = [1, 1]} : vector<8x512xf32> to vector<8x128xf32>
    %509 = math.tanh %508 : vector<8x128xf32>
    %510 = vector.extract_strided_slice %495 {offsets = [0, 384], sizes = [8, 128], strides = [1, 1]} : vector<8x512xf32> to vector<8x128xf32>
    %511 = arith.negf %510 : vector<8x128xf32>
    %512 = math.exp %511 : vector<8x128xf32>
    %cst_106 = arith.constant 1.000000e+00 : f32
    %513 = vector.broadcast %cst_106 : f32 to vector<8x128xf32>
    %514 = arith.addf %513, %512 : vector<8x128xf32>
    %515 = arith.divf %513, %514 : vector<8x128xf32>
    %516 = arith.mulf %507, %455 : vector<8x128xf32>
    %517 = arith.mulf %501, %509 : vector<8x128xf32>
    %518 = arith.addf %516, %517 : vector<8x128xf32>
    %519 = math.tanh %518 : vector<8x128xf32>
    %520 = arith.mulf %515, %519 : vector<8x128xf32>
    %c8_i32 = arith.constant 8 : i32
    %c0_107 = arith.constant 0 : index
    %c0_108 = arith.constant 0 : index
    %c0_109 = arith.constant 0 : index
    %521 = vector.load %arg9[%c0_107, %c0_108, %c0_109] : memref<2x8x128xf32, #tpu.memory_space<vmem>>, vector<1x8x128xf32>
    %522 = vector.shape_cast %521 : vector<1x8x128xf32> to vector<8x128xf32>
    %523 = vector.shape_cast %489 : vector<8x128xf32> to vector<1x8x128xf32>
    tpu.vector_store %arg9[%c0_107, %c0_108, %c0_109], %523 {strides = array<i32>} : memref<2x8x128xf32, #tpu.memory_space<vmem>>, vector<1x8x128xf32>,
    %c1_110 = arith.constant 1 : index
    %c0_111 = arith.constant 0 : index
    %c0_112 = arith.constant 0 : index
    %524 = vector.load %arg9[%c1_110, %c0_111, %c0_112] : memref<2x8x128xf32, #tpu.memory_space<vmem>>, vector<1x8x128xf32>
    %525 = vector.shape_cast %524 : vector<1x8x128xf32> to vector<8x128xf32>
    %526 = vector.shape_cast %520 : vector<8x128xf32> to vector<1x8x128xf32>
    tpu.vector_store %arg9[%c1_110, %c0_111, %c0_112], %526 {strides = array<i32>} : memref<2x8x128xf32, #tpu.memory_space<vmem>>, vector<1x8x128xf32>,
    %c0_113 = arith.constant 0 : index
    %c0_114 = arith.constant 0 : index
    %c0_115 = arith.constant 0 : index
    %527 = vector.load %arg10[%c0_113, %c0_114, %c0_115] : memref<2x8x128xf32, #tpu.memory_space<vmem>>, vector<1x8x128xf32>
    %528 = vector.shape_cast %527 : vector<1x8x128xf32> to vector<8x128xf32>
    %529 = vector.shape_cast %487 : vector<8x128xf32> to vector<1x8x128xf32>
    tpu.vector_store %arg10[%c0_113, %c0_114, %c0_115], %529 {strides = array<i32>} : memref<2x8x128xf32, #tpu.memory_space<vmem>>, vector<1x8x128xf32>,
    %c1_116 = arith.constant 1 : index
    %c0_117 = arith.constant 0 : index
    %c0_118 = arith.constant 0 : index
    %530 = vector.load %arg10[%c1_116, %c0_117, %c0_118] : memref<2x8x128xf32, #tpu.memory_space<vmem>>, vector<1x8x128xf32>
    %531 = vector.shape_cast %530 : vector<1x8x128xf32> to vector<8x128xf32>
    %532 = vector.shape_cast %518 : vector<8x128xf32> to vector<1x8x128xf32>
    tpu.vector_store %arg10[%c1_116, %c0_117, %c0_118], %532 {strides = array<i32>} : memref<2x8x128xf32, #tpu.memory_space<vmem>>, vector<1x8x128xf32>,
    return
  }
  func.func @transform_0(%arg0: i32, %arg1: i32) -> (i32, i32, i32) {
    %c0_i32 = arith.constant 0 : i32
    %c0_i32_0 = arith.constant 0 : i32
    return %arg1, %arg0, %c0_i32 : i32, i32, i32
  }
  func.func @transform_1(%arg0: i32, %arg1: i32) -> (i32, i32, i32) {
    %c0_i32 = arith.constant 0 : i32
    %c0_i32_0 = arith.constant 0 : i32
    %c0_i32_1 = arith.constant 0 : i32
    return %c0_i32, %arg0, %c0_i32_0 : i32, i32, i32
  }
  func.func @transform_2(%arg0: i32, %arg1: i32) -> (i32, i32, i32) {
    %c0_i32 = arith.constant 0 : i32
    %c0_i32_0 = arith.constant 0 : i32
    %c0_i32_1 = arith.constant 0 : i32
    return %c0_i32, %arg0, %c0_i32_0 : i32, i32, i32
  }
  func.func @transform_7(%arg0: i32, %arg1: i32) -> (i32, i32, i32) {
    %c0_i32 = arith.constant 0 : i32
    %c0_i32_0 = arith.constant 0 : i32
    %c0_i32_1 = arith.constant 0 : i32
    return %c0_i32, %arg0, %c0_i32_0 : i32, i32, i32
  }
  func.func @transform_8(%arg0: i32, %arg1: i32) -> (i32, i32, i32) {
    %c0_i32 = arith.constant 0 : i32
    %c0_i32_0 = arith.constant 0 : i32
    %c0_i32_1 = arith.constant 0 : i32
    return %c0_i32, %arg0, %c0_i32_0 : i32, i32, i32
  }
}

</mosaic_0001>

<bundles_post_ra>
// kernel: stacked_lstm_forward.1
= control target key start
LH: loop header
LB: loop body
LE: loop exit
PB: predicated region body
PF: predicated region fallthrough
CT: control target
= control target key end

     0   :  { %s5872_s0 = inlined_call_operand.vmem [shape: bf16[8,8,512], index: 0, kind: input, shape index: {}]   ;;  %s5873_s1 = inlined_call_operand.vmem [shape: f32[2,8,128], index: 1, kind: input, shape index: {}]   ;;  %s5874_s2 = inlined_call_operand.vmem [shape: f32[2,8,128], index: 2, kind: input, shape index: {}]   ;;  %s5875_s3 = inlined_call_operand.vmem [shape: bf16[128,512], index: 3, kind: input, shape index: {}]   ;;  %s5876_s4 = inlined_call_operand.vmem [shape: bf16[128,512], index: 4, kind: input, shape index: {}]   ;;  %s5877_s5 = inlined_call_operand.vmem [shape: bf16[128,512], index: 5, kind: input, shape index: {}]   ;;  %s5878_s6 = inlined_call_operand.vmem [shape: f32[1,512], index: 6, kind: input, shape index: {}]   ;;  %s5879_s7 = inlined_call_operand.vmem [shape: f32[2,8,128], index: 7, kind: output, shape index: {0}]   ;;  %s5880_s8 = inlined_call_operand.vmem [shape: f32[2,8,128], index: 8, kind: output, shape index: {1}]  }
   0x1   :  { %v4021_v0 = vld [vmem:[%s5875_s3] sm:$0xff]  ;;  %v4026_v1 = vld [vmem:[%s5875_s3 + $0x8] sm:$0xff]  ;;  %v4031_v2 = vld [vmem:[%s5875_s3 + $0x10] sm:$0xff] }
   0x2   :  { %v4036_v3 = vld [vmem:[%s5875_s3 + $0x18] sm:$0xff]  ;;  %v4041_v4 = vld [vmem:[%s5875_s3 + $0x20] sm:$0xff]  ;;  %v4046_v5 = vld [vmem:[%s5875_s3 + $0x28] sm:$0xff] }
   0x3   :  { %v4051_v6 = vld [vmem:[%s5875_s3 + $0x30] sm:$0xff]  ;;  %v4056_v7 = vld [vmem:[%s5875_s3 + $0x38] sm:$0xff]  ;;  %v4061_v8 = vld [vmem:[%s5875_s3 + $0x40] sm:$0xff] }
   0x4   :  { %v4066_v9 = vld [vmem:[%s5875_s3 + $0x48] sm:$0xff]  ;;  %v4071_v10 = vld [vmem:[%s5875_s3 + $0x50] sm:$0xff]  ;;  %v4076_v11 = vld [vmem:[%s5875_s3 + $0x58] sm:$0xff] }
   0x5   :  { %v4081_v12 = vld [vmem:[%s5875_s3 + $0x60] sm:$0xff]  ;;  %v4086_v13 = vld [vmem:[%s5875_s3 + $0x68] sm:$0xff]  ;;  %v4091_v14 = vld [vmem:[%s5875_s3 + $0x70] sm:$0xff] }
   0x6   :  { %v4096_v15 = vld [vmem:[%s5875_s3 + $0x78] sm:$0xff]  ;;  %v4101_v16 = vld [vmem:[%s5875_s3 + $0x80] sm:$0xff]  ;;  %v4106_v17 = vld [vmem:[%s5875_s3 + $0x88] sm:$0xff] }
   0x7   :  { %v4111_v18 = vld [vmem:[%s5875_s3 + $0x90] sm:$0xff]  ;;  %v4116_v19 = vld [vmem:[%s5875_s3 + $0x98] sm:$0xff]  ;;  %v4121_v20 = vld [vmem:[%s5875_s3 + $0xa0] sm:$0xff] }
   0x8   :  { %v4126_v21 = vld [vmem:[%s5875_s3 + $0xa8] sm:$0xff]  ;;  %v4131_v22 = vld [vmem:[%s5875_s3 + $0xb0] sm:$0xff]  ;;  %v4136_v23 = vld [vmem:[%s5875_s3 + $0xb8] sm:$0xff] }
   0x9   :  { %v4141_v24 = vld [vmem:[%s5875_s3 + $0xc0] sm:$0xff]  ;;  %v4146_v25 = vld [vmem:[%s5875_s3 + $0xc8] sm:$0xff]  ;;  %v4151_v26 = vld [vmem:[%s5875_s3 + $0xd0] sm:$0xff] }
   0xa   :  { %v4156_v27 = vld [vmem:[%s5875_s3 + $0xd8] sm:$0xff]  ;;  %v4161_v28 = vld [vmem:[%s5875_s3 + $0xe0] sm:$0xff]  ;;  %v4166_v29 = vld [vmem:[%s5875_s3 + $0xe8] sm:$0xff] }
   0xb   :  { %v4171_v30 = vld [vmem:[%s5875_s3 + $0xf0] sm:$0xff]  ;;  %v4176_v31 = vld [vmem:[%s5875_s3 + $0xf8] sm:$0xff] }
   0xc   :  { %129 = vsyncadd [#allocation6], 4096  ;;  %v4181_v32 = vld [vmem:[%s5876_s4] sm:$0xff]  ;;  %v4186_v33 = vld [vmem:[%s5876_s4 + $0x8] sm:$0xff] }
   0xd   :  { %6108 = vst [vmem:[#allocation15_spill] sm:$0xff] %v4181_v32  ;;  %6109 = vst [vmem:[#allocation16_spill] sm:$0xff] %v4186_v33  ;;  %v4191_v34 = vld [vmem:[%s5876_s4 + $0x10] sm:$0xff]  ;;  %v4196_v35 = vld [vmem:[%s5876_s4 + $0x18] sm:$0xff] }
   0xe   :  { %6110 = vst [vmem:[#allocation17_spill] sm:$0xff] %v4191_v34  ;;  %6111 = vst [vmem:[#allocation18_spill] sm:$0xff] %v4196_v35  ;;  %v4201_v36 = vld [vmem:[%s5876_s4 + $0x20] sm:$0xff]  ;;  %v4206_v37 = vld [vmem:[%s5876_s4 + $0x28] sm:$0xff] }
   0xf   :  { %6112 = vst [vmem:[#allocation19_spill] sm:$0xff] %v4201_v36  ;;  %6113 = vst [vmem:[#allocation20_spill] sm:$0xff] %v4206_v37  ;;  %v4211_v38 = vld [vmem:[%s5876_s4 + $0x30] sm:$0xff]  ;;  %v4216_v39 = vld [vmem:[%s5876_s4 + $0x38] sm:$0xff] }
  0x10   :  { %6114 = vst [vmem:[#allocation21_spill] sm:$0xff] %v4211_v38  ;;  %6115 = vst [vmem:[#allocation22_spill] sm:$0xff] %v4216_v39  ;;  %v4221_v40 = vld [vmem:[%s5876_s4 + $0x40] sm:$0xff]  ;;  %v4226_v41 = vld [vmem:[%s5876_s4 + $0x48] sm:$0xff] }
  0x11   :  { %6116 = vst [vmem:[#allocation23_spill] sm:$0xff] %v4221_v40  ;;  %6117 = vst [vmem:[#allocation24_spill] sm:$0xff] %v4226_v41  ;;  %v4231_v42 = vld [vmem:[%s5876_s4 + $0x50] sm:$0xff]  ;;  %v4236_v43 = vld [vmem:[%s5876_s4 + $0x58] sm:$0xff] }
  0x12   :  { %6118 = vst [vmem:[#allocation25_spill] sm:$0xff] %v4231_v42  ;;  %6119 = vst [vmem:[#allocation26_spill] sm:$0xff] %v4236_v43  ;;  %v4241_v44 = vld [vmem:[%s5876_s4 + $0x60] sm:$0xff]  ;;  %v4246_v45 = vld [vmem:[%s5876_s4 + $0x68] sm:$0xff] }
  0x13   :  { %6120 = vst [vmem:[#allocation27_spill] sm:$0xff] %v4241_v44  ;;  %6121 = vst [vmem:[#allocation28_spill] sm:$0xff] %v4246_v45  ;;  %v4251_v46 = vld [vmem:[%s5876_s4 + $0x70] sm:$0xff]  ;;  %v4256_v47 = vld [vmem:[%s5876_s4 + $0x78] sm:$0xff] }
  0x14   :  { %6122 = vst [vmem:[#allocation29_spill] sm:$0xff] %v4251_v46  ;;  %6123 = vst [vmem:[#allocation30_spill] sm:$0xff] %v4256_v47  ;;  %v4261_v48 = vld [vmem:[%s5876_s4 + $0x80] sm:$0xff]  ;;  %v4266_v49 = vld [vmem:[%s5876_s4 + $0x88] sm:$0xff] }
  0x15   :  { %6124 = vst [vmem:[#allocation31_spill] sm:$0xff] %v4261_v48  ;;  %6125 = vst [vmem:[#allocation32_spill] sm:$0xff] %v4266_v49  ;;  %v4271_v50 = vld [vmem:[%s5876_s4 + $0x90] sm:$0xff]  ;;  %v4276_v51 = vld [vmem:[%s5876_s4 + $0x98] sm:$0xff] }
  0x16   :  { %6126 = vst [vmem:[#allocation33_spill] sm:$0xff] %v4271_v50  ;;  %6127 = vst [vmem:[#allocation34_spill] sm:$0xff] %v4276_v51  ;;  %v4281_v52 = vld [vmem:[%s5876_s4 + $0xa0] sm:$0xff]  ;;  %v4286_v53 = vld [vmem:[%s5876_s4 + $0xa8] sm:$0xff] }
  0x17   :  { %6128 = vst [vmem:[#allocation35_spill] sm:$0xff] %v4281_v52  ;;  %6129 = vst [vmem:[#allocation36_spill] sm:$0xff] %v4286_v53  ;;  %v4291_v54 = vld [vmem:[%s5876_s4 + $0xb0] sm:$0xff]  ;;  %v4296_v55 = vld [vmem:[%s5876_s4 + $0xb8] sm:$0xff] }
  0x18   :  { %6130 = vst [vmem:[#allocation37_spill] sm:$0xff] %v4291_v54  ;;  %6131 = vst [vmem:[#allocation38_spill] sm:$0xff] %v4296_v55  ;;  %v4301_v56 = vld [vmem:[%s5876_s4 + $0xc0] sm:$0xff]  ;;  %v4306_v57 = vld [vmem:[%s5876_s4 + $0xc8] sm:$0xff] }
  0x19   :  { %6132 = vst [vmem:[#allocation39_spill] sm:$0xff] %v4301_v56  ;;  %6133 = vst [vmem:[#allocation40_spill] sm:$0xff] %v4306_v57  ;;  %v4311_v58 = vld [vmem:[%s5876_s4 + $0xd0] sm:$0xff]  ;;  %v4316_v59 = vld [vmem:[%s5876_s4 + $0xd8] sm:$0xff] }
  0x1a   :  { %6134 = vst [vmem:[#allocation41_spill] sm:$0xff] %v4311_v58  ;;  %6135 = vst [vmem:[#allocation42_spill] sm:$0xff] %v4316_v59  ;;  %v4321_v60 = vld [vmem:[%s5876_s4 + $0xe0] sm:$0xff]  ;;  %v4326_v61 = vld [vmem:[%s5876_s4 + $0xe8] sm:$0xff] }
  0x1b   :  { %6136 = vst [vmem:[#allocation43_spill] sm:$0xff] %v4321_v60  ;;  %6137 = vst [vmem:[#allocation44_spill] sm:$0xff] %v4326_v61  ;;  %v4331_v62 = vld [vmem:[%s5876_s4 + $0xf0] sm:$0xff]  ;;  %v4336_v63 = vld [vmem:[%s5876_s4 + $0xf8] sm:$0xff] }
  0x1c   :  { %6138 = vst [vmem:[#allocation45_spill] sm:$0xff] %v4331_v62  ;;  %6139 = vst [vmem:[#allocation46_spill] sm:$0xff] %v4336_v63 }
  0x1d   :  { %235 = vsyncadd [#allocation6 + $0x1], 4096  ;;  %v4341_v33 = vld [vmem:[%s5877_s5] sm:$0xff]  ;;  %v4346_v35 = vld [vmem:[%s5877_s5 + $0x8] sm:$0xff] }
  0x1e   :  { %6140 = vst [vmem:[#allocation47_spill] sm:$0xff] %v4341_v33  ;;  %6141 = vst [vmem:[#allocation48_spill] sm:$0xff] %v4346_v35  ;;  %v4351_v32 = vld [vmem:[%s5877_s5 + $0x10] sm:$0xff]  ;;  %v4356_v34 = vld [vmem:[%s5877_s5 + $0x18] sm:$0xff] }
  0x1f   :  { %6142 = vst [vmem:[#allocation49_spill] sm:$0xff] %v4356_v34  ;;  %v4361_v37 = vld [vmem:[%s5877_s5 + $0x20] sm:$0xff]  ;;  %v4366_v39 = vld [vmem:[%s5877_s5 + $0x28] sm:$0xff]  ;;  %v4371_v36 = vld [vmem:[%s5877_s5 + $0x30] sm:$0xff] }
  0x20   :  { %6143 = vst [vmem:[#allocation50_spill] sm:$0xff] %v4366_v39  ;;  %v4376_v38 = vld [vmem:[%s5877_s5 + $0x38] sm:$0xff]  ;;  %v4381_v41 = vld [vmem:[%s5877_s5 + $0x40] sm:$0xff]  ;;  %v4386_v43 = vld [vmem:[%s5877_s5 + $0x48] sm:$0xff] }
  0x21   :  { %6144 = vst [vmem:[#allocation51_spill] sm:$0xff] %v4376_v38  ;;  %v4391_v40 = vld [vmem:[%s5877_s5 + $0x50] sm:$0xff]  ;;  %v4396_v42 = vld [vmem:[%s5877_s5 + $0x58] sm:$0xff]  ;;  %v4401_v45 = vld [vmem:[%s5877_s5 + $0x60] sm:$0xff] }
  0x22   :  { %v4406_v47 = vld [vmem:[%s5877_s5 + $0x68] sm:$0xff]  ;;  %v4411_v44 = vld [vmem:[%s5877_s5 + $0x70] sm:$0xff]  ;;  %v4416_v46 = vld [vmem:[%s5877_s5 + $0x78] sm:$0xff] }
  0x23   :  { %v4421_v49 = vld [vmem:[%s5877_s5 + $0x80] sm:$0xff]  ;;  %v4426_v51 = vld [vmem:[%s5877_s5 + $0x88] sm:$0xff]  ;;  %v4431_v48 = vld [vmem:[%s5877_s5 + $0x90] sm:$0xff] }
  0x24   :  { %v4436_v50 = vld [vmem:[%s5877_s5 + $0x98] sm:$0xff]  ;;  %v4441_v53 = vld [vmem:[%s5877_s5 + $0xa0] sm:$0xff]  ;;  %v4446_v55 = vld [vmem:[%s5877_s5 + $0xa8] sm:$0xff] }
  0x25   :  { %v4451_v52 = vld [vmem:[%s5877_s5 + $0xb0] sm:$0xff]  ;;  %v4456_v54 = vld [vmem:[%s5877_s5 + $0xb8] sm:$0xff]  ;;  %v4461_v57 = vld [vmem:[%s5877_s5 + $0xc0] sm:$0xff] }
  0x26   :  { %v4466_v59 = vld [vmem:[%s5877_s5 + $0xc8] sm:$0xff]  ;;  %v4471_v56 = vld [vmem:[%s5877_s5 + $0xd0] sm:$0xff]  ;;  %v4476_v58 = vld [vmem:[%s5877_s5 + $0xd8] sm:$0xff] }
  0x27   :  { %v4481_v61 = vld [vmem:[%s5877_s5 + $0xe0] sm:$0xff]  ;;  %v4486_v63 = vld [vmem:[%s5877_s5 + $0xe8] sm:$0xff]  ;;  %v4491_v60 = vld [vmem:[%s5877_s5 + $0xf0] sm:$0xff] }
  0x28   :  { %v4496_v62 = vld [vmem:[%s5877_s5 + $0xf8] sm:$0xff] }
  0x29   :  { %341 = vsyncadd [#allocation6 + $0x2], 4096  ;;  %v361_v35 = vld [vmem:[%s5878_s6] sm:$0xf] }
  0x2a   :  { %362 = vst [vmem:[#allocation5] sm:$0xf] %v361_v35 }
  0x2b   :  { %388 = vsyncadd [#allocation6 + $0x3], 64 }
  0x2c   :  { %3964 = dma.done.wait [#allocation6], 4096 }
  0x2d   :  { %3965 = vsyncadd [#allocation6], 4294963200 }
  0x2e   :  { %3966 = dma.done.wait [#allocation6 + $0x1], 4096 }
  0x2f   :  { %3967 = vsyncadd [#allocation6 + $0x1], 4294963200 }
  0x30   :  { %3968 = dma.done.wait [#allocation6 + $0x2], 4096 }
  0x31   :  { %3969 = vsyncadd [#allocation6 + $0x2], 4294963200  ;;  %v4503_v34 = vcombine.high %v4161_v28, %v4171_v30  ;;  %v4507_v39 = vcombine.low %v4161_v28, %v4171_v30  ;;  %v4511_v38 = vcombine.high %v4141_v24, %v4151_v26 }
  0x33   :  { %6145 = vst [vmem:[#allocation52_spill] sm:$0xff] %v4503_v34 }
  0x34   :  { %3970 = dma.done.wait [#allocation6 + $0x3], 64 }
  0x35   :  { %3971 = vsyncadd [#allocation6 + $0x3], 4294967232  ;;  %v4515_v35 = vcombine.high %v4166_v29, %v4176_v31  ;;  %699 = vmatprep.subr.bf16.mxu0 %v4503_v34  ;;  %v4520_v33 = vcombine.low %v4166_v29, %v4176_v31  ;;  %v4524_v28 = vcombine.high %v4146_v25, %v4156_v27  ;;  %v4529_v30 = vcombine.low %v4141_v24, %v4151_v26 }
  0x36   :  { %700 = vmatpush1.bf16.msra.mxu0 %v4507_v39  ;;  %v4535_v34 = vcombine.high %v4121_v20, %v4131_v22  ;;  %v4540_v29 = vcombine.low %v4146_v25, %v4156_v27  ;;  %v4545_v24 = vcombine.high %v4126_v21, %v4136_v23  ;;  %v5920_v26 = vmov 0  }
  0x37   :  { %6146 = vst [vmem:[#allocation53_spill] sm:$0xff] %v4515_v35  ;;  %6147 = vst [vmem:[#allocation54_spill] sm:$0xff] %v4524_v28  ;;  %740 = vmatprep.subr.bf16.mxu1 %v4515_v35  ;;  %701 = vmatprep.subr.bf16.mxu0 %v4511_v38  ;;  %v4551_v31 = vcombine.low %v4121_v20, %v4131_v22  ;;  %v4556_v25 = vcombine.high %v4101_v16, %v4111_v18  ;;  %v6156_v20 = vmov 0  }
  0x38   :  { %6148 = vst [vmem:[#allocation55_spill] sm:$0xff] %v4529_v30  ;;  %6149 = vst [vmem:[#allocation56_spill] sm:$0xff] %v4535_v34  ;;  %741 = vmatpush1.bf16.msra.mxu1 %v4520_v33  ;;  %731 = vmatprep.mubr.bf16.mxu0 %v5920_v26  ;;  %v4561_v27 = vcombine.low %v4126_v21, %v4136_v23  ;;  %v4566_v26 = vcombine.high %v4106_v17, %v4116_v19 }
  0x39   :  { %6150 = vst [vmem:[#allocation57_spill] sm:$0xff] %v4540_v29  ;;  %742 = vmatprep.subr.bf16.mxu1 %v4524_v28  ;;  %6151 = vst [vmem:[#allocation58_spill] sm:$0xff] %v4545_v24  ;;  %772 = vmatprep.mubr.bf16.mxu1 %v6156_v20  ;;  %v4572_v22 = vcombine.low %v4101_v16, %v4111_v18  ;;  %v4577_v21 = vcombine.high %v4081_v12, %v4091_v14 }
  0x3a   :  { %702 = vmatpush1.bf16.msra.mxu0 %v4529_v30  ;;  %6152 = vst [vmem:[#allocation59_spill] sm:$0xff] %v4551_v31  ;;  %6153 = vst [vmem:[#allocation60_spill] sm:$0xff] %v4556_v25  ;;  %v4582_v23 = vcombine.low %v4106_v17, %v4116_v19  ;;  %v4592_v16 = vcombine.low %v4081_v12, %v4091_v14  ;;  %v4597_v18 = vcombine.high %v4061_v8, %v4071_v10 }
  0x3b   :  { %703 = vmatprep.subr.bf16.mxu0 %v4535_v34  ;;  %6154 = vst [vmem:[#allocation61_spill] sm:$0xff] %v4561_v27  ;;  %6155 = vst [vmem:[#allocation62_spill] sm:$0xff] %v4566_v26  ;;  %v4602_v17 = vcombine.low %v4086_v13, %v4096_v15  ;;  %v4607_v19 = vcombine.high %v4066_v9, %v4076_v11  ;;  %v4612_v12 = vcombine.low %v4061_v8, %v4071_v10 }
  0x3c   :  { %743 = vmatpush1.bf16.msra.mxu1 %v4540_v29  ;;  %6157 = vst [vmem:[#allocation63_spill] sm:$0xff] %v4572_v22  ;;  %6158 = vst [vmem:[#allocation64_spill] sm:$0xff] %v4577_v21  ;;  %v4617_v14 = vcombine.high %v4041_v4, %v4051_v6  ;;  %v4632_v8 = vcombine.low %v4041_v4, %v4051_v6  ;;  %v4637_v10 = vcombine.high %v4021_v0, %v4031_v2  ;;  %v400_v6 = vld [vmem:[%s5873_s1] sm:$0xff] }
  0x3d   :  { %744 = vmatprep.subr.bf16.mxu1 %v4545_v24  ;;  %6159 = vst [vmem:[#allocation65_spill] sm:$0xff] %v4582_v23  ;;  %6161 = vst [vmem:[#allocation67_spill] sm:$0xff] %v4592_v16  ;;  %v4652_v4 = vcombine.low %v4021_v0, %v4031_v2  ;;  %v4670_v0 = vcombine.high %v4486_v63, %v4496_v62  ;;  %v532_v2 = vpack.c.bf16 %v400_v6, %v400_v6 }
  0x3e   :  { %704 = vmatpush1.bf16.msra.mxu0 %v4551_v31  ;;  %v4587_v31 = vcombine.high %v4086_v13, %v4096_v15  ;;  %6162 = vst [vmem:[#allocation68_spill] sm:$0xff] %v4597_v18  ;;  %6163 = vst [vmem:[#allocation69_spill] sm:$0xff] %v4602_v17  ;;  %v4622_v13 = vcombine.low %v4066_v9, %v4076_v11  ;;  %v4627_v15 = vcombine.high %v4046_v5, %v4056_v7 }
  0x3f   :  { %705 = vmatprep.subr.bf16.mxu0 %v4556_v25  ;;  %6164 = vst [vmem:[#allocation70_spill] sm:$0xff] %v4607_v19  ;;  %6165 = vst [vmem:[#allocation71_spill] sm:$0xff] %v4612_v12  ;;  %v4642_v9 = vcombine.low %v4046_v5, %v4056_v7  ;;  %v4647_v11 = vcombine.high %v4026_v1, %v4036_v3  ;;  %v4661_v5 = vcombine.low %v4026_v1, %v4036_v3 }
  0x40   :  { %745 = vmatpush1.bf16.msra.mxu1 %v4561_v27  ;;  %6160 = vst [vmem:[#allocation66_spill] sm:$0xff] %v4587_v31  ;;  %6166 = vst [vmem:[#allocation72_spill] sm:$0xff] %v4617_v14  ;;  %v4665_v7 = vcombine.high %v4481_v61, %v4491_v60  ;;  %v4681_v1 = vcombine.high %v4461_v57, %v4471_v56  ;;  %v4685_v3 = vcombine.low %v4486_v63, %v4496_v62 }
  0x41   :  { %746 = vmatprep.subr.bf16.mxu1 %v4566_v26  ;;  %6167 = vst [vmem:[#allocation73_spill] sm:$0xff] %v4622_v13  ;;  %6168 = vst [vmem:[#allocation74_spill] sm:$0xff] %v4627_v15  ;;  %v4690_v6 = vcombine.high %v4466_v59, %v4476_v58  ;;  %v4705_v62 = vcombine.low %v4466_v59, %v4476_v58  ;;  %v4724_v58 = vcombine.high %v4446_v55, %v4456_v54 }
  0x42   :  { %706 = vmatpush1.bf16.msra.mxu0 %v4572_v22  ;;  %6169 = vst [vmem:[#allocation75_spill] sm:$0xff] %v4632_v8  ;;  %6170 = vst [vmem:[#allocation76_spill] sm:$0xff] %v4637_v10  ;;  %v4728_v59 = vcombine.low %v4421_v49, %v4431_v48 }
  0x43   :  { %707 = vmatprep.subr.bf16.mxu0 %v4577_v21  ;;  %6171 = vst [vmem:[#allocation77_spill] sm:$0xff] %v4642_v9  ;;  %6172 = vst [vmem:[#allocation78_spill] sm:$0xff] %v4647_v11 }
  0x44   :  { %747 = vmatpush1.bf16.msra.mxu1 %v4582_v23  ;;  %6173 = vst [vmem:[#allocation79_spill] sm:$0xff] %v4652_v4  ;;  %6174 = vst [vmem:[#allocation80_spill] sm:$0xff] %v4661_v5 }
  0x45   :  { %748 = vmatprep.subr.bf16.mxu1 %v4587_v31  ;;  %6175 = vst [vmem:[#allocation81_spill] sm:$0xff] %v4665_v7  ;;  %6176 = vst [vmem:[#allocation82_spill] sm:$0xff] %v4670_v0 }
  0x46   :  { %708 = vmatpush1.bf16.msra.mxu0 %v4592_v16  ;;  %6178 = vst [vmem:[#allocation84_spill] sm:$0xff] %v4681_v1  ;;  %6179 = vst [vmem:[#allocation85_spill] sm:$0xff] %v4685_v3 }
  0x47   :  { %709 = vmatprep.subr.bf16.mxu0 %v4597_v18  ;;  %6180 = vst [vmem:[#allocation86_spill] sm:$0xff] %v4690_v6  ;;  %6183 = vst [vmem:[#allocation89_spill] sm:$0xff] %v4705_v62 }
  0x48   :  { %749 = vmatpush1.bf16.msra.mxu1 %v4602_v17  ;;  %6186 = vst [vmem:[#allocation92_spill] sm:$0xff] %v4724_v58  ;;  %6187 = vst [vmem:[#allocation93_spill] sm:$0xff] %v4728_v59 }
  0x49   :  { %750 = vmatprep.subr.bf16.mxu1 %v4607_v19 }
  0x4a   :  { %710 = vmatpush1.bf16.msra.mxu0 %v4612_v12 }
  0x4b   :  { %711 = vmatprep.subr.bf16.mxu0 %v4617_v14 }
  0x4c   :  { %751 = vmatpush1.bf16.msra.mxu1 %v4622_v13 }
  0x4d   :  { %752 = vmatprep.subr.bf16.mxu1 %v4627_v15 }
  0x4e   :  { %712 = vmatpush1.bf16.msra.mxu0 %v4632_v8 }
  0x4f   :  { %713 = vmatprep.subr.bf16.mxu0 %v4637_v10  ;;  %v4675_v10 = vcombine.low %v4481_v61, %v4491_v60  ;;  %v4695_v60 = vcombine.low %v4461_v57, %v4471_v56  ;;  %v4701_v61 = vcombine.high %v4441_v53, %v4451_v52  ;;  %v4713_v56 = vcombine.low %v4441_v53, %v4451_v52 }
  0x50   :  { %753 = vmatpush1.bf16.msra.mxu1 %v4642_v9  ;;  %v4720_v57 = vcombine.high %v4421_v49, %v4431_v48  ;;  %v4732_v52 = vcombine.low %v4446_v55, %v4456_v54  ;;  %v4740_v53 = vcombine.high %v4401_v45, %v4411_v44  ;;  %v4744_v48 = vcombine.high %v4426_v51, %v4436_v50 }
  0x51   :  { %754 = vmatprep.subr.bf16.mxu1 %v4647_v11  ;;  %6177 = vst [vmem:[#allocation83_spill] sm:$0xff] %v4675_v10  ;;  %6181 = vst [vmem:[#allocation87_spill] sm:$0xff] %v4695_v60  ;;  %v4748_v49 = vcombine.low %v4401_v45, %v4411_v44  ;;  %v4752_v54 = vcombine.low %v4426_v51, %v4436_v50  ;;  %v4760_v55 = vcombine.high %v4381_v41, %v4391_v40 }
  0x52   :  { %714 = vmatpush1.bf16.msra.mxu0 %v4652_v4  ;;  %6182 = vst [vmem:[#allocation88_spill] sm:$0xff] %v4701_v61  ;;  %6184 = vst [vmem:[#allocation90_spill] sm:$0xff] %v4713_v56  ;;  %v4764_v44 = vcombine.high %v4406_v47, %v4416_v46  ;;  %v4768_v45 = vcombine.low %v4381_v41, %v4391_v40  ;;  %v4772_v50 = vcombine.low %v4406_v47, %v4416_v46  ;;  %v6201_v47 = vld [vmem:[#allocation47_spill] sm:$0xff] }
  0x53   :  { %967 = vmatprep.subr.bf16.mxu0 %v4665_v7  ;;  %6185 = vst [vmem:[#allocation91_spill] sm:$0xff] %v4720_v57  ;;  %6188 = vst [vmem:[#allocation94_spill] sm:$0xff] %v4732_v52  ;;  %v4780_v51 = vcombine.high %v4361_v37, %v4371_v36  ;;  %v4784_v40 = vcombine.high %v4386_v43, %v4396_v42  ;;  %v4788_v41 = vcombine.low %v4361_v37, %v4371_v36 }
  0x54   :  { %755 = vmatpush1.bf16.msra.mxu1 %v4661_v5  ;;  %6189 = vst [vmem:[#allocation95_spill] sm:$0xff] %v4740_v53  ;;  %6190 = vst [vmem:[#allocation96_spill] sm:$0xff] %v4744_v48  ;;  %v4792_v46 = vcombine.low %v4386_v43, %v4396_v42  ;;  %v4800_v63 = vcombine.high %v6201_v47, %v4351_v32  ;;  %v4808_v37 = vcombine.low %v6201_v47, %v4351_v32  ;;  %v401_v43 = vld [vmem:[%s5873_s1 + $0x8] sm:$0xff] }
  0x55   :  { %1008 = vmatprep.subr.bf16.mxu1 %v4670_v0  ;;  %732 = vmatmul.mubr.bf16.vlgmr.msra.gmra.mxu0 %v532_v2  ;;  %6191 = vst [vmem:[#allocation97_spill] sm:$0xff] %v4748_v49  ;;  %6192 = vst [vmem:[#allocation98_spill] sm:$0xff] %v4752_v54  ;;  %v6209_v32 = vld [vmem:[#allocation48_spill] sm:$0xff] }
  0x56   :  { %968 = vmatpush1.bf16.msra.mxu0 %v4675_v10  ;;  %999 = vmatprep.mubr.bf16.mxu0 %v6156_v20  ;;  %6193 = vst [vmem:[#allocation99_spill] sm:$0xff] %v4760_v55  ;;  %6194 = vst [vmem:[#allocation100_spill] sm:$0xff] %v4764_v44 }
  0x57   :  { %773 = vmatmul.mubr.bf16.vlgmr.msra.gmra.mxu1 %v532_v2  ;;  %969 = vmatprep.subr.bf16.mxu0 %v4681_v1  ;;  %6195 = vst [vmem:[#allocation101_spill] sm:$0xff] %v4768_v45  ;;  %6196 = vst [vmem:[#allocation102_spill] sm:$0xff] %v4772_v50  ;;  %v6203_v2 = vld [vmem:[#allocation51_spill] sm:$0xff] }
  0x58   :  { %1009 = vmatpush1.bf16.msra.mxu1 %v4685_v3  ;;  %1040 = vmatprep.mubr.bf16.mxu1 %v6156_v20  ;;  %6197 = vst [vmem:[#allocation103_spill] sm:$0xff] %v4780_v51  ;;  %6198 = vst [vmem:[#allocation104_spill] sm:$0xff] %v4784_v40 }
  0x59   :  { %1010 = vmatprep.subr.bf16.mxu1 %v4690_v6  ;;  %6199 = vst [vmem:[#allocation105_spill] sm:$0xff] %v4788_v41  ;;  %6200 = vst [vmem:[#allocation106_spill] sm:$0xff] %v4792_v46 }
  0x5a   :  { %970 = vmatpush1.bf16.msra.mxu0 %v4695_v60  ;;  %6202 = vst [vmem:[#allocation47_spill] sm:$0xff] %v4800_v63 }
  0x5b   :  { %971 = vmatprep.subr.bf16.mxu0 %v4701_v61 }
  0x5c   :  { %1011 = vmatpush1.bf16.msra.mxu1 %v4705_v62 }
  0x5d   :  { %1012 = vmatprep.subr.bf16.mxu1 %v4724_v58 }
  0x5e   :  { %972 = vmatpush1.bf16.msra.mxu0 %v4713_v56 }
  0x5f   :  { %973 = vmatprep.subr.bf16.mxu0 %v4720_v57 }
  0x60   :  { %1013 = vmatpush1.bf16.msra.mxu1 %v4732_v52 }
  0x61   :  { %1014 = vmatprep.subr.bf16.mxu1 %v4744_v48 }
  0x62   :  { %974 = vmatpush1.bf16.msra.mxu0 %v4728_v59 }
  0x63   :  { %975 = vmatprep.subr.bf16.mxu0 %v4740_v53 }
  0x64   :  { %1015 = vmatpush1.bf16.msra.mxu1 %v4752_v54 }
  0x65   :  { %1016 = vmatprep.subr.bf16.mxu1 %v4764_v44 }
  0x66   :  { %976 = vmatpush1.bf16.msra.mxu0 %v4748_v49 }
  0x67   :  { %977 = vmatprep.subr.bf16.mxu0 %v4760_v55 }
  0x68   :  { %1017 = vmatpush1.bf16.msra.mxu1 %v4772_v50 }
  0x69   :  { %1018 = vmatprep.subr.bf16.mxu1 %v4784_v40  ;;  %v6223_v40 = vld [vmem:[#allocation42_spill] sm:$0xff] }
  0x6a   :  { %978 = vmatpush1.bf16.msra.mxu0 %v4768_v45  ;;  %v6204_v45 = vld [vmem:[#allocation50_spill] sm:$0xff] }
  0x6b   :  { %979 = vmatprep.subr.bf16.mxu0 %v4780_v51  ;;  %v4804_v36 = vcombine.high %v6204_v45, %v6203_v2  ;;  %6206 = vst [vmem:[#allocation50_spill] sm:$0xff] %v4808_v37  ;;  %v4812_v42 = vcombine.low %v6204_v45, %v6203_v2  ;;  %v6208_v51 = vld [vmem:[#allocation49_spill] sm:$0xff] }
  0x6c   :  { %1019 = vmatpush1.bf16.msra.mxu1 %v4792_v46  ;;  %v4823_v47 = vcombine.high %v6209_v32, %v6208_v51  ;;  %v4827_v45 = vcombine.low %v6209_v32, %v6208_v51  ;;  %v6212_v2 = vld [vmem:[#allocation45_spill] sm:$0xff] }
  0x6d   :  { %6205 = vst [vmem:[#allocation51_spill] sm:$0xff] %v4804_v36  ;;  %6207 = vst [vmem:[#allocation107_spill] sm:$0xff] %v4812_v42  ;;  %1020 = vmatprep.subr.bf16.mxu1 %v4804_v36  ;;  %v6220_v32 = vld [vmem:[#allocation41_spill] sm:$0xff] }
  0x6e   :  { %980 = vmatpush1.bf16.msra.mxu0 %v4788_v41  ;;  %v806_v41 = vpack.c.bf16 %v401_v43, %v401_v43  ;;  %6210 = vst [vmem:[#allocation49_spill] sm:$0xff] %v4823_v47  ;;  %6211 = vst [vmem:[#allocation48_spill] sm:$0xff] %v4827_v45  ;;  %v6215_v43 = vld [vmem:[#allocation46_spill] sm:$0xff] }
  0x6f   :  { %981 = vmatprep.subr.bf16.mxu0 %v4800_v63 }
  0x70   :  { %1021 = vmatpush1.bf16.msra.mxu1 %v4812_v42  ;;  %v6216_v42 = vld [vmem:[#allocation44_spill] sm:$0xff] }
  0x71   :  { %1022 = vmatprep.subr.bf16.mxu1 %v4823_v47  ;;  %v4838_v36 = vcombine.high %v6216_v42, %v6215_v43  ;;  %v4846_v51 = vcombine.low %v6216_v42, %v6215_v43  ;;  %v6228_v43 = vld [vmem:[#allocation37_spill] sm:$0xff] }
  0x72   :  { %982 = vmatpush1.bf16.msra.mxu0 %v4808_v37  ;;  %v6213_v37 = vld [vmem:[#allocation43_spill] sm:$0xff] }
  0x73   :  { %v4834_v63 = vcombine.high %v6213_v37, %v6212_v2  ;;  %6217 = vst [vmem:[#allocation43_spill] sm:$0xff] %v4838_v36  ;;  %v4842_v46 = vcombine.low %v6213_v37, %v6212_v2  ;;  %6219 = vst [vmem:[#allocation44_spill] sm:$0xff] %v4846_v51  ;;  %v6224_v37 = vld [vmem:[#allocation40_spill] sm:$0xff] }
  0x74   :  { %1023 = vmatpush1.bf16.msra.mxu1 %v4827_v45  ;;  %v6221_v45 = vld [vmem:[#allocation39_spill] sm:$0xff]  ;;  %v4858_v2 = vcombine.high %v6224_v37, %v6223_v40 }
  0x75   :  { %1000 = vmatmul.mubr.bf16.vlgmr.msra.gmra.mxu0 %v806_v41  ;;  %6214 = vst [vmem:[#allocation45_spill] sm:$0xff] %v4834_v63  ;;  %6218 = vst [vmem:[#allocation46_spill] sm:$0xff] %v4842_v46  ;;  %1209 = vmatprep.subr.bf16.mxu0 %v4834_v63  ;;  %v4854_v47 = vcombine.high %v6221_v45, %v6220_v32  ;;  %v4863_v42 = vcombine.low %v6221_v45, %v6220_v32  ;;  %v6232_v63 = vld [vmem:[#allocation36_spill] sm:$0xff] }
  0x76   :  { %1241 = vmatprep.mubr.bf16.mxu0 %v6156_v20  ;;  %1250 = vmatprep.subr.bf16.mxu1 %v4838_v36  ;;  %6225 = vst [vmem:[#allocation39_spill] sm:$0xff] %v4858_v2  ;;  %v6231_v36 = vld [vmem:[#allocation38_spill] sm:$0xff] }
  0x77   :  { %1041 = vmatmul.mubr.bf16.vlgmr.msra.gmra.mxu1 %v806_v41  ;;  %1210 = vmatpush1.bf16.msra.mxu0 %v4842_v46  ;;  %6222 = vst [vmem:[#allocation41_spill] sm:$0xff] %v4854_v47  ;;  %6226 = vst [vmem:[#allocation42_spill] sm:$0xff] %v4863_v42  ;;  %v4867_v41 = vcombine.low %v6224_v37, %v6223_v40  ;;  %v4879_v45 = vcombine.high %v6232_v63, %v6231_v36  ;;  %v6236_v37 = vld [vmem:[#allocation33_spill] sm:$0xff] }
  0x78   :  { %1251 = vmatpush1.bf16.msra.mxu1 %v4846_v51  ;;  %1282 = vmatprep.mubr.bf16.mxu1 %v6156_v20  ;;  %v6229_v51 = vld [vmem:[#allocation35_spill] sm:$0xff]  ;;  %v4887_v32 = vcombine.low %v6232_v63, %v6231_v36 }
  0x79   :  { %6227 = vst [vmem:[#allocation40_spill] sm:$0xff] %v4867_v41  ;;  %1211 = vmatprep.subr.bf16.mxu0 %v4854_v47  ;;  %1252 = vmatprep.subr.bf16.mxu1 %v4858_v2  ;;  %v4875_v46 = vcombine.high %v6229_v51, %v6228_v43  ;;  %6233 = vst [vmem:[#allocation35_spill] sm:$0xff] %v4879_v45  ;;  %v4883_v40 = vcombine.low %v6229_v51, %v6228_v43  ;;  %v6239_v2 = vld [vmem:[#allocation34_spill] sm:$0xff]  ;;  %v6240_v47 = vld [vmem:[#allocation32_spill] sm:$0xff] }
  0x7a   :  { %6235 = vst [vmem:[#allocation36_spill] sm:$0xff] %v4887_v32  ;;  %v4899_v51 = vcombine.high %v6240_v47, %v6239_v2  ;;  %v4907_v36 = vcombine.low %v6240_v47, %v6239_v2  ;;  %v6244_v43 = vld [vmem:[#allocation29_spill] sm:$0xff] }
  0x7b   :  { %1212 = vmatpush1.bf16.msra.mxu0 %v4863_v42  ;;  %6230 = vst [vmem:[#allocation37_spill] sm:$0xff] %v4875_v46  ;;  %6234 = vst [vmem:[#allocation38_spill] sm:$0xff] %v4883_v40 }
  0x7c   :  { %1253 = vmatpush1.bf16.msra.mxu1 %v4867_v41  ;;  %1213 = vmatprep.subr.bf16.mxu0 %v4875_v46  ;;  %v6237_v41 = vld [vmem:[#allocation31_spill] sm:$0xff]  ;;  %6243 = vst [vmem:[#allocation32_spill] sm:$0xff] %v4907_v36  ;;  %v6248_v46 = vld [vmem:[#allocation28_spill] sm:$0xff] }
  0x7d   :  { %1254 = vmatprep.subr.bf16.mxu1 %v4879_v45  ;;  %v4895_v42 = vcombine.high %v6237_v41, %v6236_v37  ;;  %6241 = vst [vmem:[#allocation31_spill] sm:$0xff] %v4899_v51  ;;  %v4903_v63 = vcombine.low %v6237_v41, %v6236_v37  ;;  %v6247_v45 = vld [vmem:[#allocation30_spill] sm:$0xff]  ;;  %v6252_v37 = vld [vmem:[#allocation25_spill] sm:$0xff] }
  0x7e   :  { %v4919_v41 = vcombine.high %v6248_v46, %v6247_v45  ;;  %v4927_v2 = vcombine.low %v6248_v46, %v6247_v45  ;;  %v6260_v45 = vld [vmem:[#allocation21_spill] sm:$0xff] }
  0x7f   :  { %1214 = vmatpush1.bf16.msra.mxu0 %v4883_v40  ;;  %6238 = vst [vmem:[#allocation33_spill] sm:$0xff] %v4895_v42  ;;  %6242 = vst [vmem:[#allocation34_spill] sm:$0xff] %v4903_v63 }
  0x80   :  { %1255 = vmatpush1.bf16.msra.mxu1 %v4887_v32  ;;  %1215 = vmatprep.subr.bf16.mxu0 %v4895_v42  ;;  %v6245_v32 = vld [vmem:[#allocation27_spill] sm:$0xff]  ;;  %6251 = vst [vmem:[#allocation28_spill] sm:$0xff] %v4927_v2  ;;  %v6256_v42 = vld [vmem:[#allocation24_spill] sm:$0xff] }
  0x81   :  { %1256 = vmatprep.subr.bf16.mxu1 %v4899_v51  ;;  %v4915_v40 = vcombine.high %v6245_v32, %v6244_v43  ;;  %6249 = vst [vmem:[#allocation27_spill] sm:$0xff] %v4919_v41  ;;  %v4923_v47 = vcombine.low %v6245_v32, %v6244_v43  ;;  %v6261_v43 = vld [vmem:[#allocation19_spill] sm:$0xff] }
  0x82   :  { %v4952_v50 = vcombine.high %v6261_v43, %v6260_v45 }
  0x83   :  { %1216 = vmatpush1.bf16.msra.mxu0 %v4903_v63  ;;  %6246 = vst [vmem:[#allocation29_spill] sm:$0xff] %v4915_v40  ;;  %6250 = vst [vmem:[#allocation30_spill] sm:$0xff] %v4923_v47  ;;  %v6253_v63 = vld [vmem:[#allocation23_spill] sm:$0xff] }
  0x84   :  { %1257 = vmatpush1.bf16.msra.mxu1 %v4907_v36  ;;  %v4931_v51 = vcombine.high %v6253_v63, %v6252_v37  ;;  %v6255_v36 = vld [vmem:[#allocation26_spill] sm:$0xff]  ;;  %1217 = vmatprep.subr.bf16.mxu0 %v4915_v40  ;;  %v4942_v32 = vcombine.low %v6253_v63, %v6252_v37  ;;  %6262 = vst [vmem:[#allocation21_spill] sm:$0xff] %v4952_v50  ;;  %v6269_v37 = vld [vmem:[#allocation15_spill] sm:$0xff] }
  0x85   :  { %v4935_v55 = vcombine.high %v6256_v42, %v6255_v36  ;;  %1258 = vmatprep.subr.bf16.mxu1 %v4919_v41  ;;  %v4948_v46 = vcombine.low %v6256_v42, %v6255_v36  ;;  %v6263_v41 = vld [vmem:[#allocation22_spill] sm:$0xff]  ;;  %v4962_v63 = vcombine.low %v6261_v43, %v6260_v45  ;;  %v6268_v36 = vld [vmem:[#allocation17_spill] sm:$0xff] }
  0x86   :  { %6254 = vst [vmem:[#allocation25_spill] sm:$0xff] %v4931_v51  ;;  %6258 = vst [vmem:[#allocation26_spill] sm:$0xff] %v4942_v32  ;;  %v4982_v45 = vcombine.low %v6269_v37, %v6268_v36  ;;  %v533_v43 = vld [vmem:[%s5872_s0] sm:$0xff] }
  0x87   :  { %6257 = vst [vmem:[#allocation23_spill] sm:$0xff] %v4935_v55  ;;  %1218 = vmatpush1.bf16.msra.mxu0 %v4923_v47  ;;  %6259 = vst [vmem:[#allocation24_spill] sm:$0xff] %v4948_v46  ;;  %v6264_v47 = vld [vmem:[#allocation20_spill] sm:$0xff] }
  0x88   :  { %1259 = vmatpush1.bf16.msra.mxu1 %v4927_v2  ;;  %1219 = vmatprep.subr.bf16.mxu0 %v4931_v51  ;;  %v4957_v40 = vcombine.high %v6264_v47, %v6263_v41  ;;  %6266 = vst [vmem:[#allocation22_spill] sm:$0xff] %v4962_v63  ;;  %v4968_v42 = vcombine.low %v6264_v47, %v6263_v41  ;;  %v6271_v51 = vld [vmem:[#allocation18_spill] sm:$0xff]  ;;  %v6276_v47 = vld [vmem:[#allocation52_spill] sm:$0xff] }
  0x89   :  { %1260 = vmatprep.subr.bf16.mxu1 %v4935_v55  ;;  %v4972_v55 = vcombine.high %v6269_v37, %v6268_v36  ;;  %6274 = vst [vmem:[#allocation18_spill] sm:$0xff] %v4982_v45  ;;  %v535_v36 = vunpack.c.l.bf16 %v533_v43  ;;  %v536_v37 = vunpack.c.h.bf16 %v533_v43 }
  0x8a   :  { %6265 = vst [vmem:[#allocation19_spill] sm:$0xff] %v4957_v40  ;;  %6267 = vst [vmem:[#allocation20_spill] sm:$0xff] %v4968_v42 }
  0x8b   :  { %1220 = vmatpush1.bf16.msra.mxu0 %v4942_v32  ;;  %6270 = vst [vmem:[#allocation17_spill] sm:$0xff] %v4972_v55  ;;  %v6272_v32 = vld [vmem:[#allocation16_spill] sm:$0xff] }
  0x8c   :  { %1261 = vmatpush1.bf16.msra.mxu1 %v4948_v46  ;;  %1221 = vmatprep.subr.bf16.mxu0 %v4952_v50  ;;  %v4977_v2 = vcombine.high %v6272_v32, %v6271_v51  ;;  %v4988_v41 = vcombine.low %v6272_v32, %v6271_v51 }
  0x8d   :  { %1262 = vmatprep.subr.bf16.mxu1 %v4957_v40 }
  0x8e   :  { %6273 = vst [vmem:[#allocation15_spill] sm:$0xff] %v4977_v2  ;;  %6275 = vst [vmem:[#allocation16_spill] sm:$0xff] %v4988_v41 }
  0x8f   :  { %1222 = vmatpush1.bf16.msra.mxu0 %v4962_v63 }
  0x90   :  { %1263 = vmatpush1.bf16.msra.mxu1 %v4968_v42  ;;  %1223 = vmatprep.subr.bf16.mxu0 %v4972_v55 }
  0x91   :  { %1264 = vmatprep.subr.bf16.mxu1 %v4977_v2 }
  0x93   :  { %1224 = vmatpush1.bf16.msra.mxu0 %v4982_v45 }
  0x94   :  { %1265 = vmatpush1.bf16.msra.mxu1 %v4988_v41  ;;  %1326 = vmatprep.subr.bf16.mxu0 %v6276_v47 }
  0x95   :  { %1367 = vmatprep.subr.bf16.mxu1 %v4515_v35  ;;  %v534_v35 = vld [vmem:[%s5872_s0 + $0x8] sm:$0xff] }
  0x96   :  { %v538_v49 = vunpack.c.h.bf16 %v534_v35  ;;  %v537_v43 = vunpack.c.l.bf16 %v534_v35 }
 0x115   :  { %v733_v55 = vpop.f32.mrf.mxu0 }
 0x116   :  { %v734_v42 = vadd.f32 %v733_v55, %v535_v36 }
 0x117   :  { %v774_v51 = vpop.f32.mrf.mxu1  ;;  %v735_v32 = vpop.f32.mrf.mxu0 }
 0x118   :  { %v3575_v63 = vmul.f32 -1.442695, %v734_v42  ;;  %v736_v2 = vadd.f32 %v735_v32, %v536_v37  ;;  %v775_v55 = vadd.f32 %v774_v51, %v537_v43  ;;  %v6277_v43 = vld [vmem:[#allocation59_spill] sm:$0xff] }
 0x119   :  { %v776_v40 = vpop.f32.mrf.mxu1  ;;  %v737_v45 = vpop.f32.mrf.mxu0 }
 0x11a   :  { %3708 = vpow2.f32 %v3575_v63  ;;  %v3576_v41 = vmul.f32 -1.442695, %v736_v2  ;;  %v777_v44 = vadd.f32 %v776_v40, %v538_v49 }
 0x11b   :  { %v778_v47 = vpop.f32.mrf.mxu1  ;;  %v738_v50 = vpop.f32.mrf.mxu0 }
 0x11c   :  { %3710 = vpow2.f32 %v3576_v41  ;;  %v3577_v36 = vmul.f32 -1.442695, %v777_v44  ;;  %v404_v50 = vld [vmem:[%s5874_s2] sm:$0xff] }
 0x11d   :  { %v779_v46 = vpop.f32.mrf.mxu1  ;;  %3712 = vtanh.f32 %v775_v55  ;;  %v6278_v55 = vld [vmem:[#allocation76_spill] sm:$0xff] }
 0x11e   :  { %3714 = vpow2.f32 %v3577_v36 }
 0x127   :  { %v3709_v53 = vpop.eup %3708 }
 0x128   :  { %v784_v42 = vadd.f32 1.0, %v3709_v53 }
 0x129   :  { %v3711_v37 = vpop.eup %3710 }
 0x12a   :  { %3716 = vrcp.f32 %v784_v42  ;;  %v790_v2 = vadd.f32 1.0, %v3711_v37  ;;  %v3713_v63 = vpop.eup %3712 }
 0x12b   :  { %v3715_v45 = vpop.eup %3714 }
 0x12c   :  { %3718 = vrcp.f32 %v790_v2  ;;  %v797_v35 = vadd.f32 1.0, %v3715_v45 }
 0x12e   :  { %3720 = vrcp.f32 %v797_v35  ;;  %v6280_v35 = vld [vmem:[#allocation100_spill] sm:$0xff] }
 0x135   :  { %v1001_v36 = vpop.f32.mrf.mxu0 }
 0x137   :  { %v3717_v32 = vpop.eup %3716  ;;  %v1003_v42 = vpop.f32.mrf.mxu0 }
 0x138   :  { %v801_v40 = vmul.f32 %v3717_v32, %v3713_v63  ;;  %v5041_v2 = vpop.f32.mrf.mxu1 }
 0x139   :  { %v3719_v46 = vpop.eup %3718  ;;  %v1005_v37 = vpop.f32.mrf.mxu0 }
 0x13a   :  { %v800_v49 = vmul.f32 %v3719_v46, %v404_v50  ;;  %v1044_v45 = vpop.f32.mrf.mxu1  ;;  %v6279_v46 = vld [vmem:[#allocation95_spill] sm:$0xff] }
 0x13b   :  { %v3721_v53 = vpop.eup %3720  ;;  %v1006_v63 = vpop.f32.mrf.mxu0  ;;  %v6287_v37 = vld [vmem:[#allocation103_spill] sm:$0xff] }
 0x13c   :  { %v5004_v44 = vadd.f32 %v801_v40, %v800_v49  ;;  %v1046_v32 = vpop.f32.mrf.mxu1  ;;  %v6281_v49 = vld [vmem:[#allocation97_spill] sm:$0xff]  ;;  %v6282_v40 = vld [vmem:[#allocation102_spill] sm:$0xff]  ;;  %v6288_v63 = vld [vmem:[#allocation51_spill] sm:$0xff] }
 0x13d   :  { %v6289_v32 = vld [vmem:[#allocation105_spill] sm:$0xff] }
 0x13e   :  { %3722 = vtanh.f32 %v5004_v44  ;;  %v1047_v50 = vpop.f32.mrf.mxu1 }
 0x13f   :  { %v6290_v50 = vld [vmem:[#allocation107_spill] sm:$0xff] }
 0x14b   :  { %v3723_v41 = vpop.eup %3722 }
 0x14c   :  { %v804_v47 = vmul.f32 %v3723_v41, %v3721_v53  ;;  %v6283_v53 = vld [vmem:[#allocation99_spill] sm:$0xff]  ;;  %v6284_v41 = vld [vmem:[#allocation104_spill] sm:$0xff] }
 0x14e   :  { %v805_v51 = vpack.c.bf16 %v804_v47, %v804_v47  ;;  %v6285_v47 = vld [vmem:[#allocation101_spill] sm:$0xff] }
 0x150   :  { %1242 = vmatmul.mubr.bf16.vlgmr.msra.gmra.mxu0 %v805_v51  ;;  %1283 = vmatmul.mubr.bf16.vlgmr.msra.gmra.mxu1 %v805_v51 }
 0x151   :  { %1327 = vmatpush1.bf16.msra.mxu0 %v4507_v39  ;;  %1368 = vmatpush1.bf16.msra.mxu1 %v4520_v33 }
 0x152   :  { %1328 = vmatprep.subr.bf16.mxu0 %v4511_v38  ;;  %1369 = vmatprep.subr.bf16.mxu1 %v4524_v28 }
 0x153   :  { %1358 = vmatprep.mubr.bf16.mxu0 %v6156_v20  ;;  %1399 = vmatprep.mubr.bf16.mxu1 %v6156_v20 }
 0x155   :  { %1329 = vmatpush1.bf16.msra.mxu0 %v4529_v30  ;;  %1370 = vmatpush1.bf16.msra.mxu1 %v4540_v29 }
 0x156   :  { %1330 = vmatprep.subr.bf16.mxu0 %v4535_v34  ;;  %1371 = vmatprep.subr.bf16.mxu1 %v4545_v24 }
 0x159   :  { %1331 = vmatpush1.bf16.msra.mxu0 %v6277_v43  ;;  %1372 = vmatpush1.bf16.msra.mxu1 %v4561_v27 }
 0x15a   :  { %1332 = vmatprep.subr.bf16.mxu0 %v4556_v25  ;;  %1373 = vmatprep.subr.bf16.mxu1 %v4566_v26 }
 0x15d   :  { %1333 = vmatpush1.bf16.msra.mxu0 %v4572_v22  ;;  %1374 = vmatpush1.bf16.msra.mxu1 %v4582_v23 }
 0x15e   :  { %1334 = vmatprep.subr.bf16.mxu0 %v4577_v21  ;;  %1375 = vmatprep.subr.bf16.mxu1 %v4587_v31 }
 0x161   :  { %1335 = vmatpush1.bf16.msra.mxu0 %v4592_v16  ;;  %1376 = vmatpush1.bf16.msra.mxu1 %v4602_v17 }
 0x162   :  { %1336 = vmatprep.subr.bf16.mxu0 %v4597_v18  ;;  %1377 = vmatprep.subr.bf16.mxu1 %v4607_v19 }
 0x165   :  { %1337 = vmatpush1.bf16.msra.mxu0 %v4612_v12  ;;  %1378 = vmatpush1.bf16.msra.mxu1 %v4622_v13 }
 0x166   :  { %1338 = vmatprep.subr.bf16.mxu0 %v4617_v14  ;;  %1379 = vmatprep.subr.bf16.mxu1 %v4627_v15 }
 0x169   :  { %1339 = vmatpush1.bf16.msra.mxu0 %v4632_v8  ;;  %1380 = vmatpush1.bf16.msra.mxu1 %v4642_v9 }
 0x16a   :  { %1340 = vmatprep.subr.bf16.mxu0 %v6278_v55  ;;  %1381 = vmatprep.subr.bf16.mxu1 %v4647_v11 }
 0x16d   :  { %1341 = vmatpush1.bf16.msra.mxu0 %v4652_v4  ;;  %1382 = vmatpush1.bf16.msra.mxu1 %v4661_v5 }
 0x16e   :  { %1434 = vmatprep.subr.bf16.mxu0 %v4665_v7  ;;  %1475 = vmatprep.subr.bf16.mxu1 %v4670_v0 }
 0x170   :  { %1359 = vmatmul.mubr.bf16.vlgmr.msra.gmra.mxu0 %v805_v51  ;;  %1400 = vmatmul.mubr.bf16.vlgmr.msra.gmra.mxu1 %v805_v51  ;;  %v6286_v51 = vld [vmem:[#allocation106_spill] sm:$0xff] }
 0x171   :  { %1435 = vmatpush1.bf16.msra.mxu0 %v4675_v10  ;;  %1476 = vmatpush1.bf16.msra.mxu1 %v4685_v3 }
 0x172   :  { %1436 = vmatprep.subr.bf16.mxu0 %v4681_v1  ;;  %1477 = vmatprep.subr.bf16.mxu1 %v4690_v6 }
 0x173   :  { %1466 = vmatprep.mubr.bf16.mxu0 %v6156_v20  ;;  %1507 = vmatprep.mubr.bf16.mxu1 %v6156_v20 }
 0x175   :  { %1437 = vmatpush1.bf16.msra.mxu0 %v4695_v60  ;;  %1478 = vmatpush1.bf16.msra.mxu1 %v4705_v62 }
 0x176   :  { %1438 = vmatprep.subr.bf16.mxu0 %v4701_v61  ;;  %1479 = vmatprep.subr.bf16.mxu1 %v4724_v58 }
 0x179   :  { %1439 = vmatpush1.bf16.msra.mxu0 %v4713_v56  ;;  %1480 = vmatpush1.bf16.msra.mxu1 %v4732_v52 }
 0x17a   :  { %1440 = vmatprep.subr.bf16.mxu0 %v4720_v57  ;;  %1481 = vmatprep.subr.bf16.mxu1 %v4744_v48 }
 0x17d   :  { %1441 = vmatpush1.bf16.msra.mxu0 %v4728_v59  ;;  %1482 = vmatpush1.bf16.msra.mxu1 %v4752_v54 }
 0x17e   :  { %1442 = vmatprep.subr.bf16.mxu0 %v6279_v46  ;;  %1483 = vmatprep.subr.bf16.mxu1 %v6280_v35  ;;  %v6291_v35 = vld [vmem:[#allocation47_spill] sm:$0xff] }
 0x181   :  { %1443 = vmatpush1.bf16.msra.mxu0 %v6281_v49  ;;  %1484 = vmatpush1.bf16.msra.mxu1 %v6282_v40  ;;  %v6292_v49 = vld [vmem:[#allocation49_spill] sm:$0xff]  ;;  %v6293_v40 = vld [vmem:[#allocation50_spill] sm:$0xff] }
 0x182   :  { %1444 = vmatprep.subr.bf16.mxu0 %v6283_v53  ;;  %1485 = vmatprep.subr.bf16.mxu1 %v6284_v41  ;;  %v6294_v53 = vld [vmem:[#allocation48_spill] sm:$0xff]  ;;  %v6295_v41 = vld [vmem:[#allocation45_spill] sm:$0xff] }
 0x185   :  { %1445 = vmatpush1.bf16.msra.mxu0 %v6285_v47  ;;  %1486 = vmatpush1.bf16.msra.mxu1 %v6286_v51  ;;  %v6296_v47 = vld [vmem:[#allocation43_spill] sm:$0xff]  ;;  %v506_v51 = vlaneseq }
 0x186   :  { %1446 = vmatprep.subr.bf16.mxu0 %v6287_v37  ;;  %1487 = vmatprep.subr.bf16.mxu1 %v6288_v63  ;;  %v504_v63 = vld [vmem:[#allocation5] sm:$0xf] }
 0x187   :  { %v507_v37 = vshrl.u32 %v506_v51, 7 }
 0x189   :  { %1447 = vmatpush1.bf16.msra.mxu0 %v6289_v32  ;;  %1488 = vmatpush1.bf16.msra.mxu1 %v6290_v50  ;;  %v508_v46 = vsub.s32 0, %v507_v37  ;;  %v512_v54 = vsub.s32 1, %v507_v37  ;;  %v520_v56 = vsub.s32 3, %v507_v37 }
 0x18a   :  { %1448 = vmatprep.subr.bf16.mxu0 %v6291_v35  ;;  %1489 = vmatprep.subr.bf16.mxu1 %v6292_v49 }
 0x18b   :  { %v5077_v32 = vrot.slane %v504_v63, %v508_v46  ;;  %v5079_v48 = vrot.slane %v504_v63, %v512_v54  ;;  %v5083_v62 = vrot.slane %v504_v63, %v520_v56  ;;  %v3645_v56 = vld [vmem:[%s5872_s0 + $0x10] sm:$0xff] }
 0x18d   :  { %1449 = vmatpush1.bf16.msra.mxu0 %v6293_v40  ;;  %1490 = vmatpush1.bf16.msra.mxu1 %v6294_v53 }
 0x18e   :  { %1516 = vmatprep.subr.bf16.mxu0 %v6295_v41  ;;  %1557 = vmatprep.subr.bf16.mxu1 %v6296_v47 }
 0x210   :  { %v1243_v50 = vpop.f32.mrf.mxu0  ;;  %v1284_v59 = vpop.f32.mrf.mxu1 }
 0x211   :  { %v1244_v35 = vadd.f32 %v1243_v50, %v1001_v36  ;;  %v516_v36 = vsub.s32 2, %v507_v37 }
 0x212   :  { %v1245_v49 = vpop.f32.mrf.mxu0  ;;  %v1286_v40 = vpop.f32.mrf.mxu1 }
 0x213   :  { %v1291_v53 = vadd.f32 %v1244_v35, %v5077_v32  ;;  %v1246_v57 = vadd.f32 %v1245_v49, %v1003_v42  ;;  %v1287_v54 = vadd.f32 %v1286_v40, %v1044_v45  ;;  %v5086_v60 = vrot.slane %v504_v63, %v516_v36 }
 0x214   :  { %v1247_v41 = vpop.f32.mrf.mxu0  ;;  %v1288_v52 = vpop.f32.mrf.mxu1  ;;  %v1285_v42 = vadd.f32 %v1284_v59, %v5041_v2  ;;  %v1322_v45 = vunpack.c.l.bf16 %v3645_v56  ;;  %v1323_v40 = vunpack.c.h.bf16 %v3645_v56 }
 0x215   :  { %v3642_v47 = vmul.f32 -1.442695, %v1291_v53  ;;  %v1292_v51 = vadd.f32 %v1246_v57, %v5079_v48  ;;  %v1294_v50 = vadd.f32 %v1287_v54, %v5083_v62  ;;  %v405_v54 = vld [vmem:[%s5874_s2 + $0x8] sm:$0xff] }
 0x216   :  { %v1248_v58 = vpop.f32.mrf.mxu0  ;;  %v1289_v61 = vpop.f32.mrf.mxu1  ;;  %v1293_v57 = vadd.f32 %v1285_v42, %v5086_v60 }
 0x217   :  { %3724 = vpow2.f32 %v3642_v47  ;;  %v3643_v46 = vmul.f32 -1.442695, %v1292_v51  ;;  %v3644_v52 = vmul.f32 -1.442695, %v1294_v50 }
 0x219   :  { %3726 = vpow2.f32 %v3643_v46 }
 0x21a   :  { %3728 = vpow2.f32 %v3644_v52 }
 0x224   :  { %v3725_v35 = vpop.eup %3724 }
 0x225   :  { %v1298_v49 = vadd.f32 1.0, %v3725_v35 }
 0x226   :  { %v3727_v58 = vpop.eup %3726 }
 0x227   :  { %3730 = vrcp.f32 %v1298_v49  ;;  %v1304_v61 = vadd.f32 1.0, %v3727_v58  ;;  %v3729_v37 = vpop.eup %3728 }
 0x228   :  { %3732 = vtanh.f32 %v1293_v57  ;;  %v1311_v57 = vadd.f32 1.0, %v3729_v37 }
 0x229   :  { %3734 = vrcp.f32 %v1304_v61 }
 0x230   :  { %v1360_v53 = vpop.f32.mrf.mxu0  ;;  %v1401_v41 = vpop.f32.mrf.mxu1 }
 0x231   :  { %v1361_v59 = vadd.f32 %v1360_v53, %v1322_v45  ;;  %v3646_v45 = vld [vmem:[%s5872_s0 + $0x18] sm:$0xff] }
 0x232   :  { %v1362_v2 = vpop.f32.mrf.mxu0  ;;  %v1403_v47 = vpop.f32.mrf.mxu1 }
 0x233   :  { %v3647_v63 = vmul.f32 -1.442695, %v1361_v59  ;;  %v1363_v51 = vadd.f32 %v1362_v2, %v1323_v40  ;;  %v1325_v40 = vunpack.c.h.bf16 %v3646_v45  ;;  %v1324_v2 = vunpack.c.l.bf16 %v3646_v45  ;;  %v6302_v45 = vld [vmem:[#allocation40_spill] sm:$0xff] }
 0x234   :  { %v3731_v46 = vpop.eup %3730  ;;  %v1364_v36 = vpop.f32.mrf.mxu0 }
 0x235   :  { %v1405_v50 = vpop.f32.mrf.mxu1  ;;  %v3733_v42 = vpop.eup %3732  ;;  %3736 = vpow2.f32 %v3647_v63  ;;  %v3648_v52 = vmul.f32 -1.442695, %v1363_v51  ;;  %v1404_v59 = vadd.f32 %v1403_v47, %v1325_v40  ;;  %v1402_v37 = vadd.f32 %v1401_v41, %v1324_v2  ;;  %v6298_v47 = vld [vmem:[#allocation44_spill] sm:$0xff]  ;;  %v6300_v41 = vld [vmem:[#allocation39_spill] sm:$0xff] }
 0x236   :  { %v3735_v35 = vpop.eup %3734  ;;  %v1365_v49 = vpop.f32.mrf.mxu0  ;;  %v1315_v61 = vmul.f32 %v3733_v42, %v3731_v46  ;;  %v6304_v2 = vld [vmem:[#allocation35_spill] sm:$0xff] }
 0x237   :  { %v1406_v58 = vpop.f32.mrf.mxu1  ;;  %v1314_v56 = vmul.f32 %v3735_v35, %v405_v54  ;;  %3738 = vpow2.f32 %v3648_v52  ;;  %v3649_v63 = vmul.f32 -1.442695, %v1404_v59  ;;  %v6299_v49 = vld [vmem:[#allocation41_spill] sm:$0xff] }
 0x238   :  { %3740 = vrcp.f32 %v1311_v57  ;;  %v6297_v57 = vld [vmem:[#allocation46_spill] sm:$0xff]  ;;  %v6303_v59 = vld [vmem:[#allocation37_spill] sm:$0xff] }
 0x239   :  { %v5099_v53 = vadd.f32 %v1315_v61, %v1314_v56  ;;  %v6301_v56 = vld [vmem:[#allocation42_spill] sm:$0xff] }
 0x23b   :  { %3742 = vtanh.f32 %v5099_v53 }
 0x23c   :  { %3744 = vpow2.f32 %v3649_v63 }
 0x242   :  { %v3737_v51 = vpop.eup %3736 }
 0x243   :  { %v1411_v36 = vadd.f32 1.0, %v3737_v51 }
 0x244   :  { %v3739_v50 = vpop.eup %3738 }
 0x245   :  { %3746 = vrcp.f32 %v1411_v36  ;;  %v1417_v46 = vadd.f32 1.0, %v3739_v50  ;;  %v3741_v54 = vpop.eup %3740  ;;  %v6305_v50 = vld [vmem:[#allocation38_spill] sm:$0xff] }
 0x246   :  { %3748 = vtanh.f32 %v1402_v37 }
 0x247   :  { %3750 = vrcp.f32 %v1417_v46  ;;  %v6306_v46 = vld [vmem:[#allocation36_spill] sm:$0xff] }
 0x248   :  { %v3743_v42 = vpop.eup %3742 }
 0x249   :  { %v1318_v52 = vmul.f32 %v3743_v42, %v3741_v54  ;;  %v3745_v58 = vpop.eup %3744  ;;  %v6307_v42 = vld [vmem:[#allocation33_spill] sm:$0xff] }
 0x24a   :  { %v1424_v51 = vadd.f32 1.0, %v3745_v58  ;;  %v6311_v58 = vld [vmem:[#allocation29_spill] sm:$0xff] }
 0x24b   :  { %v1433_v35 = vpack.c.bf16 %v1318_v52, %v1318_v52  ;;  %v6308_v52 = vld [vmem:[#allocation31_spill] sm:$0xff] }
 0x24c   :  { %3752 = vrcp.f32 %v1424_v51  ;;  %v6318_v51 = vld [vmem:[#allocation24_spill] sm:$0xff] }
 0x24d   :  { %1467 = vmatmul.mubr.bf16.vlgmr.msra.gmra.mxu0 %v1433_v35  ;;  %1508 = vmatmul.mubr.bf16.vlgmr.msra.gmra.mxu1 %v1433_v35  ;;  %v6309_v35 = vld [vmem:[#allocation34_spill] sm:$0xff] }
 0x24e   :  { %1517 = vmatpush1.bf16.msra.mxu0 %v6297_v57  ;;  %1558 = vmatpush1.bf16.msra.mxu1 %v6298_v47 }
 0x24f   :  { %1518 = vmatprep.subr.bf16.mxu0 %v6299_v49  ;;  %1559 = vmatprep.subr.bf16.mxu1 %v6300_v41 }
 0x250   :  { %1548 = vmatprep.mubr.bf16.mxu0 %v6156_v20  ;;  %1589 = vmatprep.mubr.bf16.mxu1 %v6156_v20 }
 0x252   :  { %v3747_v61 = vpop.eup %3746  ;;  %1519 = vmatpush1.bf16.msra.mxu0 %v6301_v56  ;;  %1560 = vmatpush1.bf16.msra.mxu1 %v6302_v45 }
 0x253   :  { %v3749_v40 = vpop.eup %3748  ;;  %1520 = vmatprep.subr.bf16.mxu0 %v6303_v59  ;;  %1561 = vmatprep.subr.bf16.mxu1 %v6304_v2  ;;  %v6310_v2 = vld [vmem:[#allocation32_spill] sm:$0xff] }
 0x254   :  { %v3751_v63 = vpop.eup %3750  ;;  %v1428_v37 = vmul.f32 %v3749_v40, %v3747_v61  ;;  %v6313_v61 = vld [vmem:[#allocation30_spill] sm:$0xff]  ;;  %v6314_v40 = vld [vmem:[#allocation28_spill] sm:$0xff] }
 0x255   :  { %v1427_v36 = vmul.f32 %v3751_v63, %v5004_v44  ;;  %v6312_v44 = vld [vmem:[#allocation27_spill] sm:$0xff]  ;;  %v6315_v63 = vld [vmem:[#allocation25_spill] sm:$0xff] }
 0x256   :  { %1521 = vmatpush1.bf16.msra.mxu0 %v6305_v50  ;;  %1562 = vmatpush1.bf16.msra.mxu1 %v6306_v46  ;;  %v6327_v46 = vld [vmem:[#allocation52_spill] sm:$0xff] }
 0x257   :  { %v5115_v54 = vadd.f32 %v1428_v37, %v1427_v36  ;;  %1522 = vmatprep.subr.bf16.mxu0 %v6307_v42  ;;  %1563 = vmatprep.subr.bf16.mxu1 %v6308_v52  ;;  %v6316_v37 = vld [vmem:[#allocation23_spill] sm:$0xff]  ;;  %v6317_v36 = vld [vmem:[#allocation26_spill] sm:$0xff]  ;;  %v6319_v52 = vld [vmem:[#allocation21_spill] sm:$0xff] }
 0x258   :  { %v6321_v42 = vld [vmem:[#allocation22_spill] sm:$0xff] }
 0x259   :  { %3754 = vtanh.f32 %v5115_v54 }
 0x25a   :  { %1523 = vmatpush1.bf16.msra.mxu0 %v6309_v35  ;;  %1564 = vmatpush1.bf16.msra.mxu1 %v6310_v2  ;;  %v6320_v35 = vld [vmem:[#allocation19_spill] sm:$0xff]  ;;  %v3753_v2 = vpop.eup %3752 }
 0x25b   :  { %1524 = vmatprep.subr.bf16.mxu0 %v6311_v58  ;;  %1565 = vmatprep.subr.bf16.mxu1 %v6312_v44  ;;  %v6322_v44 = vld [vmem:[#allocation20_spill] sm:$0xff] }
 0x25e   :  { %1525 = vmatpush1.bf16.msra.mxu0 %v6313_v61  ;;  %1566 = vmatpush1.bf16.msra.mxu1 %v6314_v40  ;;  %v6323_v61 = vld [vmem:[#allocation17_spill] sm:$0xff]  ;;  %v6324_v40 = vld [vmem:[#allocation15_spill] sm:$0xff] }
 0x25f   :  { %1526 = vmatprep.subr.bf16.mxu0 %v6315_v63  ;;  %1567 = vmatprep.subr.bf16.mxu1 %v6316_v37  ;;  %v6325_v37 = vld [vmem:[#allocation18_spill] sm:$0xff] }
 0x262   :  { %1527 = vmatpush1.bf16.msra.mxu0 %v6317_v36  ;;  %1568 = vmatpush1.bf16.msra.mxu1 %v6318_v51  ;;  %v6326_v36 = vld [vmem:[#allocation16_spill] sm:$0xff] }
 0x263   :  { %1528 = vmatprep.subr.bf16.mxu0 %v6319_v52  ;;  %1569 = vmatprep.subr.bf16.mxu1 %v6320_v35  ;;  %v6328_v52 = vld [vmem:[#allocation53_spill] sm:$0xff] }
 0x266   :  { %v3755_v58 = vpop.eup %3754  ;;  %1529 = vmatpush1.bf16.msra.mxu0 %v6321_v42  ;;  %1570 = vmatpush1.bf16.msra.mxu1 %v6322_v44 }
 0x267   :  { %1530 = vmatprep.subr.bf16.mxu0 %v6323_v61  ;;  %1571 = vmatprep.subr.bf16.mxu1 %v6324_v40  ;;  %v1431_v63 = vmul.f32 %v3755_v58, %v3753_v2  ;;  %v6329_v2 = vld [vmem:[#allocation87_spill] sm:$0xff]  ;;  %v6330_v58 = vld [vmem:[#allocation89_spill] sm:$0xff] }
 0x269   :  { %v1432_v51 = vpack.c.bf16 %v1431_v63, %v1431_v63  ;;  %v6331_v63 = vld [vmem:[#allocation88_spill] sm:$0xff] }
 0x26a   :  { %1531 = vmatpush1.bf16.msra.mxu0 %v6325_v37  ;;  %1572 = vmatpush1.bf16.msra.mxu1 %v6326_v36 }
 0x26b   :  { %1633 = vmatprep.subr.bf16.mxu0 %v6327_v46  ;;  %1674 = vmatprep.subr.bf16.mxu1 %v6328_v52 }
 0x26d   :  { %1549 = vmatmul.mubr.bf16.vlgmr.msra.gmra.mxu0 %v1432_v51  ;;  %1590 = vmatmul.mubr.bf16.vlgmr.msra.gmra.mxu1 %v1432_v51 }
 0x26e   :  { %1634 = vmatpush1.bf16.msra.mxu0 %v4507_v39  ;;  %1675 = vmatpush1.bf16.msra.mxu1 %v4520_v33 }
 0x26f   :  { %1635 = vmatprep.subr.bf16.mxu0 %v4511_v38  ;;  %1676 = vmatprep.subr.bf16.mxu1 %v4524_v28 }
 0x270   :  { %1665 = vmatprep.mubr.bf16.mxu0 %v6156_v20  ;;  %1706 = vmatprep.mubr.bf16.mxu1 %v6156_v20 }
 0x272   :  { %1636 = vmatpush1.bf16.msra.mxu0 %v4529_v30  ;;  %1677 = vmatpush1.bf16.msra.mxu1 %v4540_v29 }
 0x273   :  { %1637 = vmatprep.subr.bf16.mxu0 %v4535_v34  ;;  %1678 = vmatprep.subr.bf16.mxu1 %v4545_v24 }
 0x276   :  { %1638 = vmatpush1.bf16.msra.mxu0 %v6277_v43  ;;  %1679 = vmatpush1.bf16.msra.mxu1 %v4561_v27 }
 0x277   :  { %1639 = vmatprep.subr.bf16.mxu0 %v4556_v25  ;;  %1680 = vmatprep.subr.bf16.mxu1 %v4566_v26 }
 0x27a   :  { %1640 = vmatpush1.bf16.msra.mxu0 %v4572_v22  ;;  %1681 = vmatpush1.bf16.msra.mxu1 %v4582_v23 }
 0x27b   :  { %1641 = vmatprep.subr.bf16.mxu0 %v4577_v21  ;;  %1682 = vmatprep.subr.bf16.mxu1 %v4587_v31 }
 0x27e   :  { %1642 = vmatpush1.bf16.msra.mxu0 %v4592_v16  ;;  %1683 = vmatpush1.bf16.msra.mxu1 %v4602_v17 }
 0x27f   :  { %1643 = vmatprep.subr.bf16.mxu0 %v4597_v18  ;;  %1684 = vmatprep.subr.bf16.mxu1 %v4607_v19 }
 0x282   :  { %1644 = vmatpush1.bf16.msra.mxu0 %v4612_v12  ;;  %1685 = vmatpush1.bf16.msra.mxu1 %v4622_v13 }
 0x283   :  { %1645 = vmatprep.subr.bf16.mxu0 %v4617_v14  ;;  %1686 = vmatprep.subr.bf16.mxu1 %v4627_v15 }
 0x286   :  { %1646 = vmatpush1.bf16.msra.mxu0 %v4632_v8  ;;  %1687 = vmatpush1.bf16.msra.mxu1 %v4642_v9 }
 0x287   :  { %1647 = vmatprep.subr.bf16.mxu0 %v6278_v55  ;;  %1688 = vmatprep.subr.bf16.mxu1 %v4647_v11 }
 0x28a   :  { %1648 = vmatpush1.bf16.msra.mxu0 %v4652_v4  ;;  %1689 = vmatpush1.bf16.msra.mxu1 %v4661_v5  ;;  %v6339_v5 = vld [vmem:[#allocation95_spill] sm:$0xff] }
 0x28b   :  { %1741 = vmatprep.subr.bf16.mxu0 %v4665_v7  ;;  %1782 = vmatprep.subr.bf16.mxu1 %v4670_v0  ;;  %v6332_v0 = vld [vmem:[#allocation92_spill] sm:$0xff]  ;;  %v6338_v7 = vld [vmem:[#allocation98_spill] sm:$0xff] }
 0x28d   :  { %1666 = vmatmul.mubr.bf16.vlgmr.msra.gmra.mxu0 %v1432_v51  ;;  %1707 = vmatmul.mubr.bf16.vlgmr.msra.gmra.mxu1 %v1432_v51  ;;  %v6333_v51 = vld [vmem:[#allocation90_spill] sm:$0xff] }
 0x28e   :  { %1742 = vmatpush1.bf16.msra.mxu0 %v4675_v10  ;;  %1783 = vmatpush1.bf16.msra.mxu1 %v4685_v3  ;;  %v6334_v10 = vld [vmem:[#allocation94_spill] sm:$0xff]  ;;  %v6335_v3 = vld [vmem:[#allocation91_spill] sm:$0xff] }
 0x28f   :  { %1743 = vmatprep.subr.bf16.mxu0 %v4681_v1  ;;  %1784 = vmatprep.subr.bf16.mxu1 %v4690_v6  ;;  %v6336_v1 = vld [vmem:[#allocation96_spill] sm:$0xff]  ;;  %v6337_v6 = vld [vmem:[#allocation93_spill] sm:$0xff] }
 0x290   :  { %1773 = vmatprep.mubr.bf16.mxu0 %v6156_v20  ;;  %1814 = vmatprep.mubr.bf16.mxu1 %v6156_v20 }
 0x292   :  { %1744 = vmatpush1.bf16.msra.mxu0 %v6329_v2  ;;  %1785 = vmatpush1.bf16.msra.mxu1 %v6330_v58  ;;  %v6340_v2 = vld [vmem:[#allocation100_spill] sm:$0xff]  ;;  %v6341_v58 = vld [vmem:[#allocation97_spill] sm:$0xff] }
 0x293   :  { %1745 = vmatprep.subr.bf16.mxu0 %v6331_v63  ;;  %1786 = vmatprep.subr.bf16.mxu1 %v6332_v0  ;;  %v6342_v63 = vld [vmem:[#allocation102_spill] sm:$0xff]  ;;  %v6343_v0 = vld [vmem:[#allocation99_spill] sm:$0xff] }
 0x296   :  { %1746 = vmatpush1.bf16.msra.mxu0 %v6333_v51  ;;  %1787 = vmatpush1.bf16.msra.mxu1 %v6334_v10  ;;  %v6344_v51 = vld [vmem:[#allocation104_spill] sm:$0xff]  ;;  %v6345_v10 = vld [vmem:[#allocation101_spill] sm:$0xff] }
 0x297   :  { %1747 = vmatprep.subr.bf16.mxu0 %v6335_v3  ;;  %1788 = vmatprep.subr.bf16.mxu1 %v6336_v1  ;;  %v6346_v3 = vld [vmem:[#allocation106_spill] sm:$0xff]  ;;  %v6347_v1 = vld [vmem:[#allocation103_spill] sm:$0xff] }
 0x29a   :  { %1748 = vmatpush1.bf16.msra.mxu0 %v6337_v6  ;;  %1789 = vmatpush1.bf16.msra.mxu1 %v6338_v7  ;;  %v6348_v6 = vld [vmem:[#allocation51_spill] sm:$0xff]  ;;  %v6349_v7 = vld [vmem:[#allocation105_spill] sm:$0xff] }
 0x29b   :  { %1749 = vmatprep.subr.bf16.mxu0 %v6339_v5  ;;  %1790 = vmatprep.subr.bf16.mxu1 %v6340_v2  ;;  %v6350_v5 = vld [vmem:[#allocation107_spill] sm:$0xff] }
 0x29c   :  { %v6351_v2 = vld [vmem:[#allocation47_spill] sm:$0xff] }
 0x29e   :  { %1750 = vmatpush1.bf16.msra.mxu0 %v6341_v58  ;;  %1791 = vmatpush1.bf16.msra.mxu1 %v6342_v63  ;;  %v6352_v58 = vld [vmem:[#allocation49_spill] sm:$0xff]  ;;  %v6353_v63 = vld [vmem:[#allocation50_spill] sm:$0xff] }
 0x29f   :  { %1751 = vmatprep.subr.bf16.mxu0 %v6343_v0  ;;  %1792 = vmatprep.subr.bf16.mxu1 %v6344_v51  ;;  %v6354_v0 = vld [vmem:[#allocation48_spill] sm:$0xff]  ;;  %v6355_v51 = vld [vmem:[#allocation45_spill] sm:$0xff] }
 0x2a2   :  { %1752 = vmatpush1.bf16.msra.mxu0 %v6345_v10  ;;  %1793 = vmatpush1.bf16.msra.mxu1 %v6346_v3  ;;  %v6356_v10 = vld [vmem:[#allocation43_spill] sm:$0xff] }
 0x2a3   :  { %1753 = vmatprep.subr.bf16.mxu0 %v6347_v1  ;;  %1794 = vmatprep.subr.bf16.mxu1 %v6348_v6 }
 0x2a6   :  { %1754 = vmatpush1.bf16.msra.mxu0 %v6349_v7  ;;  %1795 = vmatpush1.bf16.msra.mxu1 %v6350_v5 }
 0x2a7   :  { %1755 = vmatprep.subr.bf16.mxu0 %v6351_v2  ;;  %1796 = vmatprep.subr.bf16.mxu1 %v6352_v58 }
 0x2aa   :  { %1756 = vmatpush1.bf16.msra.mxu0 %v6353_v63  ;;  %1797 = vmatpush1.bf16.msra.mxu1 %v6354_v0 }
 0x2ab   :  { %1823 = vmatprep.subr.bf16.mxu0 %v6355_v51  ;;  %1864 = vmatprep.subr.bf16.mxu1 %v6356_v10 }
 0x30d   :  { %v1468_v3 = vpop.f32.mrf.mxu0  ;;  %v1509_v1 = vpop.f32.mrf.mxu1 }
 0x30f   :  { %v1470_v4 = vpop.f32.mrf.mxu0  ;;  %v1511_v6 = vpop.f32.mrf.mxu1 }
 0x311   :  { %v1472_v11 = vpop.f32.mrf.mxu0  ;;  %v1513_v7 = vpop.f32.mrf.mxu1 }
 0x313   :  { %v1473_v55 = vpop.f32.mrf.mxu0  ;;  %v1514_v5 = vpop.f32.mrf.mxu1 }
 0x32d   :  { %v1550_v9 = vpop.f32.mrf.mxu0  ;;  %v1591_v2 = vpop.f32.mrf.mxu1 }
 0x32e   :  { %v1551_v8 = vadd.f32 %v1550_v9, %v1468_v3  ;;  %v1592_v55 = vadd.f32 %v1591_v2, %v1509_v1 }
 0x32f   :  { %v1552_v58 = vpop.f32.mrf.mxu0  ;;  %v1593_v15 = vpop.f32.mrf.mxu1 }
 0x330   :  { %v1598_v63 = vadd.f32 %v1551_v8, %v5077_v32  ;;  %v1553_v0 = vadd.f32 %v1552_v58, %v1470_v4  ;;  %v1594_v7 = vadd.f32 %v1593_v15, %v1511_v6  ;;  %v1600_v18 = vadd.f32 %v1592_v55, %v5086_v60 }
 0x331   :  { %v1554_v14 = vpop.f32.mrf.mxu0  ;;  %v1595_v51 = vpop.f32.mrf.mxu1 }
 0x332   :  { %v3650_v13 = vmul.f32 -1.442695, %v1598_v63  ;;  %v1599_v10 = vadd.f32 %v1553_v0, %v5079_v48  ;;  %v1601_v5 = vadd.f32 %v1594_v7, %v5083_v62 }
 0x333   :  { %v1555_v12 = vpop.f32.mrf.mxu0  ;;  %v1596_v19 = vpop.f32.mrf.mxu1 }
 0x334   :  { %3756 = vpow2.f32 %v3650_v13  ;;  %v3651_v11 = vmul.f32 -1.442695, %v1599_v10  ;;  %v3652_v9 = vmul.f32 -1.442695, %v1601_v5  ;;  %v3653_v19 = vld [vmem:[%s5872_s0 + $0x20] sm:$0xff] }
 0x335   :  { %v1629_v12 = vunpack.c.l.bf16 %v3653_v19  ;;  %v1630_v13 = vunpack.c.h.bf16 %v3653_v19  ;;  %v3654_v19 = vld [vmem:[%s5872_s0 + $0x28] sm:$0xff] }
 0x336   :  { %3758 = vpow2.f32 %v3651_v11 }
 0x337   :  { %3760 = vpow2.f32 %v3652_v9 }
 0x341   :  { %v3757_v3 = vpop.eup %3756 }
 0x342   :  { %v1605_v8 = vadd.f32 1.0, %v3757_v3 }
 0x343   :  { %v3759_v4 = vpop.eup %3758 }
 0x344   :  { %3762 = vrcp.f32 %v1605_v8  ;;  %v1611_v14 = vadd.f32 1.0, %v3759_v4  ;;  %v3761_v2 = vpop.eup %3760 }
 0x345   :  { %3764 = vtanh.f32 %v1600_v18  ;;  %v1618_v9 = vadd.f32 1.0, %v3761_v2 }
 0x346   :  { %3766 = vrcp.f32 %v1611_v14 }
 0x34d   :  { %v1667_v15 = vpop.f32.mrf.mxu0  ;;  %v1708_v10 = vpop.f32.mrf.mxu1 }
 0x34e   :  { %v1668_v0 = vadd.f32 %v1667_v15, %v1629_v12  ;;  %v1632_v12 = vunpack.c.h.bf16 %v3654_v19 }
 0x34f   :  { %v1669_v1 = vpop.f32.mrf.mxu0  ;;  %v1710_v6 = vpop.f32.mrf.mxu1 }
 0x350   :  { %v3655_v58 = vmul.f32 -1.442695, %v1668_v0  ;;  %v1670_v63 = vadd.f32 %v1669_v1, %v1630_v13  ;;  %v1711_v15 = vadd.f32 %v1710_v6, %v1632_v12  ;;  %v1631_v0 = vunpack.c.l.bf16 %v3654_v19  ;;  %v6358_v19 = vld [vmem:[#allocation36_spill] sm:$0xff] }
 0x351   :  { %v3763_v51 = vpop.eup %3762  ;;  %v1671_v11 = vpop.f32.mrf.mxu0 }
 0x352   :  { %v1712_v7 = vpop.f32.mrf.mxu1  ;;  %v3765_v5 = vpop.eup %3764  ;;  %3768 = vpow2.f32 %v3655_v58  ;;  %v3656_v18 = vmul.f32 -1.442695, %v1670_v63  ;;  %v3657_v1 = vmul.f32 -1.442695, %v1711_v15  ;;  %v1709_v58 = vadd.f32 %v1708_v10, %v1631_v0  ;;  %v6359_v15 = vld [vmem:[#allocation33_spill] sm:$0xff]  ;;  %v6360_v0 = vld [vmem:[#allocation31_spill] sm:$0xff] }
 0x353   :  { %v3767_v55 = vpop.eup %3766  ;;  %v1672_v3 = vpop.f32.mrf.mxu0  ;;  %v1622_v4 = vmul.f32 %v3765_v5, %v3763_v51 }
 0x354   :  { %v1713_v8 = vpop.f32.mrf.mxu1  ;;  %v1621_v14 = vmul.f32 %v3767_v55, %v5099_v53  ;;  %3770 = vpow2.f32 %v3656_v18 }
 0x355   :  { %3772 = vrcp.f32 %v1618_v9  ;;  %v6357_v9 = vld [vmem:[#allocation35_spill] sm:$0xff] }
 0x356   :  { %v5219_v13 = vadd.f32 %v1622_v4, %v1621_v14 }
 0x358   :  { %3774 = vtanh.f32 %v5219_v13 }
 0x359   :  { %3776 = vpow2.f32 %v3657_v1  ;;  %v6361_v1 = vld [vmem:[#allocation34_spill] sm:$0xff] }
 0x35f   :  { %v3769_v2 = vpop.eup %3768 }
 0x360   :  { %v1718_v63 = vadd.f32 1.0, %v3769_v2  ;;  %v6362_v2 = vld [vmem:[#allocation32_spill] sm:$0xff] }
 0x361   :  { %v3771_v51 = vpop.eup %3770 }
 0x362   :  { %3778 = vrcp.f32 %v1718_v63  ;;  %v1724_v53 = vadd.f32 1.0, %v3771_v51  ;;  %v3773_v11 = vpop.eup %3772  ;;  %v6365_v63 = vld [vmem:[#allocation30_spill] sm:$0xff]  ;;  %v6366_v51 = vld [vmem:[#allocation28_spill] sm:$0xff] }
 0x363   :  { %3780 = vtanh.f32 %v1709_v58  ;;  %v6363_v58 = vld [vmem:[#allocation29_spill] sm:$0xff] }
 0x364   :  { %3782 = vrcp.f32 %v1724_v53  ;;  %v6367_v53 = vld [vmem:[#allocation25_spill] sm:$0xff] }
 0x365   :  { %v3775_v7 = vpop.eup %3774 }
 0x366   :  { %v1625_v5 = vmul.f32 %v3775_v7, %v3773_v11  ;;  %v3777_v10 = vpop.eup %3776  ;;  %v6368_v11 = vld [vmem:[#allocation23_spill] sm:$0xff]  ;;  %v6369_v7 = vld [vmem:[#allocation26_spill] sm:$0xff] }
 0x367   :  { %v1731_v8 = vadd.f32 1.0, %v3777_v10 }
 0x368   :  { %v1740_v18 = vpack.c.bf16 %v1625_v5, %v1625_v5  ;;  %v6370_v5 = vld [vmem:[#allocation24_spill] sm:$0xff] }
 0x369   :  { %3784 = vrcp.f32 %v1731_v8  ;;  %v6372_v8 = vld [vmem:[#allocation68_spill] sm:$0xff] }
 0x36a   :  { %1774 = vmatmul.mubr.bf16.vlgmr.msra.gmra.mxu0 %v1740_v18  ;;  %1815 = vmatmul.mubr.bf16.vlgmr.msra.gmra.mxu1 %v1740_v18  ;;  %v6371_v18 = vld [vmem:[#allocation21_spill] sm:$0xff] }
 0x36b   :  { %1824 = vmatpush1.bf16.msra.mxu0 %v6297_v57  ;;  %1865 = vmatpush1.bf16.msra.mxu1 %v6298_v47 }
 0x36c   :  { %1825 = vmatprep.subr.bf16.mxu0 %v6299_v49  ;;  %1866 = vmatprep.subr.bf16.mxu1 %v6300_v41 }
 0x36d   :  { %1855 = vmatprep.mubr.bf16.mxu0 %v6156_v20  ;;  %1896 = vmatprep.mubr.bf16.mxu1 %v6156_v20 }
 0x36f   :  { %v3779_v6 = vpop.eup %3778  ;;  %1826 = vmatpush1.bf16.msra.mxu0 %v6301_v56  ;;  %1867 = vmatpush1.bf16.msra.mxu1 %v6302_v45 }
 0x370   :  { %v3781_v55 = vpop.eup %3780  ;;  %1827 = vmatprep.subr.bf16.mxu0 %v6303_v59  ;;  %1868 = vmatprep.subr.bf16.mxu1 %v6357_v9 }
 0x371   :  { %v3783_v3 = vpop.eup %3782  ;;  %v1735_v4 = vmul.f32 %v3781_v55, %v3779_v6 }
 0x372   :  { %v1734_v14 = vmul.f32 %v3783_v3, %v5115_v54  ;;  %v6364_v54 = vld [vmem:[#allocation27_spill] sm:$0xff] }
 0x373   :  { %1828 = vmatpush1.bf16.msra.mxu0 %v6305_v50  ;;  %1869 = vmatpush1.bf16.msra.mxu1 %v6358_v19 }
 0x374   :  { %v5235_v12 = vadd.f32 %v1735_v4, %v1734_v14  ;;  %1829 = vmatprep.subr.bf16.mxu0 %v6359_v15  ;;  %1870 = vmatprep.subr.bf16.mxu1 %v6360_v0  ;;  %v6373_v4 = vld [vmem:[#allocation70_spill] sm:$0xff]  ;;  %v6374_v14 = vld [vmem:[#allocation71_spill] sm:$0xff] }
 0x376   :  { %3786 = vtanh.f32 %v5235_v12  ;;  %v3785_v10 = vpop.eup %3784 }
 0x377   :  { %1830 = vmatpush1.bf16.msra.mxu0 %v6361_v1  ;;  %1871 = vmatpush1.bf16.msra.mxu1 %v6362_v2 }
 0x378   :  { %1831 = vmatprep.subr.bf16.mxu0 %v6363_v58  ;;  %1872 = vmatprep.subr.bf16.mxu1 %v6364_v54 }
 0x37b   :  { %1832 = vmatpush1.bf16.msra.mxu0 %v6365_v63  ;;  %1873 = vmatpush1.bf16.msra.mxu1 %v6366_v51 }
 0x37c   :  { %1833 = vmatprep.subr.bf16.mxu0 %v6367_v53  ;;  %1874 = vmatprep.subr.bf16.mxu1 %v6368_v11 }
 0x37f   :  { %1834 = vmatpush1.bf16.msra.mxu0 %v6369_v7  ;;  %1875 = vmatpush1.bf16.msra.mxu1 %v6370_v5 }
 0x380   :  { %1835 = vmatprep.subr.bf16.mxu0 %v6371_v18  ;;  %1876 = vmatprep.subr.bf16.mxu1 %v6320_v35 }
 0x383   :  { %v3787_v6 = vpop.eup %3786  ;;  %1836 = vmatpush1.bf16.msra.mxu0 %v6321_v42  ;;  %1877 = vmatpush1.bf16.msra.mxu1 %v6322_v44 }
 0x384   :  { %1837 = vmatprep.subr.bf16.mxu0 %v6323_v61  ;;  %1878 = vmatprep.subr.bf16.mxu1 %v6324_v40  ;;  %v1738_v55 = vmul.f32 %v3787_v6, %v3785_v10  ;;  %v6375_v10 = vld [vmem:[#allocation73_spill] sm:$0xff]  ;;  %v6376_v6 = vld [vmem:[#allocation72_spill] sm:$0xff] }
 0x386   :  { %v1739_v3 = vpack.c.bf16 %v1738_v55, %v1738_v55  ;;  %v6377_v55 = vld [vmem:[#allocation74_spill] sm:$0xff] }
 0x387   :  { %1838 = vmatpush1.bf16.msra.mxu0 %v6325_v37  ;;  %1879 = vmatpush1.bf16.msra.mxu1 %v6326_v36 }
 0x388   :  { %1940 = vmatprep.subr.bf16.mxu0 %v6327_v46  ;;  %1981 = vmatprep.subr.bf16.mxu1 %v6328_v52 }
 0x38a   :  { %1856 = vmatmul.mubr.bf16.vlgmr.msra.gmra.mxu0 %v1739_v3  ;;  %1897 = vmatmul.mubr.bf16.vlgmr.msra.gmra.mxu1 %v1739_v3 }
 0x38b   :  { %1941 = vmatpush1.bf16.msra.mxu0 %v4507_v39  ;;  %1982 = vmatpush1.bf16.msra.mxu1 %v4520_v33 }
 0x38c   :  { %1942 = vmatprep.subr.bf16.mxu0 %v4511_v38  ;;  %1983 = vmatprep.subr.bf16.mxu1 %v4524_v28 }
 0x38d   :  { %1972 = vmatprep.mubr.bf16.mxu0 %v6156_v20  ;;  %2013 = vmatprep.mubr.bf16.mxu1 %v6156_v20 }
 0x38f   :  { %1943 = vmatpush1.bf16.msra.mxu0 %v4529_v30  ;;  %1984 = vmatpush1.bf16.msra.mxu1 %v4540_v29 }
 0x390   :  { %1944 = vmatprep.subr.bf16.mxu0 %v4535_v34  ;;  %1985 = vmatprep.subr.bf16.mxu1 %v4545_v24 }
 0x393   :  { %1945 = vmatpush1.bf16.msra.mxu0 %v6277_v43  ;;  %1986 = vmatpush1.bf16.msra.mxu1 %v4561_v27 }
 0x394   :  { %1946 = vmatprep.subr.bf16.mxu0 %v4556_v25  ;;  %1987 = vmatprep.subr.bf16.mxu1 %v4566_v26 }
 0x397   :  { %1947 = vmatpush1.bf16.msra.mxu0 %v4572_v22  ;;  %1988 = vmatpush1.bf16.msra.mxu1 %v4582_v23  ;;  %v6378_v23 = vld [vmem:[#allocation75_spill] sm:$0xff] }
 0x398   :  { %1948 = vmatprep.subr.bf16.mxu0 %v4577_v21  ;;  %1989 = vmatprep.subr.bf16.mxu1 %v4587_v31  ;;  %v6379_v21 = vld [vmem:[#allocation77_spill] sm:$0xff]  ;;  %v6380_v31 = vld [vmem:[#allocation76_spill] sm:$0xff] }
 0x39b   :  { %1949 = vmatpush1.bf16.msra.mxu0 %v4592_v16  ;;  %1990 = vmatpush1.bf16.msra.mxu1 %v4602_v17  ;;  %v6381_v16 = vld [vmem:[#allocation78_spill] sm:$0xff]  ;;  %v6382_v17 = vld [vmem:[#allocation79_spill] sm:$0xff] }
 0x39c   :  { %1950 = vmatprep.subr.bf16.mxu0 %v6372_v8  ;;  %1991 = vmatprep.subr.bf16.mxu1 %v6373_v4  ;;  %v6383_v8 = vld [vmem:[#allocation80_spill] sm:$0xff]  ;;  %v6384_v4 = vld [vmem:[#allocation81_spill] sm:$0xff] }
 0x39f   :  { %1951 = vmatpush1.bf16.msra.mxu0 %v6374_v14  ;;  %1992 = vmatpush1.bf16.msra.mxu1 %v6375_v10  ;;  %v6385_v14 = vld [vmem:[#allocation82_spill] sm:$0xff] }
 0x3a0   :  { %1952 = vmatprep.subr.bf16.mxu0 %v6376_v6  ;;  %1993 = vmatprep.subr.bf16.mxu1 %v6377_v55  ;;  %v6386_v6 = vld [vmem:[#allocation83_spill] sm:$0xff]  ;;  %v6387_v55 = vld [vmem:[#allocation85_spill] sm:$0xff] }
 0x3a3   :  { %1953 = vmatpush1.bf16.msra.mxu0 %v6378_v23  ;;  %1994 = vmatpush1.bf16.msra.mxu1 %v6379_v21  ;;  %v6388_v23 = vld [vmem:[#allocation84_spill] sm:$0xff]  ;;  %v6389_v21 = vld [vmem:[#allocation86_spill] sm:$0xff] }
 0x3a4   :  { %1954 = vmatprep.subr.bf16.mxu0 %v6380_v31  ;;  %1995 = vmatprep.subr.bf16.mxu1 %v6381_v16  ;;  %v6399_v16 = vld [vmem:[#allocation98_spill] sm:$0xff]  ;;  %v6400_v31 = vld [vmem:[#allocation95_spill] sm:$0xff] }
 0x3a7   :  { %1955 = vmatpush1.bf16.msra.mxu0 %v6382_v17  ;;  %1996 = vmatpush1.bf16.msra.mxu1 %v6383_v8  ;;  %v6390_v17 = vld [vmem:[#allocation87_spill] sm:$0xff]  ;;  %v6391_v8 = vld [vmem:[#allocation89_spill] sm:$0xff] }
 0x3a8   :  { %2048 = vmatprep.subr.bf16.mxu0 %v6384_v4  ;;  %2089 = vmatprep.subr.bf16.mxu1 %v6385_v14  ;;  %v6392_v4 = vld [vmem:[#allocation88_spill] sm:$0xff] }
 0x3a9   :  { %v6393_v14 = vld [vmem:[#allocation92_spill] sm:$0xff] }
 0x3aa   :  { %1973 = vmatmul.mubr.bf16.vlgmr.msra.gmra.mxu0 %v1739_v3  ;;  %2014 = vmatmul.mubr.bf16.vlgmr.msra.gmra.mxu1 %v1739_v3  ;;  %v6394_v3 = vld [vmem:[#allocation90_spill] sm:$0xff] }
 0x3ab   :  { %2049 = vmatpush1.bf16.msra.mxu0 %v6386_v6  ;;  %2090 = vmatpush1.bf16.msra.mxu1 %v6387_v55  ;;  %v6395_v6 = vld [vmem:[#allocation94_spill] sm:$0xff]  ;;  %v6396_v55 = vld [vmem:[#allocation91_spill] sm:$0xff] }
 0x3ac   :  { %2050 = vmatprep.subr.bf16.mxu0 %v6388_v23  ;;  %2091 = vmatprep.subr.bf16.mxu1 %v6389_v21  ;;  %v6397_v23 = vld [vmem:[#allocation96_spill] sm:$0xff]  ;;  %v6398_v21 = vld [vmem:[#allocation93_spill] sm:$0xff] }
 0x3ad   :  { %2080 = vmatprep.mubr.bf16.mxu0 %v6156_v20  ;;  %2121 = vmatprep.mubr.bf16.mxu1 %v6156_v20 }
 0x3af   :  { %2051 = vmatpush1.bf16.msra.mxu0 %v6390_v17  ;;  %2092 = vmatpush1.bf16.msra.mxu1 %v6391_v8  ;;  %v6401_v17 = vld [vmem:[#allocation100_spill] sm:$0xff]  ;;  %v6402_v8 = vld [vmem:[#allocation97_spill] sm:$0xff] }
 0x3b0   :  { %2052 = vmatprep.subr.bf16.mxu0 %v6392_v4  ;;  %2093 = vmatprep.subr.bf16.mxu1 %v6393_v14  ;;  %v6403_v4 = vld [vmem:[#allocation102_spill] sm:$0xff]  ;;  %v6404_v14 = vld [vmem:[#allocation99_spill] sm:$0xff] }
 0x3b3   :  { %2053 = vmatpush1.bf16.msra.mxu0 %v6394_v3  ;;  %2094 = vmatpush1.bf16.msra.mxu1 %v6395_v6  ;;  %v6405_v3 = vld [vmem:[#allocation104_spill] sm:$0xff]  ;;  %v6406_v6 = vld [vmem:[#allocation101_spill] sm:$0xff] }
 0x3b4   :  { %2054 = vmatprep.subr.bf16.mxu0 %v6396_v55  ;;  %2095 = vmatprep.subr.bf16.mxu1 %v6397_v23  ;;  %v6407_v55 = vld [vmem:[#allocation106_spill] sm:$0xff]  ;;  %v6408_v23 = vld [vmem:[#allocation103_spill] sm:$0xff] }
 0x3b7   :  { %2055 = vmatpush1.bf16.msra.mxu0 %v6398_v21  ;;  %2096 = vmatpush1.bf16.msra.mxu1 %v6399_v16  ;;  %v6409_v21 = vld [vmem:[#allocation51_spill] sm:$0xff]  ;;  %v6410_v16 = vld [vmem:[#allocation105_spill] sm:$0xff] }
 0x3b8   :  { %2056 = vmatprep.subr.bf16.mxu0 %v6400_v31  ;;  %2097 = vmatprep.subr.bf16.mxu1 %v6401_v17  ;;  %v6411_v31 = vld [vmem:[#allocation107_spill] sm:$0xff] }
 0x3b9   :  { %v6412_v17 = vld [vmem:[#allocation47_spill] sm:$0xff] }
 0x3bb   :  { %2057 = vmatpush1.bf16.msra.mxu0 %v6402_v8  ;;  %2098 = vmatpush1.bf16.msra.mxu1 %v6403_v4  ;;  %v6413_v8 = vld [vmem:[#allocation49_spill] sm:$0xff]  ;;  %v6414_v4 = vld [vmem:[#allocation50_spill] sm:$0xff] }
 0x3bc   :  { %2058 = vmatprep.subr.bf16.mxu0 %v6404_v14  ;;  %2099 = vmatprep.subr.bf16.mxu1 %v6405_v3  ;;  %v6415_v14 = vld [vmem:[#allocation48_spill] sm:$0xff]  ;;  %v6416_v3 = vld [vmem:[#allocation45_spill] sm:$0xff] }
 0x3bf   :  { %2059 = vmatpush1.bf16.msra.mxu0 %v6406_v6  ;;  %2100 = vmatpush1.bf16.msra.mxu1 %v6407_v55  ;;  %v6417_v6 = vld [vmem:[#allocation43_spill] sm:$0xff] }
 0x3c0   :  { %2060 = vmatprep.subr.bf16.mxu0 %v6408_v23  ;;  %2101 = vmatprep.subr.bf16.mxu1 %v6409_v21 }
 0x3c3   :  { %2061 = vmatpush1.bf16.msra.mxu0 %v6410_v16  ;;  %2102 = vmatpush1.bf16.msra.mxu1 %v6411_v31 }
 0x3c4   :  { %2062 = vmatprep.subr.bf16.mxu0 %v6412_v17  ;;  %2103 = vmatprep.subr.bf16.mxu1 %v6413_v8 }
 0x3c7   :  { %2063 = vmatpush1.bf16.msra.mxu0 %v6414_v4  ;;  %2104 = vmatpush1.bf16.msra.mxu1 %v6415_v14 }
 0x3c8   :  { %2130 = vmatprep.subr.bf16.mxu0 %v6416_v3  ;;  %2171 = vmatprep.subr.bf16.mxu1 %v6417_v6 }
 0x42a   :  { %v1775_v55 = vpop.f32.mrf.mxu0  ;;  %v1816_v23 = vpop.f32.mrf.mxu1 }
 0x42c   :  { %v1777_v10 = vpop.f32.mrf.mxu0  ;;  %v1818_v21 = vpop.f32.mrf.mxu1 }
 0x42e   :  { %v1779_v22 = vpop.f32.mrf.mxu0  ;;  %v1820_v16 = vpop.f32.mrf.mxu1 }
 0x430   :  { %v1780_v26 = vpop.f32.mrf.mxu0  ;;  %v1821_v31 = vpop.f32.mrf.mxu1 }
 0x44a   :  { %v1857_v25 = vpop.f32.mrf.mxu0  ;;  %v1898_v17 = vpop.f32.mrf.mxu1 }
 0x44b   :  { %v1858_v27 = vadd.f32 %v1857_v25, %v1775_v55  ;;  %v1899_v16 = vadd.f32 %v1898_v17, %v1816_v23 }
 0x44c   :  { %v1859_v8 = vpop.f32.mrf.mxu0  ;;  %v1900_v43 = vpop.f32.mrf.mxu1 }
 0x44d   :  { %v1905_v4 = vadd.f32 %v1858_v27, %v5077_v32  ;;  %v1860_v14 = vadd.f32 %v1859_v8, %v1777_v10  ;;  %v1901_v26 = vadd.f32 %v1900_v43, %v1818_v21  ;;  %v1907_v28 = vadd.f32 %v1899_v16, %v5086_v60 }
 0x44e   :  { %v1861_v24 = vpop.f32.mrf.mxu0  ;;  %v1902_v3 = vpop.f32.mrf.mxu1 }
 0x44f   :  { %v3658_v34 = vmul.f32 -1.442695, %v1905_v4  ;;  %v1906_v6 = vadd.f32 %v1860_v14, %v5079_v48  ;;  %v1908_v31 = vadd.f32 %v1901_v26, %v5083_v62 }
 0x450   :  { %v1862_v29 = vpop.f32.mrf.mxu0  ;;  %v1903_v30 = vpop.f32.mrf.mxu1 }
 0x451   :  { %3788 = vpow2.f32 %v3658_v34  ;;  %v3659_v22 = vmul.f32 -1.442695, %v1906_v6  ;;  %v3660_v25 = vmul.f32 -1.442695, %v1908_v31  ;;  %v3661_v34 = vld [vmem:[%s5872_s0 + $0x30] sm:$0xff] }
 0x452   :  { %v1936_v30 = vunpack.c.l.bf16 %v3661_v34  ;;  %v1937_v29 = vunpack.c.h.bf16 %v3661_v34  ;;  %v3662_v34 = vld [vmem:[%s5872_s0 + $0x38] sm:$0xff] }
 0x453   :  { %3790 = vpow2.f32 %v3659_v22 }
 0x454   :  { %3792 = vpow2.f32 %v3660_v25 }
 0x45e   :  { %v3789_v55 = vpop.eup %3788 }
 0x45f   :  { %v1912_v27 = vadd.f32 1.0, %v3789_v55 }
 0x460   :  { %v3791_v8 = vpop.eup %3790 }
 0x461   :  { %3794 = vrcp.f32 %v1912_v27  ;;  %v1918_v24 = vadd.f32 1.0, %v3791_v8  ;;  %v3793_v14 = vpop.eup %3792 }
 0x462   :  { %3796 = vtanh.f32 %v1907_v28  ;;  %v1925_v25 = vadd.f32 1.0, %v3793_v14 }
 0x463   :  { %3798 = vrcp.f32 %v1918_v24 }
 0x46a   :  { %v1974_v21 = vpop.f32.mrf.mxu0  ;;  %v2015_v43 = vpop.f32.mrf.mxu1 }
 0x46b   :  { %v1975_v23 = vadd.f32 %v1974_v21, %v1936_v30  ;;  %v1939_v30 = vunpack.c.h.bf16 %v3662_v34 }
 0x46c   :  { %v1976_v17 = vpop.f32.mrf.mxu0  ;;  %v2017_v4 = vpop.f32.mrf.mxu1 }
 0x46d   :  { %v3663_v10 = vmul.f32 -1.442695, %v1975_v23  ;;  %v1977_v6 = vadd.f32 %v1976_v17, %v1937_v29  ;;  %v2018_v21 = vadd.f32 %v2017_v4, %v1939_v30  ;;  %v1938_v23 = vunpack.c.l.bf16 %v3662_v34 }
 0x46e   :  { %v3795_v3 = vpop.eup %3794  ;;  %v1978_v22 = vpop.f32.mrf.mxu0 }
 0x46f   :  { %v2019_v26 = vpop.f32.mrf.mxu1  ;;  %v3797_v31 = vpop.eup %3796  ;;  %3800 = vpow2.f32 %v3663_v10  ;;  %v3664_v28 = vmul.f32 -1.442695, %v1977_v6  ;;  %v3665_v17 = vmul.f32 -1.442695, %v2018_v21  ;;  %v2016_v10 = vadd.f32 %v2015_v43, %v1938_v23  ;;  %v6418_v23 = vld [vmem:[#allocation54_spill] sm:$0xff] }
 0x470   :  { %v3799_v16 = vpop.eup %3798  ;;  %v1979_v55 = vpop.f32.mrf.mxu0  ;;  %v1929_v8 = vmul.f32 %v3797_v31, %v3795_v3 }
 0x471   :  { %v2020_v27 = vpop.f32.mrf.mxu1  ;;  %v1928_v24 = vmul.f32 %v3799_v16, %v5219_v13  ;;  %3802 = vpow2.f32 %v3664_v28 }
 0x472   :  { %3804 = vrcp.f32 %v1925_v25 }
 0x473   :  { %v5339_v29 = vadd.f32 %v1929_v8, %v1928_v24 }
 0x475   :  { %3806 = vtanh.f32 %v5339_v29 }
 0x476   :  { %3808 = vpow2.f32 %v3665_v17  ;;  %v6419_v17 = vld [vmem:[#allocation55_spill] sm:$0xff] }
 0x47c   :  { %v3801_v14 = vpop.eup %3800 }
 0x47d   :  { %v2025_v6 = vadd.f32 1.0, %v3801_v14  ;;  %v6420_v14 = vld [vmem:[#allocation57_spill] sm:$0xff] }
 0x47e   :  { %v3803_v3 = vpop.eup %3802 }
 0x47f   :  { %3810 = vrcp.f32 %v2025_v6  ;;  %v2031_v13 = vadd.f32 1.0, %v3803_v3  ;;  %v3805_v22 = vpop.eup %3804  ;;  %v6422_v6 = vld [vmem:[#allocation58_spill] sm:$0xff]  ;;  %v6423_v3 = vld [vmem:[#allocation59_spill] sm:$0xff] }
 0x480   :  { %3812 = vtanh.f32 %v2016_v10  ;;  %v6421_v10 = vld [vmem:[#allocation56_spill] sm:$0xff] }
 0x481   :  { %3814 = vrcp.f32 %v2031_v13  ;;  %v6424_v13 = vld [vmem:[#allocation61_spill] sm:$0xff] }
 0x482   :  { %v3807_v26 = vpop.eup %3806 }
 0x483   :  { %v1932_v31 = vmul.f32 %v3807_v26, %v3805_v22  ;;  %v3809_v43 = vpop.eup %3808  ;;  %v6425_v22 = vld [vmem:[#allocation60_spill] sm:$0xff]  ;;  %v6426_v26 = vld [vmem:[#allocation62_spill] sm:$0xff] }
 0x484   :  { %v2038_v55 = vadd.f32 1.0, %v3809_v43  ;;  %v6429_v43 = vld [vmem:[#allocation64_spill] sm:$0xff] }
 0x485   :  { %v2047_v28 = vpack.c.bf16 %v1932_v31, %v1932_v31  ;;  %v6427_v31 = vld [vmem:[#allocation63_spill] sm:$0xff] }
 0x486   :  { %3816 = vrcp.f32 %v2038_v55  ;;  %v6433_v55 = vld [vmem:[#allocation68_spill] sm:$0xff] }
 0x487   :  { %2081 = vmatmul.mubr.bf16.vlgmr.msra.gmra.mxu0 %v2047_v28  ;;  %2122 = vmatmul.mubr.bf16.vlgmr.msra.gmra.mxu1 %v2047_v28  ;;  %v6428_v28 = vld [vmem:[#allocation65_spill] sm:$0xff] }
 0x488   :  { %2131 = vmatpush1.bf16.msra.mxu0 %v6297_v57  ;;  %2172 = vmatpush1.bf16.msra.mxu1 %v6298_v47 }
 0x489   :  { %2132 = vmatprep.subr.bf16.mxu0 %v6299_v49  ;;  %2173 = vmatprep.subr.bf16.mxu1 %v6300_v41 }
 0x48a   :  { %2162 = vmatprep.mubr.bf16.mxu0 %v6156_v20  ;;  %2203 = vmatprep.mubr.bf16.mxu1 %v6156_v20 }
 0x48c   :  { %v3811_v4 = vpop.eup %3810  ;;  %2133 = vmatpush1.bf16.msra.mxu0 %v6301_v56  ;;  %2174 = vmatpush1.bf16.msra.mxu1 %v6302_v45 }
 0x48d   :  { %v3813_v16 = vpop.eup %3812  ;;  %2134 = vmatprep.subr.bf16.mxu0 %v6303_v59  ;;  %2175 = vmatprep.subr.bf16.mxu1 %v6357_v9 }
 0x48e   :  { %v3815_v25 = vpop.eup %3814  ;;  %v2042_v27 = vmul.f32 %v3813_v16, %v3811_v4  ;;  %v6430_v4 = vld [vmem:[#allocation66_spill] sm:$0xff]  ;;  %v6431_v16 = vld [vmem:[#allocation67_spill] sm:$0xff] }
 0x48f   :  { %v2041_v8 = vmul.f32 %v3815_v25, %v5235_v12  ;;  %v6432_v25 = vld [vmem:[#allocation69_spill] sm:$0xff] }
 0x490   :  { %2135 = vmatpush1.bf16.msra.mxu0 %v6305_v50  ;;  %2176 = vmatpush1.bf16.msra.mxu1 %v6358_v19 }
 0x491   :  { %v5355_v24 = vadd.f32 %v2042_v27, %v2041_v8  ;;  %2136 = vmatprep.subr.bf16.mxu0 %v6359_v15  ;;  %2177 = vmatprep.subr.bf16.mxu1 %v6360_v0  ;;  %v6434_v27 = vld [vmem:[#allocation70_spill] sm:$0xff]  ;;  %v6435_v8 = vld [vmem:[#allocation71_spill] sm:$0xff] }
 0x493   :  { %3818 = vtanh.f32 %v5355_v24  ;;  %v3817_v12 = vpop.eup %3816 }
 0x494   :  { %2137 = vmatpush1.bf16.msra.mxu0 %v6361_v1  ;;  %2178 = vmatpush1.bf16.msra.mxu1 %v6362_v2 }
 0x495   :  { %2138 = vmatprep.subr.bf16.mxu0 %v6363_v58  ;;  %2179 = vmatprep.subr.bf16.mxu1 %v6364_v54 }
 0x498   :  { %2139 = vmatpush1.bf16.msra.mxu0 %v6365_v63  ;;  %2180 = vmatpush1.bf16.msra.mxu1 %v6366_v51 }
 0x499   :  { %2140 = vmatprep.subr.bf16.mxu0 %v6367_v53  ;;  %2181 = vmatprep.subr.bf16.mxu1 %v6368_v11 }
 0x49c   :  { %2141 = vmatpush1.bf16.msra.mxu0 %v6369_v7  ;;  %2182 = vmatpush1.bf16.msra.mxu1 %v6370_v5 }
 0x49d   :  { %2142 = vmatprep.subr.bf16.mxu0 %v6371_v18  ;;  %2183 = vmatprep.subr.bf16.mxu1 %v6320_v35 }
 0x4a0   :  { %v3819_v34 = vpop.eup %3818  ;;  %2143 = vmatpush1.bf16.msra.mxu0 %v6321_v42  ;;  %2184 = vmatpush1.bf16.msra.mxu1 %v6322_v44 }
 0x4a1   :  { %2144 = vmatprep.subr.bf16.mxu0 %v6323_v61  ;;  %2185 = vmatprep.subr.bf16.mxu1 %v6324_v40  ;;  %v2045_v30 = vmul.f32 %v3819_v34, %v3817_v12  ;;  %v6436_v12 = vld [vmem:[#allocation73_spill] sm:$0xff]  ;;  %v6437_v34 = vld [vmem:[#allocation72_spill] sm:$0xff] }
 0x4a3   :  { %v2046_v21 = vpack.c.bf16 %v2045_v30, %v2045_v30  ;;  %v6438_v30 = vld [vmem:[#allocation74_spill] sm:$0xff] }
 0x4a4   :  { %2145 = vmatpush1.bf16.msra.mxu0 %v6325_v37  ;;  %2186 = vmatpush1.bf16.msra.mxu1 %v6326_v36 }
 0x4a5   :  { %2247 = vmatprep.subr.bf16.mxu0 %v6327_v46  ;;  %2288 = vmatprep.subr.bf16.mxu1 %v6328_v52 }
 0x4a7   :  { %2163 = vmatmul.mubr.bf16.vlgmr.msra.gmra.mxu0 %v2046_v21  ;;  %2204 = vmatmul.mubr.bf16.vlgmr.msra.gmra.mxu1 %v2046_v21 }
 0x4a8   :  { %2248 = vmatpush1.bf16.msra.mxu0 %v4507_v39  ;;  %2289 = vmatpush1.bf16.msra.mxu1 %v4520_v33 }
 0x4a9   :  { %2249 = vmatprep.subr.bf16.mxu0 %v4511_v38  ;;  %2290 = vmatprep.subr.bf16.mxu1 %v6418_v23 }
 0x4aa   :  { %2279 = vmatprep.mubr.bf16.mxu0 %v6156_v20  ;;  %2320 = vmatprep.mubr.bf16.mxu1 %v6156_v20 }
 0x4ac   :  { %2250 = vmatpush1.bf16.msra.mxu0 %v6419_v17  ;;  %2291 = vmatpush1.bf16.msra.mxu1 %v6420_v14 }
 0x4ad   :  { %2251 = vmatprep.subr.bf16.mxu0 %v6421_v10  ;;  %2292 = vmatprep.subr.bf16.mxu1 %v6422_v6 }
 0x4b0   :  { %2252 = vmatpush1.bf16.msra.mxu0 %v6423_v3  ;;  %2293 = vmatpush1.bf16.msra.mxu1 %v6424_v13 }
 0x4b1   :  { %2253 = vmatprep.subr.bf16.mxu0 %v6425_v22  ;;  %2294 = vmatprep.subr.bf16.mxu1 %v6426_v26 }
 0x4b4   :  { %2254 = vmatpush1.bf16.msra.mxu0 %v6427_v31  ;;  %2295 = vmatpush1.bf16.msra.mxu1 %v6428_v28  ;;  %v6439_v28 = vld [vmem:[#allocation75_spill] sm:$0xff] }
 0x4b5   :  { %2255 = vmatprep.subr.bf16.mxu0 %v6429_v43  ;;  %2296 = vmatprep.subr.bf16.mxu1 %v6430_v4  ;;  %v6440_v43 = vld [vmem:[#allocation77_spill] sm:$0xff]  ;;  %v6441_v4 = vld [vmem:[#allocation76_spill] sm:$0xff] }
 0x4b8   :  { %2256 = vmatpush1.bf16.msra.mxu0 %v6431_v16  ;;  %2297 = vmatpush1.bf16.msra.mxu1 %v6432_v25  ;;  %v6442_v16 = vld [vmem:[#allocation78_spill] sm:$0xff]  ;;  %v6443_v25 = vld [vmem:[#allocation79_spill] sm:$0xff] }
 0x4b9   :  { %2257 = vmatprep.subr.bf16.mxu0 %v6433_v55  ;;  %2298 = vmatprep.subr.bf16.mxu1 %v6434_v27  ;;  %v6444_v55 = vld [vmem:[#allocation80_spill] sm:$0xff]  ;;  %v6445_v27 = vld [vmem:[#allocation81_spill] sm:$0xff] }
 0x4bc   :  { %2258 = vmatpush1.bf16.msra.mxu0 %v6435_v8  ;;  %2299 = vmatpush1.bf16.msra.mxu1 %v6436_v12  ;;  %v6446_v8 = vld [vmem:[#allocation82_spill] sm:$0xff] }
 0x4bd   :  { %2259 = vmatprep.subr.bf16.mxu0 %v6437_v34  ;;  %2300 = vmatprep.subr.bf16.mxu1 %v6438_v30  ;;  %v6447_v34 = vld [vmem:[#allocation83_spill] sm:$0xff]  ;;  %v6448_v30 = vld [vmem:[#allocation85_spill] sm:$0xff] }
 0x4c0   :  { %2260 = vmatpush1.bf16.msra.mxu0 %v6439_v28  ;;  %2301 = vmatpush1.bf16.msra.mxu1 %v6440_v43  ;;  %v6449_v28 = vld [vmem:[#allocation84_spill] sm:$0xff]  ;;  %v6450_v43 = vld [vmem:[#allocation86_spill] sm:$0xff] }
 0x4c1   :  { %2261 = vmatprep.subr.bf16.mxu0 %v6441_v4  ;;  %2302 = vmatprep.subr.bf16.mxu1 %v6442_v16  ;;  %v6460_v16 = vld [vmem:[#allocation98_spill] sm:$0xff]  ;;  %v6461_v4 = vld [vmem:[#allocation95_spill] sm:$0xff] }
 0x4c4   :  { %2262 = vmatpush1.bf16.msra.mxu0 %v6443_v25  ;;  %2303 = vmatpush1.bf16.msra.mxu1 %v6444_v55  ;;  %v6451_v25 = vld [vmem:[#allocation87_spill] sm:$0xff]  ;;  %v6452_v55 = vld [vmem:[#allocation89_spill] sm:$0xff] }
 0x4c5   :  { %2355 = vmatprep.subr.bf16.mxu0 %v6445_v27  ;;  %2396 = vmatprep.subr.bf16.mxu1 %v6446_v8  ;;  %v6453_v27 = vld [vmem:[#allocation88_spill] sm:$0xff] }
 0x4c6   :  { %v6454_v8 = vld [vmem:[#allocation92_spill] sm:$0xff] }
 0x4c7   :  { %2280 = vmatmul.mubr.bf16.vlgmr.msra.gmra.mxu0 %v2046_v21  ;;  %2321 = vmatmul.mubr.bf16.vlgmr.msra.gmra.mxu1 %v2046_v21  ;;  %v6455_v21 = vld [vmem:[#allocation90_spill] sm:$0xff] }
 0x4c8   :  { %2356 = vmatpush1.bf16.msra.mxu0 %v6447_v34  ;;  %2397 = vmatpush1.bf16.msra.mxu1 %v6448_v30  ;;  %v6456_v34 = vld [vmem:[#allocation94_spill] sm:$0xff]  ;;  %v6457_v30 = vld [vmem:[#allocation91_spill] sm:$0xff] }
 0x4c9   :  { %2357 = vmatprep.subr.bf16.mxu0 %v6449_v28  ;;  %2398 = vmatprep.subr.bf16.mxu1 %v6450_v43  ;;  %v6458_v28 = vld [vmem:[#allocation96_spill] sm:$0xff]  ;;  %v6459_v43 = vld [vmem:[#allocation93_spill] sm:$0xff] }
 0x4ca   :  { %2387 = vmatprep.mubr.bf16.mxu0 %v6156_v20  ;;  %2428 = vmatprep.mubr.bf16.mxu1 %v6156_v20 }
 0x4cc   :  { %2358 = vmatpush1.bf16.msra.mxu0 %v6451_v25  ;;  %2399 = vmatpush1.bf16.msra.mxu1 %v6452_v55  ;;  %v6462_v25 = vld [vmem:[#allocation100_spill] sm:$0xff]  ;;  %v6463_v55 = vld [vmem:[#allocation97_spill] sm:$0xff] }
 0x4cd   :  { %2359 = vmatprep.subr.bf16.mxu0 %v6453_v27  ;;  %2400 = vmatprep.subr.bf16.mxu1 %v6454_v8  ;;  %v6464_v27 = vld [vmem:[#allocation102_spill] sm:$0xff]  ;;  %v6465_v8 = vld [vmem:[#allocation99_spill] sm:$0xff] }
 0x4d0   :  { %2360 = vmatpush1.bf16.msra.mxu0 %v6455_v21  ;;  %2401 = vmatpush1.bf16.msra.mxu1 %v6456_v34  ;;  %v6466_v21 = vld [vmem:[#allocation104_spill] sm:$0xff]  ;;  %v6467_v34 = vld [vmem:[#allocation101_spill] sm:$0xff] }
 0x4d1   :  { %2361 = vmatprep.subr.bf16.mxu0 %v6457_v30  ;;  %2402 = vmatprep.subr.bf16.mxu1 %v6458_v28  ;;  %v6468_v30 = vld [vmem:[#allocation106_spill] sm:$0xff]  ;;  %v6469_v28 = vld [vmem:[#allocation103_spill] sm:$0xff] }
 0x4d4   :  { %2362 = vmatpush1.bf16.msra.mxu0 %v6459_v43  ;;  %2403 = vmatpush1.bf16.msra.mxu1 %v6460_v16  ;;  %v6470_v43 = vld [vmem:[#allocation51_spill] sm:$0xff]  ;;  %v6471_v16 = vld [vmem:[#allocation105_spill] sm:$0xff] }
 0x4d5   :  { %2363 = vmatprep.subr.bf16.mxu0 %v6461_v4  ;;  %2404 = vmatprep.subr.bf16.mxu1 %v6462_v25  ;;  %v6472_v4 = vld [vmem:[#allocation107_spill] sm:$0xff] }
 0x4d6   :  { %v6473_v25 = vld [vmem:[#allocation47_spill] sm:$0xff] }
 0x4d8   :  { %2364 = vmatpush1.bf16.msra.mxu0 %v6463_v55  ;;  %2405 = vmatpush1.bf16.msra.mxu1 %v6464_v27  ;;  %v6474_v55 = vld [vmem:[#allocation49_spill] sm:$0xff]  ;;  %v6475_v27 = vld [vmem:[#allocation50_spill] sm:$0xff] }
 0x4d9   :  { %2365 = vmatprep.subr.bf16.mxu0 %v6465_v8  ;;  %2406 = vmatprep.subr.bf16.mxu1 %v6466_v21  ;;  %v6476_v8 = vld [vmem:[#allocation48_spill] sm:$0xff]  ;;  %v6477_v21 = vld [vmem:[#allocation45_spill] sm:$0xff] }
 0x4dc   :  { %2366 = vmatpush1.bf16.msra.mxu0 %v6467_v34  ;;  %2407 = vmatpush1.bf16.msra.mxu1 %v6468_v30  ;;  %v6478_v34 = vld [vmem:[#allocation43_spill] sm:$0xff] }
 0x4dd   :  { %2367 = vmatprep.subr.bf16.mxu0 %v6469_v28  ;;  %2408 = vmatprep.subr.bf16.mxu1 %v6470_v43 }
 0x4e0   :  { %2368 = vmatpush1.bf16.msra.mxu0 %v6471_v16  ;;  %2409 = vmatpush1.bf16.msra.mxu1 %v6472_v4 }
 0x4e1   :  { %2369 = vmatprep.subr.bf16.mxu0 %v6473_v25  ;;  %2410 = vmatprep.subr.bf16.mxu1 %v6474_v55 }
 0x4e4   :  { %2370 = vmatpush1.bf16.msra.mxu0 %v6475_v27  ;;  %2411 = vmatpush1.bf16.msra.mxu1 %v6476_v8 }
 0x4e5   :  { %2437 = vmatprep.subr.bf16.mxu0 %v6477_v21  ;;  %2478 = vmatprep.subr.bf16.mxu1 %v6478_v34 }
 0x547   :  { %v2082_v30 = vpop.f32.mrf.mxu0  ;;  %v2123_v28 = vpop.f32.mrf.mxu1 }
 0x549   :  { %v2084_v12 = vpop.f32.mrf.mxu0  ;;  %v2125_v43 = vpop.f32.mrf.mxu1 }
 0x54b   :  { %v2086_v31 = vpop.f32.mrf.mxu0  ;;  %v2127_v16 = vpop.f32.mrf.mxu1 }
 0x54d   :  { %v2087_v26 = vpop.f32.mrf.mxu0  ;;  %v2128_v4 = vpop.f32.mrf.mxu1 }
 0x567   :  { %v2164_v22 = vpop.f32.mrf.mxu0  ;;  %v2205_v25 = vpop.f32.mrf.mxu1 }
 0x568   :  { %v2165_v13 = vadd.f32 %v2164_v22, %v2082_v30  ;;  %v2206_v16 = vadd.f32 %v2205_v25, %v2123_v28 }
 0x569   :  { %v2166_v55 = vpop.f32.mrf.mxu0  ;;  %v2207_v3 = vpop.f32.mrf.mxu1 }
 0x56a   :  { %v2212_v27 = vadd.f32 %v2165_v13, %v5077_v32  ;;  %v2167_v8 = vadd.f32 %v2166_v55, %v2084_v12  ;;  %v2208_v26 = vadd.f32 %v2207_v3, %v2125_v43  ;;  %v2214_v23 = vadd.f32 %v2206_v16, %v5086_v60 }
 0x56b   :  { %v2168_v6 = vpop.f32.mrf.mxu0  ;;  %v2209_v21 = vpop.f32.mrf.mxu1 }
 0x56c   :  { %v3666_v10 = vmul.f32 -1.442695, %v2212_v27  ;;  %v2213_v34 = vadd.f32 %v2167_v8, %v5079_v48  ;;  %v2215_v4 = vadd.f32 %v2208_v26, %v5083_v62 }
 0x56d   :  { %v2169_v14 = vpop.f32.mrf.mxu0  ;;  %v2210_v17 = vpop.f32.mrf.mxu1 }
 0x56e   :  { %3820 = vpow2.f32 %v3666_v10  ;;  %v3667_v31 = vmul.f32 -1.442695, %v2213_v34  ;;  %v3668_v22 = vmul.f32 -1.442695, %v2215_v4  ;;  %v3669_v17 = vld [vmem:[%s5872_s0 + $0x40] sm:$0xff] }
 0x56f   :  { %v2243_v14 = vunpack.c.l.bf16 %v3669_v17  ;;  %v2244_v10 = vunpack.c.h.bf16 %v3669_v17  ;;  %v3670_v17 = vld [vmem:[%s5872_s0 + $0x48] sm:$0xff] }
 0x570   :  { %3822 = vpow2.f32 %v3667_v31 }
 0x571   :  { %3824 = vpow2.f32 %v3668_v22 }
 0x57b   :  { %v3821_v30 = vpop.eup %3820 }
 0x57c   :  { %v2219_v13 = vadd.f32 1.0, %v3821_v30 }
 0x57d   :  { %v3823_v55 = vpop.eup %3822 }
 0x57e   :  { %3826 = vrcp.f32 %v2219_v13  ;;  %v2225_v6 = vadd.f32 1.0, %v3823_v55  ;;  %v3825_v8 = vpop.eup %3824 }
 0x57f   :  { %3828 = vtanh.f32 %v2214_v23  ;;  %v2232_v22 = vadd.f32 1.0, %v3825_v8 }
 0x580   :  { %3830 = vrcp.f32 %v2225_v6 }
 0x587   :  { %v2281_v3 = vpop.f32.mrf.mxu0  ;;  %v2322_v43 = vpop.f32.mrf.mxu1 }
 0x588   :  { %v2282_v28 = vadd.f32 %v2281_v3, %v2243_v14  ;;  %v2246_v14 = vunpack.c.h.bf16 %v3670_v17 }
 0x589   :  { %v2283_v25 = vpop.f32.mrf.mxu0  ;;  %v2324_v27 = vpop.f32.mrf.mxu1 }
 0x58a   :  { %v3671_v12 = vmul.f32 -1.442695, %v2282_v28  ;;  %v2284_v34 = vadd.f32 %v2283_v25, %v2244_v10  ;;  %v2325_v3 = vadd.f32 %v2324_v27, %v2246_v14  ;;  %v2245_v28 = vunpack.c.l.bf16 %v3670_v17 }
 0x58b   :  { %v3827_v21 = vpop.eup %3826  ;;  %v2285_v31 = vpop.f32.mrf.mxu0 }
 0x58c   :  { %v2326_v26 = vpop.f32.mrf.mxu1  ;;  %v3829_v4 = vpop.eup %3828  ;;  %3832 = vpow2.f32 %v3671_v12  ;;  %v3672_v23 = vmul.f32 -1.442695, %v2284_v34  ;;  %v3673_v25 = vmul.f32 -1.442695, %v2325_v3  ;;  %v2323_v12 = vadd.f32 %v2322_v43, %v2245_v28  ;;  %v6479_v28 = vld [vmem:[#allocation54_spill] sm:$0xff] }
 0x58d   :  { %v3831_v16 = vpop.eup %3830  ;;  %v2286_v30 = vpop.f32.mrf.mxu0  ;;  %v2236_v55 = vmul.f32 %v3829_v4, %v3827_v21 }
 0x58e   :  { %v2327_v13 = vpop.f32.mrf.mxu1  ;;  %v2235_v6 = vmul.f32 %v3831_v16, %v5339_v29  ;;  %3834 = vpow2.f32 %v3672_v23 }
 0x58f   :  { %3836 = vrcp.f32 %v2232_v22 }
 0x590   :  { %v5459_v10 = vadd.f32 %v2236_v55, %v2235_v6 }
 0x592   :  { %3838 = vtanh.f32 %v5459_v10 }
 0x593   :  { %3840 = vpow2.f32 %v3673_v25  ;;  %v6480_v25 = vld [vmem:[#allocation55_spill] sm:$0xff] }
 0x599   :  { %v3833_v8 = vpop.eup %3832 }
 0x59a   :  { %v2332_v34 = vadd.f32 1.0, %v3833_v8  ;;  %v6481_v8 = vld [vmem:[#allocation57_spill] sm:$0xff] }
 0x59b   :  { %v3835_v21 = vpop.eup %3834 }
 0x59c   :  { %3842 = vrcp.f32 %v2332_v34  ;;  %v2338_v29 = vadd.f32 1.0, %v3835_v21  ;;  %v3837_v31 = vpop.eup %3836  ;;  %v6483_v34 = vld [vmem:[#allocation58_spill] sm:$0xff]  ;;  %v6484_v21 = vld [vmem:[#allocation59_spill] sm:$0xff] }
 0x59d   :  { %3844 = vtanh.f32 %v2323_v12  ;;  %v6482_v12 = vld [vmem:[#allocation56_spill] sm:$0xff] }
 0x59e   :  { %3846 = vrcp.f32 %v2338_v29  ;;  %v6485_v29 = vld [vmem:[#allocation61_spill] sm:$0xff] }
 0x59f   :  { %v3839_v26 = vpop.eup %3838 }
 0x5a0   :  { %v2239_v4 = vmul.f32 %v3839_v26, %v3837_v31  ;;  %v3841_v43 = vpop.eup %3840  ;;  %v6486_v31 = vld [vmem:[#allocation60_spill] sm:$0xff]  ;;  %v6487_v26 = vld [vmem:[#allocation62_spill] sm:$0xff] }
 0x5a1   :  { %v2345_v30 = vadd.f32 1.0, %v3841_v43  ;;  %v6490_v43 = vld [vmem:[#allocation64_spill] sm:$0xff] }
 0x5a2   :  { %v2354_v23 = vpack.c.bf16 %v2239_v4, %v2239_v4  ;;  %v6488_v4 = vld [vmem:[#allocation63_spill] sm:$0xff] }
 0x5a3   :  { %3848 = vrcp.f32 %v2345_v30  ;;  %v6494_v30 = vld [vmem:[#allocation68_spill] sm:$0xff] }
 0x5a4   :  { %2388 = vmatmul.mubr.bf16.vlgmr.msra.gmra.mxu0 %v2354_v23  ;;  %2429 = vmatmul.mubr.bf16.vlgmr.msra.gmra.mxu1 %v2354_v23  ;;  %v6489_v23 = vld [vmem:[#allocation65_spill] sm:$0xff] }
 0x5a5   :  { %2438 = vmatpush1.bf16.msra.mxu0 %v6297_v57  ;;  %2479 = vmatpush1.bf16.msra.mxu1 %v6298_v47 }
 0x5a6   :  { %2439 = vmatprep.subr.bf16.mxu0 %v6299_v49  ;;  %2480 = vmatprep.subr.bf16.mxu1 %v6300_v41 }
 0x5a7   :  { %2469 = vmatprep.mubr.bf16.mxu0 %v6156_v20  ;;  %2510 = vmatprep.mubr.bf16.mxu1 %v6156_v20 }
 0x5a9   :  { %v3843_v27 = vpop.eup %3842  ;;  %2440 = vmatpush1.bf16.msra.mxu0 %v6301_v56  ;;  %2481 = vmatpush1.bf16.msra.mxu1 %v6302_v45 }
 0x5aa   :  { %v3845_v16 = vpop.eup %3844  ;;  %2441 = vmatprep.subr.bf16.mxu0 %v6303_v59  ;;  %2482 = vmatprep.subr.bf16.mxu1 %v6357_v9 }
 0x5ab   :  { %v3847_v22 = vpop.eup %3846  ;;  %v2349_v13 = vmul.f32 %v3845_v16, %v3843_v27  ;;  %v6491_v27 = vld [vmem:[#allocation66_spill] sm:$0xff]  ;;  %v6492_v16 = vld [vmem:[#allocation67_spill] sm:$0xff] }
 0x5ac   :  { %v2348_v55 = vmul.f32 %v3847_v22, %v5355_v24  ;;  %v6493_v22 = vld [vmem:[#allocation69_spill] sm:$0xff] }
 0x5ad   :  { %2442 = vmatpush1.bf16.msra.mxu0 %v6305_v50  ;;  %2483 = vmatpush1.bf16.msra.mxu1 %v6358_v19 }
 0x5ae   :  { %v5475_v6 = vadd.f32 %v2349_v13, %v2348_v55  ;;  %2443 = vmatprep.subr.bf16.mxu0 %v6359_v15  ;;  %2484 = vmatprep.subr.bf16.mxu1 %v6360_v0  ;;  %v6495_v13 = vld [vmem:[#allocation70_spill] sm:$0xff]  ;;  %v6496_v55 = vld [vmem:[#allocation71_spill] sm:$0xff] }
 0x5b0   :  { %3850 = vtanh.f32 %v5475_v6  ;;  %v3849_v24 = vpop.eup %3848 }
 0x5b1   :  { %2444 = vmatpush1.bf16.msra.mxu0 %v6361_v1  ;;  %2485 = vmatpush1.bf16.msra.mxu1 %v6362_v2 }
 0x5b2   :  { %2445 = vmatprep.subr.bf16.mxu0 %v6363_v58  ;;  %2486 = vmatprep.subr.bf16.mxu1 %v6364_v54 }
 0x5b5   :  { %2446 = vmatpush1.bf16.msra.mxu0 %v6365_v63  ;;  %2487 = vmatpush1.bf16.msra.mxu1 %v6366_v51 }
 0x5b6   :  { %2447 = vmatprep.subr.bf16.mxu0 %v6367_v53  ;;  %2488 = vmatprep.subr.bf16.mxu1 %v6368_v11 }
 0x5b9   :  { %2448 = vmatpush1.bf16.msra.mxu0 %v6369_v7  ;;  %2489 = vmatpush1.bf16.msra.mxu1 %v6370_v5 }
 0x5ba   :  { %2449 = vmatprep.subr.bf16.mxu0 %v6371_v18  ;;  %2490 = vmatprep.subr.bf16.mxu1 %v6320_v35 }
 0x5bd   :  { %v3851_v17 = vpop.eup %3850  ;;  %2450 = vmatpush1.bf16.msra.mxu0 %v6321_v42  ;;  %2491 = vmatpush1.bf16.msra.mxu1 %v6322_v44 }
 0x5be   :  { %2451 = vmatprep.subr.bf16.mxu0 %v6323_v61  ;;  %2492 = vmatprep.subr.bf16.mxu1 %v6324_v40  ;;  %v2352_v14 = vmul.f32 %v3851_v17, %v3849_v24  ;;  %v6497_v24 = vld [vmem:[#allocation73_spill] sm:$0xff]  ;;  %v6498_v17 = vld [vmem:[#allocation72_spill] sm:$0xff] }
 0x5c0   :  { %v2353_v3 = vpack.c.bf16 %v2352_v14, %v2352_v14  ;;  %v6499_v14 = vld [vmem:[#allocation74_spill] sm:$0xff] }
 0x5c1   :  { %2452 = vmatpush1.bf16.msra.mxu0 %v6325_v37  ;;  %2493 = vmatpush1.bf16.msra.mxu1 %v6326_v36 }
 0x5c2   :  { %2554 = vmatprep.subr.bf16.mxu0 %v6327_v46  ;;  %2595 = vmatprep.subr.bf16.mxu1 %v6328_v52 }
 0x5c4   :  { %2470 = vmatmul.mubr.bf16.vlgmr.msra.gmra.mxu0 %v2353_v3  ;;  %2511 = vmatmul.mubr.bf16.vlgmr.msra.gmra.mxu1 %v2353_v3 }
 0x5c5   :  { %2555 = vmatpush1.bf16.msra.mxu0 %v4507_v39  ;;  %2596 = vmatpush1.bf16.msra.mxu1 %v4520_v33 }
 0x5c6   :  { %2556 = vmatprep.subr.bf16.mxu0 %v4511_v38  ;;  %2597 = vmatprep.subr.bf16.mxu1 %v6479_v28 }
 0x5c7   :  { %2586 = vmatprep.mubr.bf16.mxu0 %v6156_v20  ;;  %2627 = vmatprep.mubr.bf16.mxu1 %v6156_v20 }
 0x5c9   :  { %2557 = vmatpush1.bf16.msra.mxu0 %v6480_v25  ;;  %2598 = vmatpush1.bf16.msra.mxu1 %v6481_v8 }
 0x5ca   :  { %2558 = vmatprep.subr.bf16.mxu0 %v6482_v12  ;;  %2599 = vmatprep.subr.bf16.mxu1 %v6483_v34 }
 0x5cd   :  { %2559 = vmatpush1.bf16.msra.mxu0 %v6484_v21  ;;  %2600 = vmatpush1.bf16.msra.mxu1 %v6485_v29 }
 0x5ce   :  { %2560 = vmatprep.subr.bf16.mxu0 %v6486_v31  ;;  %2601 = vmatprep.subr.bf16.mxu1 %v6487_v26 }
 0x5d1   :  { %2561 = vmatpush1.bf16.msra.mxu0 %v6488_v4  ;;  %2602 = vmatpush1.bf16.msra.mxu1 %v6489_v23  ;;  %v6500_v23 = vld [vmem:[#allocation75_spill] sm:$0xff] }
 0x5d2   :  { %2562 = vmatprep.subr.bf16.mxu0 %v6490_v43  ;;  %2603 = vmatprep.subr.bf16.mxu1 %v6491_v27  ;;  %v6501_v43 = vld [vmem:[#allocation77_spill] sm:$0xff]  ;;  %v6502_v27 = vld [vmem:[#allocation76_spill] sm:$0xff] }
 0x5d5   :  { %2563 = vmatpush1.bf16.msra.mxu0 %v6492_v16  ;;  %2604 = vmatpush1.bf16.msra.mxu1 %v6493_v22  ;;  %v6503_v16 = vld [vmem:[#allocation78_spill] sm:$0xff]  ;;  %v6504_v22 = vld [vmem:[#allocation79_spill] sm:$0xff] }
 0x5d6   :  { %2564 = vmatprep.subr.bf16.mxu0 %v6494_v30  ;;  %2605 = vmatprep.subr.bf16.mxu1 %v6495_v13  ;;  %v6505_v30 = vld [vmem:[#allocation80_spill] sm:$0xff]  ;;  %v6506_v13 = vld [vmem:[#allocation81_spill] sm:$0xff] }
 0x5d9   :  { %2565 = vmatpush1.bf16.msra.mxu0 %v6496_v55  ;;  %2606 = vmatpush1.bf16.msra.mxu1 %v6497_v24  ;;  %v6507_v55 = vld [vmem:[#allocation82_spill] sm:$0xff] }
 0x5da   :  { %2566 = vmatprep.subr.bf16.mxu0 %v6498_v17  ;;  %2607 = vmatprep.subr.bf16.mxu1 %v6499_v14  ;;  %v6508_v17 = vld [vmem:[#allocation83_spill] sm:$0xff]  ;;  %v6509_v14 = vld [vmem:[#allocation85_spill] sm:$0xff] }
 0x5dd   :  { %2567 = vmatpush1.bf16.msra.mxu0 %v6500_v23  ;;  %2608 = vmatpush1.bf16.msra.mxu1 %v6501_v43  ;;  %v6510_v23 = vld [vmem:[#allocation84_spill] sm:$0xff]  ;;  %v6511_v43 = vld [vmem:[#allocation86_spill] sm:$0xff] }
 0x5de   :  { %2568 = vmatprep.subr.bf16.mxu0 %v6502_v27  ;;  %2609 = vmatprep.subr.bf16.mxu1 %v6503_v16  ;;  %v6521_v16 = vld [vmem:[#allocation98_spill] sm:$0xff]  ;;  %v6522_v27 = vld [vmem:[#allocation95_spill] sm:$0xff] }
 0x5e1   :  { %2569 = vmatpush1.bf16.msra.mxu0 %v6504_v22  ;;  %2610 = vmatpush1.bf16.msra.mxu1 %v6505_v30  ;;  %v6512_v22 = vld [vmem:[#allocation87_spill] sm:$0xff]  ;;  %v6513_v30 = vld [vmem:[#allocation89_spill] sm:$0xff] }
 0x5e2   :  { %2662 = vmatprep.subr.bf16.mxu0 %v6506_v13  ;;  %2703 = vmatprep.subr.bf16.mxu1 %v6507_v55  ;;  %v6514_v13 = vld [vmem:[#allocation88_spill] sm:$0xff] }
 0x5e3   :  { %v6515_v55 = vld [vmem:[#allocation92_spill] sm:$0xff] }
 0x5e4   :  { %2587 = vmatmul.mubr.bf16.vlgmr.msra.gmra.mxu0 %v2353_v3  ;;  %2628 = vmatmul.mubr.bf16.vlgmr.msra.gmra.mxu1 %v2353_v3  ;;  %v6516_v3 = vld [vmem:[#allocation90_spill] sm:$0xff] }
 0x5e5   :  { %2663 = vmatpush1.bf16.msra.mxu0 %v6508_v17  ;;  %2704 = vmatpush1.bf16.msra.mxu1 %v6509_v14  ;;  %v6517_v17 = vld [vmem:[#allocation94_spill] sm:$0xff]  ;;  %v6518_v14 = vld [vmem:[#allocation91_spill] sm:$0xff] }
 0x5e6   :  { %2664 = vmatprep.subr.bf16.mxu0 %v6510_v23  ;;  %2705 = vmatprep.subr.bf16.mxu1 %v6511_v43  ;;  %v6519_v23 = vld [vmem:[#allocation96_spill] sm:$0xff]  ;;  %v6520_v43 = vld [vmem:[#allocation93_spill] sm:$0xff] }
 0x5e7   :  { %2694 = vmatprep.mubr.bf16.mxu0 %v6156_v20  ;;  %2735 = vmatprep.mubr.bf16.mxu1 %v6156_v20 }
 0x5e9   :  { %2665 = vmatpush1.bf16.msra.mxu0 %v6512_v22  ;;  %2706 = vmatpush1.bf16.msra.mxu1 %v6513_v30  ;;  %v6523_v22 = vld [vmem:[#allocation100_spill] sm:$0xff]  ;;  %v6524_v30 = vld [vmem:[#allocation97_spill] sm:$0xff] }
 0x5ea   :  { %2666 = vmatprep.subr.bf16.mxu0 %v6514_v13  ;;  %2707 = vmatprep.subr.bf16.mxu1 %v6515_v55  ;;  %v6525_v13 = vld [vmem:[#allocation102_spill] sm:$0xff]  ;;  %v6526_v55 = vld [vmem:[#allocation99_spill] sm:$0xff] }
 0x5ed   :  { %2667 = vmatpush1.bf16.msra.mxu0 %v6516_v3  ;;  %2708 = vmatpush1.bf16.msra.mxu1 %v6517_v17  ;;  %v6527_v3 = vld [vmem:[#allocation104_spill] sm:$0xff]  ;;  %v6528_v17 = vld [vmem:[#allocation101_spill] sm:$0xff] }
 0x5ee   :  { %2668 = vmatprep.subr.bf16.mxu0 %v6518_v14  ;;  %2709 = vmatprep.subr.bf16.mxu1 %v6519_v23  ;;  %v6529_v14 = vld [vmem:[#allocation106_spill] sm:$0xff]  ;;  %v6530_v23 = vld [vmem:[#allocation103_spill] sm:$0xff] }
 0x5f1   :  { %2669 = vmatpush1.bf16.msra.mxu0 %v6520_v43  ;;  %2710 = vmatpush1.bf16.msra.mxu1 %v6521_v16  ;;  %v6531_v43 = vld [vmem:[#allocation51_spill] sm:$0xff]  ;;  %v6532_v16 = vld [vmem:[#allocation105_spill] sm:$0xff] }
 0x5f2   :  { %2670 = vmatprep.subr.bf16.mxu0 %v6522_v27  ;;  %2711 = vmatprep.subr.bf16.mxu1 %v6523_v22  ;;  %v6533_v27 = vld [vmem:[#allocation107_spill] sm:$0xff] }
 0x5f3   :  { %v6534_v22 = vld [vmem:[#allocation47_spill] sm:$0xff] }
 0x5f5   :  { %2671 = vmatpush1.bf16.msra.mxu0 %v6524_v30  ;;  %2712 = vmatpush1.bf16.msra.mxu1 %v6525_v13  ;;  %v6535_v30 = vld [vmem:[#allocation49_spill] sm:$0xff]  ;;  %v6536_v13 = vld [vmem:[#allocation50_spill] sm:$0xff] }
 0x5f6   :  { %2672 = vmatprep.subr.bf16.mxu0 %v6526_v55  ;;  %2713 = vmatprep.subr.bf16.mxu1 %v6527_v3  ;;  %v6537_v55 = vld [vmem:[#allocation48_spill] sm:$0xff]  ;;  %v6538_v3 = vld [vmem:[#allocation45_spill] sm:$0xff] }
 0x5f9   :  { %2673 = vmatpush1.bf16.msra.mxu0 %v6528_v17  ;;  %2714 = vmatpush1.bf16.msra.mxu1 %v6529_v14  ;;  %v6539_v17 = vld [vmem:[#allocation43_spill] sm:$0xff] }
 0x5fa   :  { %2674 = vmatprep.subr.bf16.mxu0 %v6530_v23  ;;  %2715 = vmatprep.subr.bf16.mxu1 %v6531_v43 }
 0x5fd   :  { %2675 = vmatpush1.bf16.msra.mxu0 %v6532_v16  ;;  %2716 = vmatpush1.bf16.msra.mxu1 %v6533_v27 }
 0x5fe   :  { %2676 = vmatprep.subr.bf16.mxu0 %v6534_v22  ;;  %2717 = vmatprep.subr.bf16.mxu1 %v6535_v30 }
 0x601   :  { %2677 = vmatpush1.bf16.msra.mxu0 %v6536_v13  ;;  %2718 = vmatpush1.bf16.msra.mxu1 %v6537_v55 }
 0x602   :  { %2744 = vmatprep.subr.bf16.mxu0 %v6538_v3  ;;  %2785 = vmatprep.subr.bf16.mxu1 %v6539_v17 }
 0x664   :  { %v2389_v14 = vpop.f32.mrf.mxu0  ;;  %v2430_v23 = vpop.f32.mrf.mxu1 }
 0x666   :  { %v2391_v24 = vpop.f32.mrf.mxu0  ;;  %v2432_v43 = vpop.f32.mrf.mxu1 }
 0x668   :  { %v2393_v4 = vpop.f32.mrf.mxu0  ;;  %v2434_v16 = vpop.f32.mrf.mxu1 }
 0x66a   :  { %v2394_v26 = vpop.f32.mrf.mxu0  ;;  %v2435_v27 = vpop.f32.mrf.mxu1 }
 0x684   :  { %v2471_v31 = vpop.f32.mrf.mxu0  ;;  %v2512_v22 = vpop.f32.mrf.mxu1 }
 0x685   :  { %v2472_v29 = vadd.f32 %v2471_v31, %v2389_v14  ;;  %v2513_v16 = vadd.f32 %v2512_v22, %v2430_v23 }
 0x686   :  { %v2473_v30 = vpop.f32.mrf.mxu0  ;;  %v2514_v21 = vpop.f32.mrf.mxu1 }
 0x687   :  { %v2519_v13 = vadd.f32 %v2472_v29, %v5077_v32  ;;  %v2474_v55 = vadd.f32 %v2473_v30, %v2391_v24  ;;  %v2515_v26 = vadd.f32 %v2514_v21, %v2432_v43  ;;  %v2521_v28 = vadd.f32 %v2513_v16, %v5086_v60 }
 0x688   :  { %v2475_v34 = vpop.f32.mrf.mxu0  ;;  %v2516_v3 = vpop.f32.mrf.mxu1 }
 0x689   :  { %v3674_v12 = vmul.f32 -1.442695, %v2519_v13  ;;  %v2520_v17 = vadd.f32 %v2474_v55, %v5079_v48  ;;  %v2522_v27 = vadd.f32 %v2515_v26, %v5083_v62 }
 0x68a   :  { %v2476_v8 = vpop.f32.mrf.mxu0  ;;  %v2517_v25 = vpop.f32.mrf.mxu1 }
 0x68b   :  { %3852 = vpow2.f32 %v3674_v12  ;;  %v3675_v4 = vmul.f32 -1.442695, %v2520_v17  ;;  %v3676_v31 = vmul.f32 -1.442695, %v2522_v27  ;;  %v3677_v25 = vld [vmem:[%s5872_s0 + $0x50] sm:$0xff] }
 0x68c   :  { %v2550_v8 = vunpack.c.l.bf16 %v3677_v25  ;;  %v2551_v12 = vunpack.c.h.bf16 %v3677_v25  ;;  %v3678_v25 = vld [vmem:[%s5872_s0 + $0x58] sm:$0xff] }
 0x68d   :  { %3854 = vpow2.f32 %v3675_v4 }
 0x68e   :  { %3856 = vpow2.f32 %v3676_v31 }
 0x698   :  { %v3853_v14 = vpop.eup %3852 }
 0x699   :  { %v2526_v29 = vadd.f32 1.0, %v3853_v14 }
 0x69a   :  { %v3855_v30 = vpop.eup %3854 }
 0x69b   :  { %3858 = vrcp.f32 %v2526_v29  ;;  %v2532_v34 = vadd.f32 1.0, %v3855_v30  ;;  %v3857_v55 = vpop.eup %3856 }
 0x69c   :  { %3860 = vtanh.f32 %v2521_v28  ;;  %v2539_v31 = vadd.f32 1.0, %v3857_v55 }
 0x69d   :  { %3862 = vrcp.f32 %v2532_v34 }
 0x6a4   :  { %v2588_v21 = vpop.f32.mrf.mxu0  ;;  %v2629_v43 = vpop.f32.mrf.mxu1 }
 0x6a5   :  { %v2589_v23 = vadd.f32 %v2588_v21, %v2550_v8  ;;  %v2553_v8 = vunpack.c.h.bf16 %v3678_v25 }
 0x6a6   :  { %v2590_v22 = vpop.f32.mrf.mxu0  ;;  %v2631_v13 = vpop.f32.mrf.mxu1 }
 0x6a7   :  { %v3679_v24 = vmul.f32 -1.442695, %v2589_v23  ;;  %v2591_v17 = vadd.f32 %v2590_v22, %v2551_v12  ;;  %v2632_v21 = vadd.f32 %v2631_v13, %v2553_v8  ;;  %v2552_v23 = vunpack.c.l.bf16 %v3678_v25 }
 0x6a8   :  { %v3859_v3 = vpop.eup %3858  ;;  %v2592_v4 = vpop.f32.mrf.mxu0 }
 0x6a9   :  { %v2633_v26 = vpop.f32.mrf.mxu1  ;;  %v3861_v27 = vpop.eup %3860  ;;  %3864 = vpow2.f32 %v3679_v24  ;;  %v3680_v28 = vmul.f32 -1.442695, %v2591_v17  ;;  %v3681_v22 = vmul.f32 -1.442695, %v2632_v21  ;;  %v2630_v24 = vadd.f32 %v2629_v43, %v2552_v23  ;;  %v6540_v23 = vld [vmem:[#allocation54_spill] sm:$0xff] }
 0x6aa   :  { %v3863_v16 = vpop.eup %3862  ;;  %v2593_v14 = vpop.f32.mrf.mxu0  ;;  %v2543_v30 = vmul.f32 %v3861_v27, %v3859_v3 }
 0x6ab   :  { %v2634_v29 = vpop.f32.mrf.mxu1  ;;  %v2542_v34 = vmul.f32 %v3863_v16, %v5459_v10  ;;  %3866 = vpow2.f32 %v3680_v28 }
 0x6ac   :  { %3868 = vrcp.f32 %v2539_v31 }
 0x6ad   :  { %v5579_v12 = vadd.f32 %v2543_v30, %v2542_v34 }
 0x6af   :  { %3870 = vtanh.f32 %v5579_v12 }
 0x6b0   :  { %3872 = vpow2.f32 %v3681_v22  ;;  %v6541_v22 = vld [vmem:[#allocation55_spill] sm:$0xff] }
 0x6b6   :  { %v3865_v55 = vpop.eup %3864 }
 0x6b7   :  { %v2639_v17 = vadd.f32 1.0, %v3865_v55  ;;  %v6542_v55 = vld [vmem:[#allocation57_spill] sm:$0xff] }
 0x6b8   :  { %v3867_v3 = vpop.eup %3866 }
 0x6b9   :  { %3874 = vrcp.f32 %v2639_v17  ;;  %v2645_v10 = vadd.f32 1.0, %v3867_v3  ;;  %v3869_v4 = vpop.eup %3868  ;;  %v6544_v17 = vld [vmem:[#allocation58_spill] sm:$0xff]  ;;  %v6545_v3 = vld [vmem:[#allocation59_spill] sm:$0xff] }
 0x6ba   :  { %3876 = vtanh.f32 %v2630_v24  ;;  %v6543_v24 = vld [vmem:[#allocation56_spill] sm:$0xff] }
 0x6bb   :  { %3878 = vrcp.f32 %v2645_v10  ;;  %v6546_v10 = vld [vmem:[#allocation61_spill] sm:$0xff] }
 0x6bc   :  { %v3871_v26 = vpop.eup %3870 }
 0x6bd   :  { %v2546_v27 = vmul.f32 %v3871_v26, %v3869_v4  ;;  %v3873_v43 = vpop.eup %3872  ;;  %v6547_v4 = vld [vmem:[#allocation60_spill] sm:$0xff]  ;;  %v6548_v26 = vld [vmem:[#allocation62_spill] sm:$0xff] }
 0x6be   :  { %v2652_v14 = vadd.f32 1.0, %v3873_v43  ;;  %v6551_v43 = vld [vmem:[#allocation64_spill] sm:$0xff] }
 0x6bf   :  { %v2661_v28 = vpack.c.bf16 %v2546_v27, %v2546_v27  ;;  %v6549_v27 = vld [vmem:[#allocation63_spill] sm:$0xff] }
 0x6c0   :  { %3880 = vrcp.f32 %v2652_v14  ;;  %v6555_v14 = vld [vmem:[#allocation68_spill] sm:$0xff] }
 0x6c1   :  { %2695 = vmatmul.mubr.bf16.vlgmr.msra.gmra.mxu0 %v2661_v28  ;;  %2736 = vmatmul.mubr.bf16.vlgmr.msra.gmra.mxu1 %v2661_v28  ;;  %v6550_v28 = vld [vmem:[#allocation65_spill] sm:$0xff] }
 0x6c2   :  { %2745 = vmatpush1.bf16.msra.mxu0 %v6297_v57  ;;  %2786 = vmatpush1.bf16.msra.mxu1 %v6298_v47 }
 0x6c3   :  { %2746 = vmatprep.subr.bf16.mxu0 %v6299_v49  ;;  %2787 = vmatprep.subr.bf16.mxu1 %v6300_v41 }
 0x6c4   :  { %2776 = vmatprep.mubr.bf16.mxu0 %v6156_v20  ;;  %2817 = vmatprep.mubr.bf16.mxu1 %v6156_v20 }
 0x6c6   :  { %v3875_v13 = vpop.eup %3874  ;;  %2747 = vmatpush1.bf16.msra.mxu0 %v6301_v56  ;;  %2788 = vmatpush1.bf16.msra.mxu1 %v6302_v45 }
 0x6c7   :  { %v3877_v16 = vpop.eup %3876  ;;  %2748 = vmatprep.subr.bf16.mxu0 %v6303_v59  ;;  %2789 = vmatprep.subr.bf16.mxu1 %v6357_v9 }
 0x6c8   :  { %v3879_v31 = vpop.eup %3878  ;;  %v2656_v29 = vmul.f32 %v3877_v16, %v3875_v13  ;;  %v6552_v13 = vld [vmem:[#allocation66_spill] sm:$0xff]  ;;  %v6553_v16 = vld [vmem:[#allocation67_spill] sm:$0xff] }
 0x6c9   :  { %v2655_v30 = vmul.f32 %v3879_v31, %v5475_v6  ;;  %v6554_v31 = vld [vmem:[#allocation69_spill] sm:$0xff] }
 0x6ca   :  { %2749 = vmatpush1.bf16.msra.mxu0 %v6305_v50  ;;  %2790 = vmatpush1.bf16.msra.mxu1 %v6358_v19 }
 0x6cb   :  { %v5595_v34 = vadd.f32 %v2656_v29, %v2655_v30  ;;  %2750 = vmatprep.subr.bf16.mxu0 %v6359_v15  ;;  %2791 = vmatprep.subr.bf16.mxu1 %v6360_v0  ;;  %v6556_v29 = vld [vmem:[#allocation70_spill] sm:$0xff]  ;;  %v6557_v30 = vld [vmem:[#allocation71_spill] sm:$0xff] }
 0x6cd   :  { %3882 = vtanh.f32 %v5595_v34  ;;  %v3881_v6 = vpop.eup %3880 }
 0x6ce   :  { %2751 = vmatpush1.bf16.msra.mxu0 %v6361_v1  ;;  %2792 = vmatpush1.bf16.msra.mxu1 %v6362_v2 }
 0x6cf   :  { %2752 = vmatprep.subr.bf16.mxu0 %v6363_v58  ;;  %2793 = vmatprep.subr.bf16.mxu1 %v6364_v54 }
 0x6d2   :  { %2753 = vmatpush1.bf16.msra.mxu0 %v6365_v63  ;;  %2794 = vmatpush1.bf16.msra.mxu1 %v6366_v51 }
 0x6d3   :  { %2754 = vmatprep.subr.bf16.mxu0 %v6367_v53  ;;  %2795 = vmatprep.subr.bf16.mxu1 %v6368_v11 }
 0x6d6   :  { %2755 = vmatpush1.bf16.msra.mxu0 %v6369_v7  ;;  %2796 = vmatpush1.bf16.msra.mxu1 %v6370_v5 }
 0x6d7   :  { %2756 = vmatprep.subr.bf16.mxu0 %v6371_v18  ;;  %2797 = vmatprep.subr.bf16.mxu1 %v6320_v35 }
 0x6da   :  { %v3883_v25 = vpop.eup %3882  ;;  %2757 = vmatpush1.bf16.msra.mxu0 %v6321_v42  ;;  %2798 = vmatpush1.bf16.msra.mxu1 %v6322_v44 }
 0x6db   :  { %2758 = vmatprep.subr.bf16.mxu0 %v6323_v61  ;;  %2799 = vmatprep.subr.bf16.mxu1 %v6324_v40  ;;  %v2659_v8 = vmul.f32 %v3883_v25, %v3881_v6  ;;  %v6558_v6 = vld [vmem:[#allocation73_spill] sm:$0xff]  ;;  %v6559_v25 = vld [vmem:[#allocation72_spill] sm:$0xff] }
 0x6dd   :  { %v2660_v21 = vpack.c.bf16 %v2659_v8, %v2659_v8  ;;  %v6560_v8 = vld [vmem:[#allocation74_spill] sm:$0xff] }
 0x6de   :  { %2759 = vmatpush1.bf16.msra.mxu0 %v6325_v37  ;;  %2800 = vmatpush1.bf16.msra.mxu1 %v6326_v36 }
 0x6df   :  { %2861 = vmatprep.subr.bf16.mxu0 %v6327_v46  ;;  %2902 = vmatprep.subr.bf16.mxu1 %v6328_v52 }
 0x6e1   :  { %2777 = vmatmul.mubr.bf16.vlgmr.msra.gmra.mxu0 %v2660_v21  ;;  %2818 = vmatmul.mubr.bf16.vlgmr.msra.gmra.mxu1 %v2660_v21 }
 0x6e2   :  { %2862 = vmatpush1.bf16.msra.mxu0 %v4507_v39  ;;  %2903 = vmatpush1.bf16.msra.mxu1 %v4520_v33 }
 0x6e3   :  { %2863 = vmatprep.subr.bf16.mxu0 %v4511_v38  ;;  %2904 = vmatprep.subr.bf16.mxu1 %v6540_v23 }
 0x6e4   :  { %2893 = vmatprep.mubr.bf16.mxu0 %v6156_v20  ;;  %2934 = vmatprep.mubr.bf16.mxu1 %v6156_v20 }
 0x6e6   :  { %2864 = vmatpush1.bf16.msra.mxu0 %v6541_v22  ;;  %2905 = vmatpush1.bf16.msra.mxu1 %v6542_v55 }
 0x6e7   :  { %2865 = vmatprep.subr.bf16.mxu0 %v6543_v24  ;;  %2906 = vmatprep.subr.bf16.mxu1 %v6544_v17 }
 0x6ea   :  { %2866 = vmatpush1.bf16.msra.mxu0 %v6545_v3  ;;  %2907 = vmatpush1.bf16.msra.mxu1 %v6546_v10 }
 0x6eb   :  { %2867 = vmatprep.subr.bf16.mxu0 %v6547_v4  ;;  %2908 = vmatprep.subr.bf16.mxu1 %v6548_v26 }
 0x6ee   :  { %2868 = vmatpush1.bf16.msra.mxu0 %v6549_v27  ;;  %2909 = vmatpush1.bf16.msra.mxu1 %v6550_v28  ;;  %v6561_v28 = vld [vmem:[#allocation75_spill] sm:$0xff] }
 0x6ef   :  { %2869 = vmatprep.subr.bf16.mxu0 %v6551_v43  ;;  %2910 = vmatprep.subr.bf16.mxu1 %v6552_v13  ;;  %v6562_v43 = vld [vmem:[#allocation77_spill] sm:$0xff]  ;;  %v6563_v13 = vld [vmem:[#allocation76_spill] sm:$0xff] }
 0x6f2   :  { %2870 = vmatpush1.bf16.msra.mxu0 %v6553_v16  ;;  %2911 = vmatpush1.bf16.msra.mxu1 %v6554_v31  ;;  %v6564_v16 = vld [vmem:[#allocation78_spill] sm:$0xff]  ;;  %v6565_v31 = vld [vmem:[#allocation79_spill] sm:$0xff] }
 0x6f3   :  { %2871 = vmatprep.subr.bf16.mxu0 %v6555_v14  ;;  %2912 = vmatprep.subr.bf16.mxu1 %v6556_v29  ;;  %v6566_v14 = vld [vmem:[#allocation80_spill] sm:$0xff]  ;;  %v6567_v29 = vld [vmem:[#allocation81_spill] sm:$0xff] }
 0x6f6   :  { %2872 = vmatpush1.bf16.msra.mxu0 %v6557_v30  ;;  %2913 = vmatpush1.bf16.msra.mxu1 %v6558_v6  ;;  %v6568_v30 = vld [vmem:[#allocation82_spill] sm:$0xff] }
 0x6f7   :  { %2873 = vmatprep.subr.bf16.mxu0 %v6559_v25  ;;  %2914 = vmatprep.subr.bf16.mxu1 %v6560_v8  ;;  %v6569_v25 = vld [vmem:[#allocation83_spill] sm:$0xff]  ;;  %v6570_v8 = vld [vmem:[#allocation85_spill] sm:$0xff] }
 0x6fa   :  { %2874 = vmatpush1.bf16.msra.mxu0 %v6561_v28  ;;  %2915 = vmatpush1.bf16.msra.mxu1 %v6562_v43  ;;  %v6571_v28 = vld [vmem:[#allocation84_spill] sm:$0xff]  ;;  %v6572_v43 = vld [vmem:[#allocation86_spill] sm:$0xff] }
 0x6fb   :  { %2875 = vmatprep.subr.bf16.mxu0 %v6563_v13  ;;  %2916 = vmatprep.subr.bf16.mxu1 %v6564_v16  ;;  %v6582_v16 = vld [vmem:[#allocation98_spill] sm:$0xff]  ;;  %v6583_v13 = vld [vmem:[#allocation95_spill] sm:$0xff] }
 0x6fe   :  { %2876 = vmatpush1.bf16.msra.mxu0 %v6565_v31  ;;  %2917 = vmatpush1.bf16.msra.mxu1 %v6566_v14  ;;  %v6573_v31 = vld [vmem:[#allocation87_spill] sm:$0xff]  ;;  %v6574_v14 = vld [vmem:[#allocation89_spill] sm:$0xff] }
 0x6ff   :  { %2969 = vmatprep.subr.bf16.mxu0 %v6567_v29  ;;  %3010 = vmatprep.subr.bf16.mxu1 %v6568_v30  ;;  %v6575_v29 = vld [vmem:[#allocation88_spill] sm:$0xff] }
 0x700   :  { %v6576_v30 = vld [vmem:[#allocation92_spill] sm:$0xff] }
 0x701   :  { %2894 = vmatmul.mubr.bf16.vlgmr.msra.gmra.mxu0 %v2660_v21  ;;  %2935 = vmatmul.mubr.bf16.vlgmr.msra.gmra.mxu1 %v2660_v21  ;;  %v6577_v21 = vld [vmem:[#allocation90_spill] sm:$0xff] }
 0x702   :  { %2970 = vmatpush1.bf16.msra.mxu0 %v6569_v25  ;;  %3011 = vmatpush1.bf16.msra.mxu1 %v6570_v8  ;;  %v6578_v25 = vld [vmem:[#allocation94_spill] sm:$0xff]  ;;  %v6579_v8 = vld [vmem:[#allocation91_spill] sm:$0xff] }
 0x703   :  { %2971 = vmatprep.subr.bf16.mxu0 %v6571_v28  ;;  %3012 = vmatprep.subr.bf16.mxu1 %v6572_v43  ;;  %v6580_v28 = vld [vmem:[#allocation96_spill] sm:$0xff]  ;;  %v6581_v43 = vld [vmem:[#allocation93_spill] sm:$0xff] }
 0x704   :  { %3001 = vmatprep.mubr.bf16.mxu0 %v6156_v20  ;;  %3042 = vmatprep.mubr.bf16.mxu1 %v6156_v20 }
 0x706   :  { %2972 = vmatpush1.bf16.msra.mxu0 %v6573_v31  ;;  %3013 = vmatpush1.bf16.msra.mxu1 %v6574_v14  ;;  %v6584_v31 = vld [vmem:[#allocation100_spill] sm:$0xff]  ;;  %v6585_v14 = vld [vmem:[#allocation97_spill] sm:$0xff] }
 0x707   :  { %2973 = vmatprep.subr.bf16.mxu0 %v6575_v29  ;;  %3014 = vmatprep.subr.bf16.mxu1 %v6576_v30  ;;  %v6586_v29 = vld [vmem:[#allocation102_spill] sm:$0xff]  ;;  %v6587_v30 = vld [vmem:[#allocation99_spill] sm:$0xff] }
 0x70a   :  { %2974 = vmatpush1.bf16.msra.mxu0 %v6577_v21  ;;  %3015 = vmatpush1.bf16.msra.mxu1 %v6578_v25  ;;  %v6588_v21 = vld [vmem:[#allocation104_spill] sm:$0xff]  ;;  %v6589_v25 = vld [vmem:[#allocation101_spill] sm:$0xff] }
 0x70b   :  { %2975 = vmatprep.subr.bf16.mxu0 %v6579_v8  ;;  %3016 = vmatprep.subr.bf16.mxu1 %v6580_v28  ;;  %v6590_v8 = vld [vmem:[#allocation106_spill] sm:$0xff]  ;;  %v6591_v28 = vld [vmem:[#allocation103_spill] sm:$0xff] }
 0x70e   :  { %2976 = vmatpush1.bf16.msra.mxu0 %v6581_v43  ;;  %3017 = vmatpush1.bf16.msra.mxu1 %v6582_v16  ;;  %v6592_v43 = vld [vmem:[#allocation51_spill] sm:$0xff]  ;;  %v6593_v16 = vld [vmem:[#allocation105_spill] sm:$0xff] }
 0x70f   :  { %2977 = vmatprep.subr.bf16.mxu0 %v6583_v13  ;;  %3018 = vmatprep.subr.bf16.mxu1 %v6584_v31  ;;  %v6594_v13 = vld [vmem:[#allocation107_spill] sm:$0xff] }
 0x710   :  { %v6595_v31 = vld [vmem:[#allocation47_spill] sm:$0xff] }
 0x712   :  { %2978 = vmatpush1.bf16.msra.mxu0 %v6585_v14  ;;  %3019 = vmatpush1.bf16.msra.mxu1 %v6586_v29  ;;  %v6596_v14 = vld [vmem:[#allocation49_spill] sm:$0xff]  ;;  %v6597_v29 = vld [vmem:[#allocation50_spill] sm:$0xff] }
 0x713   :  { %2979 = vmatprep.subr.bf16.mxu0 %v6587_v30  ;;  %3020 = vmatprep.subr.bf16.mxu1 %v6588_v21  ;;  %v6598_v30 = vld [vmem:[#allocation48_spill] sm:$0xff]  ;;  %v6599_v21 = vld [vmem:[#allocation45_spill] sm:$0xff] }
 0x716   :  { %2980 = vmatpush1.bf16.msra.mxu0 %v6589_v25  ;;  %3021 = vmatpush1.bf16.msra.mxu1 %v6590_v8  ;;  %v6600_v25 = vld [vmem:[#allocation43_spill] sm:$0xff] }
 0x717   :  { %2981 = vmatprep.subr.bf16.mxu0 %v6591_v28  ;;  %3022 = vmatprep.subr.bf16.mxu1 %v6592_v43 }
 0x71a   :  { %2982 = vmatpush1.bf16.msra.mxu0 %v6593_v16  ;;  %3023 = vmatpush1.bf16.msra.mxu1 %v6594_v13 }
 0x71b   :  { %2983 = vmatprep.subr.bf16.mxu0 %v6595_v31  ;;  %3024 = vmatprep.subr.bf16.mxu1 %v6596_v14 }
 0x71e   :  { %2984 = vmatpush1.bf16.msra.mxu0 %v6597_v29  ;;  %3025 = vmatpush1.bf16.msra.mxu1 %v6598_v30 }
 0x71f   :  { %3051 = vmatprep.subr.bf16.mxu0 %v6599_v21  ;;  %3092 = vmatprep.subr.bf16.mxu1 %v6600_v25 }
 0x781   :  { %v2696_v8 = vpop.f32.mrf.mxu0  ;;  %v2737_v28 = vpop.f32.mrf.mxu1 }
 0x783   :  { %v2698_v6 = vpop.f32.mrf.mxu0  ;;  %v2739_v43 = vpop.f32.mrf.mxu1 }
 0x785   :  { %v2700_v27 = vpop.f32.mrf.mxu0  ;;  %v2741_v16 = vpop.f32.mrf.mxu1 }
 0x787   :  { %v2701_v26 = vpop.f32.mrf.mxu0  ;;  %v2742_v13 = vpop.f32.mrf.mxu1 }
 0x7a1   :  { %v2778_v4 = vpop.f32.mrf.mxu0  ;;  %v2819_v31 = vpop.f32.mrf.mxu1 }
 0x7a2   :  { %v2779_v10 = vadd.f32 %v2778_v4, %v2696_v8  ;;  %v2820_v16 = vadd.f32 %v2819_v31, %v2737_v28 }
 0x7a3   :  { %v2780_v14 = vpop.f32.mrf.mxu0  ;;  %v2821_v3 = vpop.f32.mrf.mxu1 }
 0x7a4   :  { %v2826_v29 = vadd.f32 %v2779_v10, %v5077_v32  ;;  %v2781_v30 = vadd.f32 %v2780_v14, %v2698_v6  ;;  %v2822_v26 = vadd.f32 %v2821_v3, %v2739_v43  ;;  %v2828_v23 = vadd.f32 %v2820_v16, %v5086_v60 }
 0x7a5   :  { %v2782_v17 = vpop.f32.mrf.mxu0  ;;  %v2823_v21 = vpop.f32.mrf.mxu1 }
 0x7a6   :  { %v3682_v24 = vmul.f32 -1.442695, %v2826_v29  ;;  %v2827_v25 = vadd.f32 %v2781_v30, %v5079_v48  ;;  %v2829_v13 = vadd.f32 %v2822_v26, %v5083_v62 }
 0x7a7   :  { %v2783_v55 = vpop.f32.mrf.mxu0  ;;  %v2824_v22 = vpop.f32.mrf.mxu1 }
 0x7a8   :  { %3884 = vpow2.f32 %v3682_v24  ;;  %v3683_v27 = vmul.f32 -1.442695, %v2827_v25  ;;  %v3684_v4 = vmul.f32 -1.442695, %v2829_v13  ;;  %v3685_v22 = vld [vmem:[%s5872_s0 + $0x60] sm:$0xff] }
 0x7a9   :  { %v2857_v55 = vunpack.c.l.bf16 %v3685_v22  ;;  %v2858_v24 = vunpack.c.h.bf16 %v3685_v22  ;;  %v3686_v22 = vld [vmem:[%s5872_s0 + $0x68] sm:$0xff] }
 0x7aa   :  { %3886 = vpow2.f32 %v3683_v27 }
 0x7ab   :  { %3888 = vpow2.f32 %v3684_v4 }
 0x7b5   :  { %v3885_v8 = vpop.eup %3884 }
 0x7b6   :  { %v2833_v10 = vadd.f32 1.0, %v3885_v8 }
 0x7b7   :  { %v3887_v14 = vpop.eup %3886 }
 0x7b8   :  { %3890 = vrcp.f32 %v2833_v10  ;;  %v2839_v17 = vadd.f32 1.0, %v3887_v14  ;;  %v3889_v30 = vpop.eup %3888 }
 0x7b9   :  { %3892 = vtanh.f32 %v2828_v23  ;;  %v2846_v4 = vadd.f32 1.0, %v3889_v30 }
 0x7ba   :  { %3894 = vrcp.f32 %v2839_v17 }
 0x7c1   :  { %v2895_v3 = vpop.f32.mrf.mxu0  ;;  %v2936_v43 = vpop.f32.mrf.mxu1 }
 0x7c2   :  { %v2896_v28 = vadd.f32 %v2895_v3, %v2857_v55  ;;  %v2860_v55 = vunpack.c.h.bf16 %v3686_v22 }
 0x7c3   :  { %v2897_v31 = vpop.f32.mrf.mxu0  ;;  %v2938_v29 = vpop.f32.mrf.mxu1 }
 0x7c4   :  { %v3687_v6 = vmul.f32 -1.442695, %v2896_v28  ;;  %v2898_v25 = vadd.f32 %v2897_v31, %v2858_v24  ;;  %v2939_v3 = vadd.f32 %v2938_v29, %v2860_v55  ;;  %v2859_v28 = vunpack.c.l.bf16 %v3686_v22 }
 0x7c5   :  { %v3891_v21 = vpop.eup %3890  ;;  %v2899_v27 = vpop.f32.mrf.mxu0 }
 0x7c6   :  { %v2940_v26 = vpop.f32.mrf.mxu1  ;;  %v3893_v13 = vpop.eup %3892  ;;  %3896 = vpow2.f32 %v3687_v6  ;;  %v3688_v23 = vmul.f32 -1.442695, %v2898_v25  ;;  %v3689_v31 = vmul.f32 -1.442695, %v2939_v3  ;;  %v2937_v6 = vadd.f32 %v2936_v43, %v2859_v28  ;;  %v6601_v28 = vld [vmem:[#allocation54_spill] sm:$0xff] }
 0x7c7   :  { %v3895_v16 = vpop.eup %3894  ;;  %v2900_v8 = vpop.f32.mrf.mxu0  ;;  %v2850_v14 = vmul.f32 %v3893_v13, %v3891_v21 }
 0x7c8   :  { %v2941_v10 = vpop.f32.mrf.mxu1  ;;  %v2849_v17 = vmul.f32 %v3895_v16, %v5579_v12  ;;  %3898 = vpow2.f32 %v3688_v23 }
 0x7c9   :  { %3900 = vrcp.f32 %v2846_v4 }
 0x7ca   :  { %v5699_v24 = vadd.f32 %v2850_v14, %v2849_v17 }
 0x7cc   :  { %3902 = vtanh.f32 %v5699_v24 }
 0x7cd   :  { %3904 = vpow2.f32 %v3689_v31  ;;  %v6602_v31 = vld [vmem:[#allocation55_spill] sm:$0xff] }
 0x7d3   :  { %v3897_v30 = vpop.eup %3896 }
 0x7d4   :  { %v2946_v25 = vadd.f32 1.0, %v3897_v30  ;;  %v6603_v30 = vld [vmem:[#allocation57_spill] sm:$0xff] }
 0x7d5   :  { %v3899_v21 = vpop.eup %3898 }
 0x7d6   :  { %3906 = vrcp.f32 %v2946_v25  ;;  %v2952_v12 = vadd.f32 1.0, %v3899_v21  ;;  %v3901_v27 = vpop.eup %3900  ;;  %v6610_v25 = vld [vmem:[#allocation63_spill] sm:$0xff]  ;;  %v6611_v21 = vld [vmem:[#allocation65_spill] sm:$0xff] }
 0x7d7   :  { %3908 = vtanh.f32 %v2937_v6  ;;  %v6606_v6 = vld [vmem:[#allocation59_spill] sm:$0xff] }
 0x7d8   :  { %3910 = vrcp.f32 %v2952_v12  ;;  %v6612_v12 = vld [vmem:[#allocation64_spill] sm:$0xff] }
 0x7d9   :  { %v3903_v26 = vpop.eup %3902 }
 0x7da   :  { %v2853_v13 = vmul.f32 %v3903_v26, %v3901_v27  ;;  %v3905_v43 = vpop.eup %3904  ;;  %v6613_v27 = vld [vmem:[#allocation66_spill] sm:$0xff]  ;;  %v6614_v26 = vld [vmem:[#allocation67_spill] sm:$0xff] }
 0x7db   :  { %v2959_v8 = vadd.f32 1.0, %v3905_v43  ;;  %v6617_v43 = vld [vmem:[#allocation70_spill] sm:$0xff] }
 0x7dc   :  { %v2968_v23 = vpack.c.bf16 %v2853_v13, %v2853_v13  ;;  %v6615_v13 = vld [vmem:[#allocation69_spill] sm:$0xff] }
 0x7dd   :  { %3912 = vrcp.f32 %v2959_v8  ;;  %v6621_v8 = vld [vmem:[#allocation74_spill] sm:$0xff] }
 0x7de   :  { %3002 = vmatmul.mubr.bf16.vlgmr.msra.gmra.mxu0 %v2968_v23  ;;  %3043 = vmatmul.mubr.bf16.vlgmr.msra.gmra.mxu1 %v2968_v23  ;;  %v6616_v23 = vld [vmem:[#allocation68_spill] sm:$0xff] }
 0x7df   :  { %3052 = vmatpush1.bf16.msra.mxu0 %v6297_v57  ;;  %3093 = vmatpush1.bf16.msra.mxu1 %v6298_v47 }
 0x7e0   :  { %3053 = vmatprep.subr.bf16.mxu0 %v6299_v49  ;;  %3094 = vmatprep.subr.bf16.mxu1 %v6300_v41 }
 0x7e1   :  { %3083 = vmatprep.mubr.bf16.mxu0 %v6156_v20  ;;  %3124 = vmatprep.mubr.bf16.mxu1 %v6156_v20 }
 0x7e3   :  { %v3907_v29 = vpop.eup %3906  ;;  %3054 = vmatpush1.bf16.msra.mxu0 %v6301_v56  ;;  %3095 = vmatpush1.bf16.msra.mxu1 %v6302_v45 }
 0x7e4   :  { %v3909_v16 = vpop.eup %3908  ;;  %3055 = vmatprep.subr.bf16.mxu0 %v6303_v59  ;;  %3096 = vmatprep.subr.bf16.mxu1 %v6357_v9 }
 0x7e5   :  { %v3911_v4 = vpop.eup %3910  ;;  %v2963_v10 = vmul.f32 %v3909_v16, %v3907_v29  ;;  %v6618_v29 = vld [vmem:[#allocation71_spill] sm:$0xff]  ;;  %v6619_v16 = vld [vmem:[#allocation73_spill] sm:$0xff] }
 0x7e6   :  { %v2962_v14 = vmul.f32 %v3911_v4, %v5595_v34  ;;  %v6620_v4 = vld [vmem:[#allocation72_spill] sm:$0xff] }
 0x7e7   :  { %3056 = vmatpush1.bf16.msra.mxu0 %v6305_v50  ;;  %3097 = vmatpush1.bf16.msra.mxu1 %v6358_v19 }
 0x7e8   :  { %v5715_v17 = vadd.f32 %v2963_v10, %v2962_v14  ;;  %3057 = vmatprep.subr.bf16.mxu0 %v6359_v15  ;;  %3098 = vmatprep.subr.bf16.mxu1 %v6360_v0  ;;  %v6622_v10 = vld [vmem:[#allocation75_spill] sm:$0xff]  ;;  %v6623_v14 = vld [vmem:[#allocation77_spill] sm:$0xff] }
 0x7ea   :  { %3914 = vtanh.f32 %v5715_v17  ;;  %v3913_v34 = vpop.eup %3912 }
 0x7eb   :  { %3058 = vmatpush1.bf16.msra.mxu0 %v6361_v1  ;;  %3099 = vmatpush1.bf16.msra.mxu1 %v6362_v2 }
 0x7ec   :  { %3059 = vmatprep.subr.bf16.mxu0 %v6363_v58  ;;  %3100 = vmatprep.subr.bf16.mxu1 %v6364_v54 }
 0x7ef   :  { %3060 = vmatpush1.bf16.msra.mxu0 %v6365_v63  ;;  %3101 = vmatpush1.bf16.msra.mxu1 %v6366_v51 }
 0x7f0   :  { %3061 = vmatprep.subr.bf16.mxu0 %v6367_v53  ;;  %3102 = vmatprep.subr.bf16.mxu1 %v6368_v11 }
 0x7f3   :  { %3062 = vmatpush1.bf16.msra.mxu0 %v6369_v7  ;;  %3103 = vmatpush1.bf16.msra.mxu1 %v6370_v5 }
 0x7f4   :  { %3063 = vmatprep.subr.bf16.mxu0 %v6371_v18  ;;  %3104 = vmatprep.subr.bf16.mxu1 %v6320_v35 }
 0x7f7   :  { %v3915_v22 = vpop.eup %3914  ;;  %3064 = vmatpush1.bf16.msra.mxu0 %v6321_v42  ;;  %3105 = vmatpush1.bf16.msra.mxu1 %v6322_v44 }
 0x7f8   :  { %3065 = vmatprep.subr.bf16.mxu0 %v6323_v61  ;;  %3106 = vmatprep.subr.bf16.mxu1 %v6324_v40  ;;  %v2966_v55 = vmul.f32 %v3915_v22, %v3913_v34  ;;  %v6624_v34 = vld [vmem:[#allocation76_spill] sm:$0xff]  ;;  %v6625_v22 = vld [vmem:[#allocation78_spill] sm:$0xff] }
 0x7fa   :  { %v2967_v3 = vpack.c.bf16 %v2966_v55, %v2966_v55  ;;  %v6626_v55 = vld [vmem:[#allocation79_spill] sm:$0xff] }
 0x7fb   :  { %3066 = vmatpush1.bf16.msra.mxu0 %v6325_v37  ;;  %3107 = vmatpush1.bf16.msra.mxu1 %v6326_v36 }
 0x7fc   :  { %3168 = vmatprep.subr.bf16.mxu0 %v6327_v46  ;;  %3209 = vmatprep.subr.bf16.mxu1 %v6328_v52  ;;  %v6604_v46 = vld [vmem:[#allocation56_spill] sm:$0xff]  ;;  %v6605_v52 = vld [vmem:[#allocation58_spill] sm:$0xff] }
 0x7fe   :  { %3084 = vmatmul.mubr.bf16.vlgmr.msra.gmra.mxu0 %v2967_v3  ;;  %3125 = vmatmul.mubr.bf16.vlgmr.msra.gmra.mxu1 %v2967_v3 }
 0x7ff   :  { %3169 = vmatpush1.bf16.msra.mxu0 %v4507_v39  ;;  %3210 = vmatpush1.bf16.msra.mxu1 %v4520_v33  ;;  %v6607_v39 = vld [vmem:[#allocation61_spill] sm:$0xff]  ;;  %v6608_v33 = vld [vmem:[#allocation60_spill] sm:$0xff] }
 0x800   :  { %3170 = vmatprep.subr.bf16.mxu0 %v4511_v38  ;;  %3211 = vmatprep.subr.bf16.mxu1 %v6601_v28  ;;  %v6609_v38 = vld [vmem:[#allocation62_spill] sm:$0xff]  ;;  %v6627_v28 = vld [vmem:[#allocation80_spill] sm:$0xff] }
 0x801   :  { %3200 = vmatprep.mubr.bf16.mxu0 %v6156_v20  ;;  %3241 = vmatprep.mubr.bf16.mxu1 %v6156_v20 }
 0x803   :  { %3171 = vmatpush1.bf16.msra.mxu0 %v6602_v31  ;;  %3212 = vmatpush1.bf16.msra.mxu1 %v6603_v30  ;;  %v6628_v31 = vld [vmem:[#allocation81_spill] sm:$0xff]  ;;  %v6629_v30 = vld [vmem:[#allocation82_spill] sm:$0xff] }
 0x804   :  { %3172 = vmatprep.subr.bf16.mxu0 %v6604_v46  ;;  %3213 = vmatprep.subr.bf16.mxu1 %v6605_v52  ;;  %v6630_v46 = vld [vmem:[#allocation83_spill] sm:$0xff]  ;;  %v6631_v52 = vld [vmem:[#allocation85_spill] sm:$0xff] }
 0x807   :  { %3173 = vmatpush1.bf16.msra.mxu0 %v6606_v6  ;;  %3214 = vmatpush1.bf16.msra.mxu1 %v6607_v39  ;;  %v6632_v6 = vld [vmem:[#allocation84_spill] sm:$0xff]  ;;  %v6633_v39 = vld [vmem:[#allocation86_spill] sm:$0xff] }
 0x808   :  { %3174 = vmatprep.subr.bf16.mxu0 %v6608_v33  ;;  %3215 = vmatprep.subr.bf16.mxu1 %v6609_v38  ;;  %v6634_v33 = vld [vmem:[#allocation87_spill] sm:$0xff]  ;;  %v6635_v38 = vld [vmem:[#allocation89_spill] sm:$0xff] }
 0x80b   :  { %3175 = vmatpush1.bf16.msra.mxu0 %v6610_v25  ;;  %3216 = vmatpush1.bf16.msra.mxu1 %v6611_v21  ;;  %v6636_v25 = vld [vmem:[#allocation88_spill] sm:$0xff] }
 0x80c   :  { %3176 = vmatprep.subr.bf16.mxu0 %v6612_v12  ;;  %3217 = vmatprep.subr.bf16.mxu1 %v6613_v27  ;;  %v6637_v21 = vld [vmem:[#allocation92_spill] sm:$0xff]  ;;  %v6639_v12 = vld [vmem:[#allocation94_spill] sm:$0xff]  ;;  %v6640_v27 = vld [vmem:[#allocation91_spill] sm:$0xff] }
 0x80f   :  { %3177 = vmatpush1.bf16.msra.mxu0 %v6614_v26  ;;  %3218 = vmatpush1.bf16.msra.mxu1 %v6615_v13  ;;  %v6641_v26 = vld [vmem:[#allocation96_spill] sm:$0xff]  ;;  %v6642_v13 = vld [vmem:[#allocation93_spill] sm:$0xff] }
 0x810   :  { %3178 = vmatprep.subr.bf16.mxu0 %v6616_v23  ;;  %3219 = vmatprep.subr.bf16.mxu1 %v6617_v43  ;;  %v6643_v23 = vld [vmem:[#allocation98_spill] sm:$0xff]  ;;  %v6644_v43 = vld [vmem:[#allocation95_spill] sm:$0xff] }
 0x813   :  { %3179 = vmatpush1.bf16.msra.mxu0 %v6618_v29  ;;  %3220 = vmatpush1.bf16.msra.mxu1 %v6619_v16  ;;  %v6645_v29 = vld [vmem:[#allocation100_spill] sm:$0xff]  ;;  %v6646_v16 = vld [vmem:[#allocation97_spill] sm:$0xff] }
 0x814   :  { %3180 = vmatprep.subr.bf16.mxu0 %v6620_v4  ;;  %3221 = vmatprep.subr.bf16.mxu1 %v6621_v8  ;;  %v6647_v4 = vld [vmem:[#allocation102_spill] sm:$0xff]  ;;  %v6648_v8 = vld [vmem:[#allocation99_spill] sm:$0xff] }
 0x817   :  { %3181 = vmatpush1.bf16.msra.mxu0 %v6622_v10  ;;  %3222 = vmatpush1.bf16.msra.mxu1 %v6623_v14  ;;  %v6649_v10 = vld [vmem:[#allocation104_spill] sm:$0xff]  ;;  %v6650_v14 = vld [vmem:[#allocation101_spill] sm:$0xff] }
 0x818   :  { %3182 = vmatprep.subr.bf16.mxu0 %v6624_v34  ;;  %3223 = vmatprep.subr.bf16.mxu1 %v6625_v22  ;;  %v6651_v34 = vld [vmem:[#allocation106_spill] sm:$0xff]  ;;  %v6652_v22 = vld [vmem:[#allocation103_spill] sm:$0xff] }
 0x81b   :  { %3183 = vmatpush1.bf16.msra.mxu0 %v6626_v55  ;;  %3224 = vmatpush1.bf16.msra.mxu1 %v6627_v28  ;;  %v6653_v55 = vld [vmem:[#allocation51_spill] sm:$0xff]  ;;  %v6654_v28 = vld [vmem:[#allocation105_spill] sm:$0xff] }
 0x81c   :  { %3276 = vmatprep.subr.bf16.mxu0 %v6628_v31  ;;  %3317 = vmatprep.subr.bf16.mxu1 %v6629_v30  ;;  %v6655_v31 = vld [vmem:[#allocation107_spill] sm:$0xff] }
 0x81d   :  { %v6656_v30 = vld [vmem:[#allocation47_spill] sm:$0xff] }
 0x81e   :  { %3201 = vmatmul.mubr.bf16.vlgmr.msra.gmra.mxu0 %v2967_v3  ;;  %3242 = vmatmul.mubr.bf16.vlgmr.msra.gmra.mxu1 %v2967_v3  ;;  %v6638_v3 = vld [vmem:[#allocation90_spill] sm:$0xff] }
 0x81f   :  { %3277 = vmatpush1.bf16.msra.mxu0 %v6630_v46  ;;  %3318 = vmatpush1.bf16.msra.mxu1 %v6631_v52  ;;  %v6657_v46 = vld [vmem:[#allocation49_spill] sm:$0xff]  ;;  %v6658_v52 = vld [vmem:[#allocation50_spill] sm:$0xff] }
 0x820   :  { %3278 = vmatprep.subr.bf16.mxu0 %v6632_v6  ;;  %3319 = vmatprep.subr.bf16.mxu1 %v6633_v39  ;;  %v6659_v6 = vld [vmem:[#allocation48_spill] sm:$0xff]  ;;  %v6660_v39 = vld [vmem:[#allocation45_spill] sm:$0xff] }
 0x821   :  { %3308 = vmatprep.mubr.bf16.mxu0 %v6156_v20  ;;  %3349 = vmatprep.mubr.bf16.mxu1 %v6156_v20 }
 0x823   :  { %3279 = vmatpush1.bf16.msra.mxu0 %v6634_v33  ;;  %3320 = vmatpush1.bf16.msra.mxu1 %v6635_v38  ;;  %v6661_v33 = vld [vmem:[#allocation43_spill] sm:$0xff] }
 0x824   :  { %3280 = vmatprep.subr.bf16.mxu0 %v6636_v25  ;;  %3321 = vmatprep.subr.bf16.mxu1 %v6637_v21 }
 0x827   :  { %3281 = vmatpush1.bf16.msra.mxu0 %v6638_v3  ;;  %3322 = vmatpush1.bf16.msra.mxu1 %v6639_v12 }
 0x828   :  { %3282 = vmatprep.subr.bf16.mxu0 %v6640_v27  ;;  %3323 = vmatprep.subr.bf16.mxu1 %v6641_v26 }
 0x82b   :  { %3283 = vmatpush1.bf16.msra.mxu0 %v6642_v13  ;;  %3324 = vmatpush1.bf16.msra.mxu1 %v6643_v23 }
 0x82c   :  { %3284 = vmatprep.subr.bf16.mxu0 %v6644_v43  ;;  %3325 = vmatprep.subr.bf16.mxu1 %v6645_v29 }
 0x82f   :  { %3285 = vmatpush1.bf16.msra.mxu0 %v6646_v16  ;;  %3326 = vmatpush1.bf16.msra.mxu1 %v6647_v4 }
 0x830   :  { %3286 = vmatprep.subr.bf16.mxu0 %v6648_v8  ;;  %3327 = vmatprep.subr.bf16.mxu1 %v6649_v10 }
 0x833   :  { %3287 = vmatpush1.bf16.msra.mxu0 %v6650_v14  ;;  %3328 = vmatpush1.bf16.msra.mxu1 %v6651_v34 }
 0x834   :  { %3288 = vmatprep.subr.bf16.mxu0 %v6652_v22  ;;  %3329 = vmatprep.subr.bf16.mxu1 %v6653_v55 }
 0x837   :  { %3289 = vmatpush1.bf16.msra.mxu0 %v6654_v28  ;;  %3330 = vmatpush1.bf16.msra.mxu1 %v6655_v31 }
 0x838   :  { %3290 = vmatprep.subr.bf16.mxu0 %v6656_v30  ;;  %3331 = vmatprep.subr.bf16.mxu1 %v6657_v46 }
 0x83b   :  { %3291 = vmatpush1.bf16.msra.mxu0 %v6658_v52  ;;  %3332 = vmatpush1.bf16.msra.mxu1 %v6659_v6 }
 0x83c   :  { %3358 = vmatprep.subr.bf16.mxu0 %v6660_v39  ;;  %3399 = vmatprep.subr.bf16.mxu1 %v6661_v33 }
 0x89e   :  { %v3003_v38 = vpop.f32.mrf.mxu0  ;;  %v3044_v25 = vpop.f32.mrf.mxu1 }
 0x8a0   :  { %v3005_v21 = vpop.f32.mrf.mxu0  ;;  %v3046_v3 = vpop.f32.mrf.mxu1 }
 0x8a2   :  { %v3007_v12 = vpop.f32.mrf.mxu0  ;;  %v3048_v27 = vpop.f32.mrf.mxu1 }
 0x8a4   :  { %v3008_v26 = vpop.f32.mrf.mxu0  ;;  %v3049_v13 = vpop.f32.mrf.mxu1 }
 0x8a5   :  { %v3693_v26 = vld [vmem:[%s5872_s0 + $0x70] sm:$0xff] }
 0x8a6   :  { %v3164_v13 = vunpack.c.l.bf16 %v3693_v26 }
 0x8be   :  { %v3085_v23 = vpop.f32.mrf.mxu0  ;;  %v3126_v43 = vpop.f32.mrf.mxu1 }
 0x8bf   :  { %v3086_v29 = vadd.f32 %v3085_v23, %v3003_v38  ;;  %v3127_v6 = vadd.f32 %v3126_v43, %v3044_v25 }
 0x8c0   :  { %v3087_v16 = vpop.f32.mrf.mxu0  ;;  %v3128_v4 = vpop.f32.mrf.mxu1 }
 0x8c1   :  { %v3133_v8 = vadd.f32 %v3086_v29, %v5077_v32  ;;  %v3088_v10 = vadd.f32 %v3087_v16, %v3005_v21  ;;  %v3129_v46 = vadd.f32 %v3128_v4, %v3046_v3  ;;  %v3135_v38 = vadd.f32 %v3127_v6, %v5086_v60 }
 0x8c2   :  { %v3089_v14 = vpop.f32.mrf.mxu0  ;;  %v3130_v34 = vpop.f32.mrf.mxu1  ;;  %v3165_v3 = vunpack.c.h.bf16 %v3693_v26 }
 0x8c3   :  { %v3690_v22 = vmul.f32 -1.442695, %v3133_v8  ;;  %v3134_v55 = vadd.f32 %v3088_v10, %v5079_v48  ;;  %v3136_v52 = vadd.f32 %v3129_v46, %v5083_v62 }
 0x8c4   :  { %v3090_v28 = vpop.f32.mrf.mxu0  ;;  %v3131_v31 = vpop.f32.mrf.mxu1 }
 0x8c5   :  { %3916 = vpow2.f32 %v3690_v22  ;;  %v3691_v30 = vmul.f32 -1.442695, %v3134_v55  ;;  %v3692_v39 = vmul.f32 -1.442695, %v3136_v52 }
 0x8c7   :  { %3918 = vpow2.f32 %v3691_v30 }
 0x8c8   :  { %3920 = vpow2.f32 %v3692_v39 }
 0x8d2   :  { %v3917_v33 = vpop.eup %3916 }
 0x8d3   :  { %v3140_v12 = vadd.f32 1.0, %v3917_v33  ;;  %v3694_v33 = vld [vmem:[%s5872_s0 + $0x78] sm:$0xff] }
 0x8d4   :  { %v3919_v21 = vpop.eup %3918 }
 0x8d5   :  { %3922 = vrcp.f32 %v3140_v12  ;;  %v3146_v27 = vadd.f32 1.0, %v3919_v21  ;;  %v3921_v4 = vpop.eup %3920 }
 0x8d6   :  { %3924 = vtanh.f32 %v3135_v38  ;;  %v3153_v30 = vadd.f32 1.0, %v3921_v4  ;;  %v3167_v38 = vunpack.c.h.bf16 %v3694_v33 }
 0x8d7   :  { %3926 = vrcp.f32 %v3146_v27  ;;  %v3166_v27 = vunpack.c.l.bf16 %v3694_v33 }
 0x8de   :  { %v3202_v23 = vpop.f32.mrf.mxu0  ;;  %v3243_v29 = vpop.f32.mrf.mxu1 }
 0x8df   :  { %v3203_v25 = vadd.f32 %v3202_v23, %v3164_v13 }
 0x8e0   :  { %v3204_v43 = vpop.f32.mrf.mxu0  ;;  %v3245_v16 = vpop.f32.mrf.mxu1 }
 0x8e1   :  { %v3695_v8 = vmul.f32 -1.442695, %v3203_v25  ;;  %v3205_v10 = vadd.f32 %v3204_v43, %v3165_v3  ;;  %v3246_v21 = vadd.f32 %v3245_v16, %v3167_v38  ;;  %v3244_v3 = vadd.f32 %v3243_v29, %v3166_v27 }
 0x8e2   :  { %v3923_v14 = vpop.eup %3922  ;;  %v3206_v34 = vpop.f32.mrf.mxu0 }
 0x8e3   :  { %v3247_v22 = vpop.f32.mrf.mxu1  ;;  %v3925_v55 = vpop.eup %3924  ;;  %3928 = vpow2.f32 %v3695_v8  ;;  %v3696_v28 = vmul.f32 -1.442695, %v3205_v10  ;;  %v3697_v26 = vmul.f32 -1.442695, %v3246_v21 }
 0x8e4   :  { %v3927_v31 = vpop.eup %3926  ;;  %v3207_v46 = vpop.f32.mrf.mxu0  ;;  %v3157_v6 = vmul.f32 %v3925_v55, %v3923_v14 }
 0x8e5   :  { %v3248_v52 = vpop.f32.mrf.mxu1  ;;  %v3156_v39 = vmul.f32 %v3927_v31, %v5699_v24  ;;  %3930 = vpow2.f32 %v3696_v28 }
 0x8e6   :  { %3932 = vrcp.f32 %v3153_v30 }
 0x8e7   :  { %v5819_v12 = vadd.f32 %v3157_v6, %v3156_v39 }
 0x8e9   :  { %3934 = vtanh.f32 %v5819_v12 }
 0x8ea   :  { %3936 = vpow2.f32 %v3697_v26 }
 0x8f0   :  { %v3929_v13 = vpop.eup %3928 }
 0x8f1   :  { %v3253_v23 = vadd.f32 1.0, %v3929_v13 }
 0x8f2   :  { %v3931_v25 = vpop.eup %3930 }
 0x8f3   :  { %3938 = vrcp.f32 %v3253_v23  ;;  %v3259_v24 = vadd.f32 1.0, %v3931_v25  ;;  %v3933_v43 = vpop.eup %3932 }
 0x8f4   :  { %3940 = vtanh.f32 %v3244_v3 }
 0x8f5   :  { %3942 = vrcp.f32 %v3259_v24 }
 0x8f6   :  { %v3935_v4 = vpop.eup %3934 }
 0x8f7   :  { %v3160_v8 = vmul.f32 %v3935_v4, %v3933_v43  ;;  %v3937_v29 = vpop.eup %3936 }
 0x8f9   :  { %v3275_v10 = vpack.c.bf16 %v3160_v8, %v3160_v8 }
 0x8fb   :  { %3309 = vmatmul.mubr.bf16.vlgmr.msra.gmra.mxu0 %v3275_v10  ;;  %3350 = vmatmul.mubr.bf16.vlgmr.msra.gmra.mxu1 %v3275_v10 }
 0x8fc   :  { %3359 = vmatpush1.bf16.msra.mxu0 %v6297_v57  ;;  %3400 = vmatpush1.bf16.msra.mxu1 %v6298_v47  ;;  %v3266_v47 = vadd.f32 1.0, %v3937_v29 }
 0x8fd   :  { %3360 = vmatprep.subr.bf16.mxu0 %v6299_v49  ;;  %3401 = vmatprep.subr.bf16.mxu1 %v6300_v41 }
 0x8fe   :  { %3390 = vmatprep.mubr.bf16.mxu0 %v6156_v20  ;;  %3431 = vmatprep.mubr.bf16.mxu1 %v6156_v20  ;;  %3944 = vrcp.f32 %v3266_v47 }
 0x900   :  { %v3939_v16 = vpop.eup %3938  ;;  %3361 = vmatpush1.bf16.msra.mxu0 %v6301_v56  ;;  %3402 = vmatpush1.bf16.msra.mxu1 %v6302_v45 }
 0x901   :  { %v3941_v14 = vpop.eup %3940  ;;  %3362 = vmatprep.subr.bf16.mxu0 %v6303_v59  ;;  %3403 = vmatprep.subr.bf16.mxu1 %v6357_v9 }
 0x902   :  { %v3943_v57 = vpop.eup %3942  ;;  %v3270_v49 = vmul.f32 %v3941_v14, %v3939_v16 }
 0x903   :  { %v3269_v41 = vmul.f32 %v3943_v57, %v5715_v17 }
 0x904   :  { %3363 = vmatpush1.bf16.msra.mxu0 %v6305_v50  ;;  %3404 = vmatpush1.bf16.msra.mxu1 %v6358_v19 }
 0x905   :  { %v3271_v20 = vadd.f32 %v3270_v49, %v3269_v41  ;;  %3364 = vmatprep.subr.bf16.mxu0 %v6359_v15  ;;  %3405 = vmatprep.subr.bf16.mxu1 %v6360_v0 }
 0x907   :  { %3470 = vst [vmem:[%s5880_s8] sm:$0xff] %v3271_v20  ;;  %3946 = vtanh.f32 %v3271_v20 }
 0x908   :  { %3365 = vmatpush1.bf16.msra.mxu0 %v6361_v1  ;;  %3406 = vmatpush1.bf16.msra.mxu1 %v6362_v2 }
 0x909   :  { %3366 = vmatprep.subr.bf16.mxu0 %v6363_v58  ;;  %3407 = vmatprep.subr.bf16.mxu1 %v6364_v54 }
 0x90b   :  { %v3945_v56 = vpop.eup %3944 }
 0x90c   :  { %3367 = vmatpush1.bf16.msra.mxu0 %v6365_v63  ;;  %3408 = vmatpush1.bf16.msra.mxu1 %v6366_v51 }
 0x90d   :  { %3368 = vmatprep.subr.bf16.mxu0 %v6367_v53  ;;  %3409 = vmatprep.subr.bf16.mxu1 %v6368_v11 }
 0x910   :  { %3369 = vmatpush1.bf16.msra.mxu0 %v6369_v7  ;;  %3410 = vmatpush1.bf16.msra.mxu1 %v6370_v5 }
 0x911   :  { %3370 = vmatprep.subr.bf16.mxu0 %v6371_v18  ;;  %3411 = vmatprep.subr.bf16.mxu1 %v6320_v35 }
 0x914   :  { %v3947_v45 = vpop.eup %3946  ;;  %3371 = vmatpush1.bf16.msra.mxu0 %v6321_v42  ;;  %3412 = vmatpush1.bf16.msra.mxu1 %v6322_v44 }
 0x915   :  { %3372 = vmatprep.subr.bf16.mxu0 %v6323_v61  ;;  %3413 = vmatprep.subr.bf16.mxu1 %v6324_v40  ;;  %v3273_v59 = vmul.f32 %v3947_v45, %v3945_v56 }
 0x917   :  { %v3274_v50 = vpack.c.bf16 %v3273_v59, %v3273_v59  ;;  %3468 = vst [vmem:[%s5879_s7] sm:$0xff] %v3273_v59 }
 0x918   :  { %3373 = vmatpush1.bf16.msra.mxu0 %v6325_v37  ;;  %3414 = vmatpush1.bf16.msra.mxu1 %v6326_v36 }
 0x91b   :  { %3391 = vmatmul.mubr.bf16.vlgmr.msra.gmra.mxu0 %v3274_v50  ;;  %3432 = vmatmul.mubr.bf16.vlgmr.msra.gmra.mxu1 %v3274_v50 }
 0x9bb   :  { %v3310_v35 = vpop.f32.mrf.mxu0  ;;  %v3351_v42 = vpop.f32.mrf.mxu1 }
 0x9bd   :  { %v3312_v9 = vpop.f32.mrf.mxu0  ;;  %v3353_v44 = vpop.f32.mrf.mxu1 }
 0x9bf   :  { %v3314_v19 = vpop.f32.mrf.mxu0  ;;  %v3355_v61 = vpop.f32.mrf.mxu1 }
 0x9c1   :  { %v3315_v15 = vpop.f32.mrf.mxu0  ;;  %v3356_v40 = vpop.f32.mrf.mxu1 }
 0x9db   :  { %v3392_v0 = vpop.f32.mrf.mxu0  ;;  %v3433_v1 = vpop.f32.mrf.mxu1 }
 0x9dc   :  { %v3393_v2 = vadd.f32 %v3392_v0, %v3310_v35  ;;  %v3434_v22 = vadd.f32 %v3433_v1, %v3351_v42 }
 0x9dd   :  { %v3394_v58 = vpop.f32.mrf.mxu0  ;;  %v3435_v54 = vpop.f32.mrf.mxu1 }
 0x9de   :  { %v3440_v63 = vadd.f32 %v3393_v2, %v5077_v32  ;;  %v3395_v37 = vadd.f32 %v3394_v58, %v3312_v9  ;;  %v3436_v17 = vadd.f32 %v3435_v54, %v3353_v44  ;;  %v3442_v31 = vadd.f32 %v3434_v22, %v5086_v60 }
 0x9df   :  { %v3396_v51 = vpop.f32.mrf.mxu0  ;;  %v3437_v36 = vpop.f32.mrf.mxu1 }
 0x9e0   :  { %v3698_v53 = vmul.f32 -1.442695, %v3440_v63  ;;  %v3441_v11 = vadd.f32 %v3395_v37, %v5079_v48  ;;  %v3443_v34 = vadd.f32 %v3436_v17, %v5083_v62 }
 0x9e1   :  { %v3397_v7 = vpop.f32.mrf.mxu0  ;;  %v3438_v5 = vpop.f32.mrf.mxu1 }
 0x9e2   :  { %3948 = vpow2.f32 %v3698_v53  ;;  %v3699_v18 = vmul.f32 -1.442695, %v3441_v11  ;;  %v3700_v55 = vmul.f32 -1.442695, %v3443_v34 }
 0x9e4   :  { %3950 = vpow2.f32 %v3699_v18 }
 0x9e5   :  { %3952 = vpow2.f32 %v3700_v55 }
 0x9ef   :  { %v3949_v28 = vpop.eup %3948 }
 0x9f0   :  { %v3447_v32 = vadd.f32 1.0, %v3949_v28 }
 0x9f1   :  { %v3951_v30 = vpop.eup %3950 }
 0x9f2   :  { %3954 = vrcp.f32 %v3447_v32  ;;  %v3453_v46 = vadd.f32 1.0, %v3951_v30  ;;  %v3953_v48 = vpop.eup %3952 }
 0x9f3   :  { %3956 = vtanh.f32 %v3442_v31  ;;  %v3460_v33 = vadd.f32 1.0, %v3953_v48 }
 0x9f4   :  { %3958 = vrcp.f32 %v3453_v46 }
 0x9f5   :  { %3960 = vrcp.f32 %v3460_v33 }
 0x9ff   :  { %v3955_v52 = vpop.eup %3954 }
 0xa00   :  { %v3957_v6 = vpop.eup %3956 }
 0xa01   :  { %v3959_v39 = vpop.eup %3958  ;;  %v3464_v38 = vmul.f32 %v3957_v6, %v3955_v52 }
 0xa02   :  { %v3463_v62 = vmul.f32 %v3959_v39, %v5819_v12  ;;  %v3961_v60 = vpop.eup %3960 }
 0xa04   :  { %v3465_v21 = vadd.f32 %v3464_v38, %v3463_v62 }
 0xa06   :  { %3962 = vtanh.f32 %v3465_v21  ;;  %3702 = vst [vmem:[%s5880_s8 + $0x8] sm:$0xff] %v3465_v21 }
 0xa13   :  { %v3963_v27 = vpop.eup %3962 }
 0xa14   :  { %v3467_v26 = vmul.f32 %v3963_v27, %v3961_v60 }
 0xa16   :  { %3701 = vst [vmem:[%s5879_s7 + $0x8] sm:$0xff] %v3467_v26 }
 0xa17   :  { %3480 = vsyncmov [#allocation6] }
 0xa1a   :  { %s3481_s28 = vpop.sfrf %3480 }
 0xa1b   :  { %p3703_p0 = scmp.ne.s32.totalorder %s3481_s28, 0 }
 0xa1d   :  { %3485 = shalt.err (%p3703_p0)  }
 0xa1e   :  { %3487 = vsyncmov [#allocation6 + $0x1] }
 0xa21   :  { %s3488_s29 = vpop.sfrf %3487 }
 0xa22   :  { %p3704_p1 = scmp.ne.s32.totalorder %s3488_s29, 0 }
 0xa24   :  { %3492 = shalt.err (%p3704_p1)  }
 0xa25   :  { %3494 = vsyncmov [#allocation6 + $0x2] }
 0xa28   :  { %s3495_s30 = vpop.sfrf %3494 }
 0xa29   :  { %p3705_p2 = scmp.ne.s32.totalorder %s3495_s30, 0 }
 0xa2b   :  { %3499 = shalt.err (%p3705_p2)  }
 0xa2c   :  { %3501 = vsyncmov [#allocation6 + $0x3] }
 0xa2f   :  { %s3502_s8 = vpop.sfrf %3501 }
 0xa30   :  { %p3706_p3 = scmp.ne.s32.totalorder %s3502_s8, 0 }
 0xa32   :  { %3506 = shalt.err (%p3706_p3)  }

</bundles_post_ra>
